<compile_context>
chip_gen: v7x
topology: tpu7x:2x2x1
jax: 0.10.0
libtpu: 0.0.40
codegen_flags: <defaults>
</compile_context>

<pallas_src>
import jax
import jax.numpy as jnp
from jax import lax
from jax.experimental import pallas as pl
from jax.experimental.pallas import tpu as pltpu

# ---- SPD shape-prior-loss weights (object-deformnet defaults) ----------------
CORR_WT = 1.0
CD_WT = 5.0
ENTROPY_WT = 1e-4
DEFORM_WT = 0.01
SL1_BETA = 0.1


def _r8(x):
    return (x + 7) // 8 * 8


def _r128(x):
    return (x + 127) // 128 * 128


# =============================================================================
# Fused kernel: SPD shape-prior loss + prop-rot pose loss, one batch per step.
# =============================================================================
def _bbox_geometry_kernel(sym_ref,      # SMEM (B, 4)  int32
                          pose_ref,     # SMEM (B, 32) f32: Rp(9), tp(3), Rg(9), tg(3)
                          assign_ref,   # VMEM (1, n_pts, nv)  logits (untransposed)
                          vert_ref,     # VMEM (1, 2, nv, 8)   [inst_pm, deltas_pm]
                          model_ref,    # VMEM (1, 8, nm)      gt model coord-major
                          pts_ref,      # VMEM (1, 3, 8, n_pts) recon/nocs/points coord-major
                          nocsp_ref,    # VMEM (1, n_pts, 8)   nocs point-major
                          out_ref):     # VMEM (1, 8, 128)
    b = pl.program_id(0)
    f32 = jnp.float32

    assign = assign_ref[0]              # (P, V) logits, softmax over V (lanes)
    inst_pm = vert_ref[0, 0]            # (V, 8) deformed prior, cols 0..2 valid
    deltas_pm = vert_ref[0, 1]          # (V, 8)
    model_t = model_ref[0]              # (8, M) rows 0..2 valid
    recon_t = pts_ref[0, 0]             # (8, P)
    nocs_t = pts_ref[0, 1]              # (8, P)
    points_t = pts_ref[0, 2]            # (8, P)
    nocs_pm = nocsp_ref[0]              # (P, 8) cols 0..2 valid

    P, V = assign.shape
    M = model_t.shape[1]
    inv_np = 1.0 / float(P)
    inv_3np = 1.0 / (3.0 * float(P))
    inv_nv = 1.0 / float(V)
    inv_nm = 1.0 / float(M)

    is_sym = sym_ref[b, 0] == 1
    sym_f = is_sym.astype(f32)

    # ------------------------------------------------------------------
    # SPD shape-prior loss
    # ------------------------------------------------------------------
    # softmax over prior vertices (lane axis); no padding -> no masks needed
    mx = jnp.max(assign, axis=1, keepdims=True)                  # (P, 1)
    z = assign - mx
    e = jnp.exp(z)
    s = jnp.sum(e, axis=1, keepdims=True)                        # (P, 1)
    soft = e * pl.reciprocal(s, approx=True)                     # (P, V)
    # entropy: -sum soft*log_soft == log(s) - sum soft*z  (since sum(soft)=1)
    ent = jnp.log(s) - jnp.sum(soft * z, axis=1, keepdims=True)  # (P, 1)
    entropy = jnp.sum(ent) * inv_np

    # correspondence coords: MXU matmul, K = nv (cols 3..7 of inst_pm are 0)
    coords = jnp.dot(soft, inst_pm, preferred_element_type=f32)  # (P, 8)

    def smooth_l1(d):
        return jnp.where(d > SL1_BETA, d - 0.5 * SL1_BETA,
                         d * d * (0.5 / SL1_BETA))

    per_pt = jnp.sum(smooth_l1(jnp.abs(coords - nocs_pm)), axis=1,
                     keepdims=True)                              # (P, 1)
    # TODO(synk): exact RBP-Pose symmetry handling in shape_prior_loss is not
    # provided; min-over-x-reflection (y-z plane) is used for symmetric objs.
    c0 = coords[:, 0:1]
    n0 = nocs_pm[:, 0:1]
    per_pt_r = (per_pt - smooth_l1(jnp.abs(c0 - n0))
                + smooth_l1(jnp.abs(c0 + n0)))
    per_pt_eff = jnp.where(is_sym, jnp.minimum(per_pt, per_pt_r), per_pt)
    corr = jnp.sum(per_pt_eff) * inv_np

    # chamfer distance inst <-> model (VPU outer-product form, no masks)
    i0, i1, i2 = inst_pm[:, 0:1], inst_pm[:, 1:2], inst_pm[:, 2:3]   # (V, 1)
    m0, m1, m2 = model_t[0:1, :], model_t[1:2, :], model_t[2:3, :]   # (1, M)
    cross = i0 * m0 + i1 * m1 + i2 * m2                              # (V, M)
    inst_sq = i0 * i0 + i1 * i1 + i2 * i2                            # (V, 1)
    model_sq = m0 * m0 + m1 * m1 + m2 * m2                           # (1, M)
    d2 = jnp.maximum(inst_sq + model_sq - 2.0 * cross, 0.0)          # (V, M)
    dist_inst = jnp.min(d2, axis=1, keepdims=True)                   # (V, 1)
    dist_model = jnp.min(d2, axis=0, keepdims=True)                  # (1, M)
    cd = jnp.sum(dist_inst) * inv_nv + jnp.sum(dist_model) * inv_nm

    # deformation regularizer (cols 3..7 of deltas_pm are zero)
    deform = jnp.sum(jnp.sqrt(jnp.sum(deltas_pm * deltas_pm, axis=1,
                                      keepdims=True))) * inv_nv

    # ------------------------------------------------------------------
    # prop_rot (pose consistency) loss -- 9-FMA rotations on the VPU
    # ------------------------------------------------------------------
    rp = [[pose_ref[b, 3 * i + j] for j in range(3)] for i in range(3)]
    tp = [pose_ref[b, 9 + i] for i in range(3)]
    rg = [[pose_ref[b, 12 + 3 * i + j] for j in range(3)] for i in range(3)]
    tg = [pose_ref[b, 21 + i] for i in range(3)]

    rec = [recon_t[0:1, :], recon_t[1:2, :], recon_t[2:3, :]]
    noc = [nocs_t[0:1, :], nocs_t[1:2, :], nocs_t[2:3, :]]
    pts = [points_t[0:1, :], points_t[1:2, :], points_t[2:3, :]]

    # TODO(synk): exact per-term weights of RBP-Pose's prop_rot_loss (FLAGS.*)
    # are not provided; unit weights are used.
    pm_sum = f32(0.0)
    cano_sum = f32(0.0)
    for i in range(3):
        # Prop_pm: recon @ Rp^T + tp  vs  nocs @ Rg^T + tg
        pw = rp[i][0] * rec[0] + rp[i][1] * rec[1] + rp[i][2] * rec[2] + tp[i]
        gw = rg[i][0] * noc[0] + rg[i][1] * noc[1] + rg[i][2] * noc[2] + tg[i]
        pm_sum = pm_sum + jnp.sum(jnp.abs(pw - gw))
        # Prop_point_cano: (points - tp) @ Rp  vs  recon
        cn = (rp[0][i] * (pts[0] - tp[0]) + rp[1][i] * (pts[1] - tp[1])
              + rp[2][i] * (pts[2] - tp[2]))
        cano_sum = cano_sum + jnp.sum(jnp.abs(cn - rec[i]))
    prop_pm = pm_sum * inv_3np
    prop_cano = cano_sum * inv_3np

    # Per_point: predicted canonical coords vs gt NOCS (rows 3..7 are 0-0).
    per_point = jnp.sum(jnp.abs(recon_t - nocs_t)) * inv_3np

    # Prop_sym: radius/height matching for y-axis rotationally-symmetric objs.
    r_p = jnp.sqrt(rec[0] * rec[0] + rec[2] * rec[2])
    r_g = jnp.sqrt(noc[0] * noc[0] + noc[2] * noc[2])
    prop_sym = sym_f * ((jnp.sum(jnp.abs(r_p - r_g))
                         + jnp.sum(jnp.abs(rec[1] - noc[1]))) * inv_np)

    # ------------------------------------------------------------------
    # pack the 8 per-batch scalars into a lane-dense (8, 128) output tile
    # ------------------------------------------------------------------
    ridx = lax.broadcasted_iota(jnp.int32, (8, 128), 0)
    vals = (corr, entropy, cd, deform, prop_pm, prop_cano, prop_sym, per_point)
    tile = jnp.zeros((8, 128), f32)
    for i, v in enumerate(vals):
        tile = jnp.where(ridx == i, v, tile)
    out_ref[0] = tile


# =============================================================================
# Wrapper: (cheap) layout packing of the small tensors + single pallas_call
# =============================================================================
def _fused_loss_components(sym, pred_list, gt_list):
    f32 = jnp.float32
    assign_mat = pred_list['assign_mat'].astype(f32)   # (B, n_pts, nv): fed as-is
    deltas = pred_list['deltas']
    recon = pred_list['recon']
    Rp = pred_list['Rot']
    Tp = pred_list['Tran']
    prior = gt_list['prior']
    nocs = gt_list['nocs']
    model = gt_list['model']
    points = gt_list['points']
    Rg = gt_list['R']
    Tg = gt_list['T']

    B, n_pts, nv = assign_mat.shape
    nm = model.shape[1]

    def pm_pack(x):                    # (B, n, 3) -> (B, n, 8) point-major
        return jnp.pad(x.astype(f32), ((0, 0), (0, 0), (0, 5)))

    def cm_pack(x):                    # (B, n, 3) -> (B, 8, n) coordinate-major
        xt = jnp.transpose(x.astype(f32), (0, 2, 1))
        return jnp.pad(xt, ((0, 0), (0, 5), (0, 0)))

    inst = prior.astype(f32) + deltas.astype(f32)
    vert_pack = jnp.stack([pm_pack(inst), pm_pack(deltas)], axis=1)  # (B,2,nv,8)
    model_t = cm_pack(model)                                         # (B,8,nm)
    pts_pack = jnp.stack([cm_pack(recon), cm_pack(nocs), cm_pack(points)],
                         axis=1)                                     # (B,3,8,n_pts)
    nocs_pm = pm_pack(nocs)                                          # (B,n_pts,8)

    # poses packed as SMEM scalars: [Rp(9), tp(3), Rg(9), tg(3), pad(8)]
    pose = jnp.concatenate(
        [Rp.reshape(B, 9), Tp.reshape(B, 3), Rg.reshape(B, 9),
         Tg.reshape(B, 3), jnp.zeros((B, 8), f32)], axis=1).astype(f32)  # (B, 32)
    sym_i = sym.astype(jnp.int32)

    # ---- per-step VMEM budget (double-buffered inputs + compute temps) ----
    in_tile = 4 * (_r8(n_pts) * _r128(nv)        # assign
                   + 2 * _r8(nv) * 128           # vert_pack
                   + 8 * _r128(nm)               # model_t
                   + 3 * 8 * _r128(n_pts)        # pts_pack
                   + _r8(n_pts) * 128)           # nocs_pm
    temps = 4 * (4 * _r8(n_pts) * _r128(nv)      # softmax z/e/soft + products
                 + 2 * _r8(nv) * _r128(nm)       # chamfer cross / d2
                 + 2 * _r8(n_pts) * 128)         # coords / diffs
    step_bytes = 2 * in_tile + temps + 8 * 128 * 4
    try:
        phys = int(pltpu.get_tpu_info().vmem_capacity_bytes)
    except Exception:
        phys = 64 * 2**20                        # conservative (v7x)
    vmem_limit = int(min(phys * 7 // 8,
                         max(32 * 2**20, step_bytes + (4 << 20))))

    grid_spec = pltpu.PrefetchScalarGridSpec(
        num_scalar_prefetch=2,
        grid=(B,),
        in_specs=[
            pl.BlockSpec((1, n_pts, nv), lambda b, s, p: (b, 0, 0)),
            pl.BlockSpec((1, 2, nv, 8), lambda b, s, p: (b, 0, 0, 0)),
            pl.BlockSpec((1, 8, nm), lambda b, s, p: (b, 0, 0)),
            pl.BlockSpec((1, 3, 8, n_pts), lambda b, s, p: (b, 0, 0, 0)),
            pl.BlockSpec((1, n_pts, 8), lambda b, s, p: (b, 0, 0)),
        ],
        out_specs=pl.BlockSpec((1, 8, 128), lambda b, s, p: (b, 0, 0)),
    )
    out = pl.pallas_call(
        _bbox_geometry_kernel,
        out_shape=jax.ShapeDtypeStruct((B, 8, 128), jnp.float32),
        grid_spec=grid_spec,
        compiler_params=pltpu.CompilerParams(
            dimension_semantics=("parallel",),   # batch axis -> both v7x TCs
            vmem_limit_bytes=vmem_limit),
    )(sym_i, pose, assign_mat, vert_pack, model_t, pts_pack, nocs_pm)

    return jnp.mean(out[:, :, 0], axis=0)        # (8,) batch-averaged components


# =============================================================================
# BboxGeometryLoss.forward equivalent
# =============================================================================
def bbox_geometry_loss(sym, pred_list, gt_list, obj_ids,
                       save_path=None, resBboxNorFlag=0):
    namelist = ['Prop_pm', 'Prop_point_cano', 'Prop_sym', 'Per_point']
    comps = _fused_loss_components(sym, pred_list, gt_list)
    corr, entropy, cd, deform = comps[0], comps[1], comps[2], comps[3]
    prop_pm, prop_cano, prop_sym, per_point = comps[4], comps[5], comps[6], comps[7]

    shapeCorLoss = (CORR_WT * corr + CD_WT * cd + ENTROPY_WT * entropy
                    + DEFORM_WT * deform)

    enhancePoseLoss = jnp.float32(0.0)
    if 'Prop_pm' in namelist:
        enhancePoseLoss = enhancePoseLoss + prop_pm
    if 'Prop_point_cano' in namelist:
        enhancePoseLoss = enhancePoseLoss + prop_cano
    if 'Prop_sym' in namelist:
        enhancePoseLoss = enhancePoseLoss + prop_sym
    if 'Per_point' in namelist:
        enhancePoseLoss = enhancePoseLoss + per_point

    if resBboxNorFlag == 1:
        # TODO(synk): recon_6face_loss source is not provided; only the default
        # (resBboxNorFlag == 0) path is reproduced.
        resBboxNorLoss = jnp.float32(0.0)
    else:
        resBboxNorLoss = 0
    return shapeCorLoss, enhancePoseLoss, resBboxNorLoss


# =============================================================================
if __name__ == "__main__":
    key = jax.random.PRNGKey(0)
    B, n_pts, nv, nm = 2, 128, 64, 96      # small; exercises non-128 lane dims

    ks = jax.random.split(key, 10)
    assign_mat = jax.random.normal(ks[0], (B, n_pts, nv), jnp.float32)
    deltas = 0.01 * jax.random.normal(ks[1], (B, nv, 3), jnp.float32)
    prior = jax.random.uniform(ks[2], (B, nv, 3), jnp.float32, -0.5, 0.5)
    nocs = jax.random.uniform(ks[3], (B, n_pts, 3), jnp.float32, -0.5, 0.5)
    model = jax.random.uniform(ks[4], (B, nm, 3), jnp.float32, -0.5, 0.5)

    R_gt = jnp.tile(jnp.eye(3, dtype=jnp.float32)[None], (B, 1, 1))
    T_gt = jax.random.uniform(ks[5], (B, 1, 3), jnp.float32, -0.1, 0.1)
    points = jnp.einsum('bnd,bkd->bnk', nocs, R_gt) + T_gt     # observed PC

    R_pred = jnp.tile(jnp.eye(3, dtype=jnp.float32)[None], (B, 1, 1))
    T_pred = T_gt + 0.01 * jax.random.normal(ks[6], (B, 1, 3), jnp.float32)
    recon = nocs + 0.01 * jax.random.normal(ks[7], (B, n_pts, 3), jnp.float32)

    sym = jnp.array([[1, 0, 0, 0], [0, 0, 0, 0]], dtype=jnp.int32)
    obj_ids = jnp.array([0, 1], dtype=jnp.int32)

    pred_list = {'assign_mat': assign_mat, 'deltas': deltas,
                 'Rot': R_pred, 'Tran': T_pred, 'recon': recon}
    gt_list = {'prior': prior, 'nocs': nocs, 'model': model,
               'R': R_gt, 'T': T_gt, 'points': points}

    shape_l, pose_l, res_l = bbox_geometry_loss(
        sym, pred_list, gt_list, obj_ids, save_path=None, resBboxNorFlag=0)
    jax.block_until_ready((shape_l, pose_l))
    print("KERNEL_OK")
</pallas_src>

<mosaic_0001>
module attributes {stable_mosaic.version = 11 : i64} {
  func.func @_bbox_geometry_kernel(%arg0: i32, %arg1: memref<2x4xi32, #tpu.memory_space<smem>>, %arg2: memref<2x32xf32, #tpu.memory_space<smem>>, %arg3: memref<1x128x64xf32, #tpu.memory_space<vmem>>, %arg4: memref<1x2x64x8xf32, #tpu.memory_space<vmem>>, %arg5: memref<1x8x96xf32, #tpu.memory_space<vmem>>, %arg6: memref<1x3x8x128xf32, #tpu.memory_space<vmem>>, %arg7: memref<1x128x8xf32, #tpu.memory_space<vmem>>, %arg8: memref<1x8x128xf32, #tpu.memory_space<vmem>>) attributes {dimension_semantics = [#tpu.dimension_semantics<parallel>], iteration_bounds = array<i64: 2>, scalar_prefetch = 2 : i64, scratch_operands = 0 : i64, tpu.core_type = #tpu.core_type<tc>, window_params = [{transform_indices = @transform_0, window_bounds = array<i64: 1, 128, 64>}, {transform_indices = @transform_1, window_bounds = array<i64: 1, 2, 64, 8>}, {transform_indices = @transform_2, window_bounds = array<i64: 1, 8, 96>}, {transform_indices = @transform_3, window_bounds = array<i64: 1, 3, 8, 128>}, {transform_indices = @transform_4, window_bounds = array<i64: 1, 128, 8>}, {transform_indices = @transform_5, window_bounds = array<i64: 1, 8, 128>}]} {
    %c0 = arith.constant 0 : index
    %c0_0 = arith.constant 0 : index
    %c0_1 = arith.constant 0 : index
    %0 = vector.load %arg3[%c0, %c0_0, %c0_1] : memref<1x128x64xf32, #tpu.memory_space<vmem>>, vector<1x128x64xf32>
    %1 = vector.shape_cast %0 : vector<1x128x64xf32> to vector<128x64xf32>
    %c0_2 = arith.constant 0 : index
    %c0_3 = arith.constant 0 : index
    %c0_4 = arith.constant 0 : index
    %c0_5 = arith.constant 0 : index
    %2 = vector.load %arg4[%c0_2, %c0_3, %c0_4, %c0_5] : memref<1x2x64x8xf32, #tpu.memory_space<vmem>>, vector<1x1x64x8xf32>
    %3 = vector.shape_cast %2 : vector<1x1x64x8xf32> to vector<64x8xf32>
    %c0_6 = arith.constant 0 : index
    %c1 = arith.constant 1 : index
    %c0_7 = arith.constant 0 : index
    %c0_8 = arith.constant 0 : index
    %4 = vector.load %arg4[%c0_6, %c1, %c0_7, %c0_8] : memref<1x2x64x8xf32, #tpu.memory_space<vmem>>, vector<1x1x64x8xf32>
    %5 = vector.shape_cast %4 : vector<1x1x64x8xf32> to vector<64x8xf32>
    %c0_9 = arith.constant 0 : index
    %c0_10 = arith.constant 0 : index
    %c0_11 = arith.constant 0 : index
    %6 = vector.load %arg5[%c0_9, %c0_10, %c0_11] : memref<1x8x96xf32, #tpu.memory_space<vmem>>, vector<1x8x96xf32>
    %7 = vector.shape_cast %6 : vector<1x8x96xf32> to vector<8x96xf32>
    %c0_12 = arith.constant 0 : index
    %c0_13 = arith.constant 0 : index
    %c0_14 = arith.constant 0 : index
    %c0_15 = arith.constant 0 : index
    %8 = vector.load %arg6[%c0_12, %c0_13, %c0_14, %c0_15] : memref<1x3x8x128xf32, #tpu.memory_space<vmem>>, vector<1x1x8x128xf32>
    %9 = vector.shape_cast %8 : vector<1x1x8x128xf32> to vector<8x128xf32>
    %c0_16 = arith.constant 0 : index
    %c1_17 = arith.constant 1 : index
    %c0_18 = arith.constant 0 : index
    %c0_19 = arith.constant 0 : index
    %10 = vector.load %arg6[%c0_16, %c1_17, %c0_18, %c0_19] : memref<1x3x8x128xf32, #tpu.memory_space<vmem>>, vector<1x1x8x128xf32>
    %11 = vector.shape_cast %10 : vector<1x1x8x128xf32> to vector<8x128xf32>
    %c0_20 = arith.constant 0 : index
    %c2 = arith.constant 2 : index
    %c0_21 = arith.constant 0 : index
    %c0_22 = arith.constant 0 : index
    %12 = vector.load %arg6[%c0_20, %c2, %c0_21, %c0_22] : memref<1x3x8x128xf32, #tpu.memory_space<vmem>>, vector<1x1x8x128xf32>
    %13 = vector.shape_cast %12 : vector<1x1x8x128xf32> to vector<8x128xf32>
    %c0_23 = arith.constant 0 : index
    %c0_24 = arith.constant 0 : index
    %c0_25 = arith.constant 0 : index
    %14 = vector.load %arg7[%c0_23, %c0_24, %c0_25] : memref<1x128x8xf32, #tpu.memory_space<vmem>>, vector<1x128x8xf32>
    %15 = vector.shape_cast %14 : vector<1x128x8xf32> to vector<128x8xf32>
    %16 = arith.index_cast %arg0 : i32 to index
    %c0_26 = arith.constant 0 : index
    %17 = memref.load %arg1[%16, %c0_26] : memref<2x4xi32, #tpu.memory_space<smem>>
    %c1_i32 = arith.constant 1 : i32
    %18 = arith.cmpi eq, %17, %c1_i32 : i32
    %19 = arith.extui %18 : i1 to i32
    %20 = arith.sitofp %19 : i32 to f32
    %cst = arith.constant dense<0xFF800000> : vector<128xf32>
    %21 = vector.multi_reduction <maximumf>, %1, %cst [1] : vector<128x64xf32> to vector<128xf32>
    %22 = vector.shape_cast %21 : vector<128xf32> to vector<128x1xf32>
    %23 = vector.broadcast %22 : vector<128x1xf32> to vector<128x64xf32>
    %24 = arith.subf %1, %23 : vector<128x64xf32>
    %25 = math.exp %24 : vector<128x64xf32>
    %cst_27 = arith.constant dense<0.000000e+00> : vector<128xf32>
    %26 = vector.multi_reduction <add>, %25, %cst_27 [1] : vector<128x64xf32> to vector<128xf32>
    %27 = vector.shape_cast %26 : vector<128xf32> to vector<128x1xf32>
    %28 = tpu.reciprocal %27 {approx = true} : vector<128x1xf32> -> vector<128x1xf32>
    %29 = vector.broadcast %28 : vector<128x1xf32> to vector<128x64xf32>
    %30 = arith.mulf %25, %29 : vector<128x64xf32>
    %31 = math.log %27 : vector<128x1xf32>
    %32 = arith.mulf %30, %24 : vector<128x64xf32>
    %cst_28 = arith.constant dense<0.000000e+00> : vector<128xf32>
    %33 = vector.multi_reduction <add>, %32, %cst_28 [1] : vector<128x64xf32> to vector<128xf32>
    %34 = vector.shape_cast %33 : vector<128xf32> to vector<128x1xf32>
    %35 = arith.subf %31, %34 : vector<128x1xf32>
    %36 = vector.shape_cast %35 : vector<128x1xf32> to vector<1x128x1xf32>
    %cst_29 = arith.constant dense<0.000000e+00> : vector<1xf32>
    %37 = vector.multi_reduction <add>, %36, %cst_29 [1, 2] : vector<1x128x1xf32> to vector<1xf32>
    %38 = vector.shape_cast %37 : vector<1xf32> to vector<1x1x1xf32>
    %39 = vector.extract %38[0, 0, 0] : f32 from vector<1x1x1xf32>
    %cst_30 = arith.constant 7.812500e-03 : f32
    %40 = arith.mulf %39, %cst_30 : f32
    %cst_31 = arith.constant dense<0.000000e+00> : vector<128x8xf32>
    %41 = tpu.matmul %30, %3, %cst_31 {dimension_numbers = #tpu.dot_dimension_numbers<[1], [0], [0], [1], [0, 0, 1, 1], [], []>} : vector<128x64xf32>, vector<64x8xf32>, vector<128x8xf32> -> vector<128x8xf32>
    %42 = arith.subf %41, %15 : vector<128x8xf32>
    %43 = math.absf %42 : vector<128x8xf32>
    %cst_32 = arith.constant 1.000000e-01 : f32
    %44 = vector.broadcast %cst_32 : f32 to vector<128x8xf32>
    %45 = arith.cmpf ogt, %43, %44 : vector<128x8xf32>
    %cst_33 = arith.constant 5.000000e-02 : f32
    %46 = vector.broadcast %cst_33 : f32 to vector<128x8xf32>
    %47 = arith.subf %43, %46 : vector<128x8xf32>
    %48 = arith.mulf %43, %43 : vector<128x8xf32>
    %cst_34 = arith.constant 5.000000e+00 : f32
    %49 = vector.broadcast %cst_34 : f32 to vector<128x8xf32>
    %50 = arith.mulf %48, %49 : vector<128x8xf32>
    %51 = arith.select %45, %47, %50 : vector<128x8xi1>, vector<128x8xf32>
    %cst_35 = arith.constant dense<0.000000e+00> : vector<128xf32>
    %52 = vector.multi_reduction <add>, %51, %cst_35 [1] : vector<128x8xf32> to vector<128xf32>
    %53 = vector.shape_cast %52 : vector<128xf32> to vector<128x1xf32>
    %54 = vector.extract_strided_slice %41 {offsets = [0, 0], sizes = [128, 1], strides = [1, 1]} : vector<128x8xf32> to vector<128x1xf32>
    %55 = vector.extract_strided_slice %15 {offsets = [0, 0], sizes = [128, 1], strides = [1, 1]} : vector<128x8xf32> to vector<128x1xf32>
    %56 = arith.subf %54, %55 : vector<128x1xf32>
    %57 = math.absf %56 : vector<128x1xf32>
    %cst_36 = arith.constant 1.000000e-01 : f32
    %58 = vector.broadcast %cst_36 : f32 to vector<128x1xf32>
    %59 = arith.cmpf ogt, %57, %58 : vector<128x1xf32>
    %cst_37 = arith.constant 5.000000e-02 : f32
    %60 = vector.broadcast %cst_37 : f32 to vector<128x1xf32>
    %61 = arith.subf %57, %60 : vector<128x1xf32>
    %62 = arith.mulf %57, %57 : vector<128x1xf32>
    %cst_38 = arith.constant 5.000000e+00 : f32
    %63 = vector.broadcast %cst_38 : f32 to vector<128x1xf32>
    %64 = arith.mulf %62, %63 : vector<128x1xf32>
    %65 = arith.select %59, %61, %64 : vector<128x1xi1>, vector<128x1xf32>
    %66 = arith.subf %53, %65 : vector<128x1xf32>
    %67 = arith.addf %54, %55 : vector<128x1xf32>
    %68 = math.absf %67 : vector<128x1xf32>
    %cst_39 = arith.constant 1.000000e-01 : f32
    %69 = vector.broadcast %cst_39 : f32 to vector<128x1xf32>
    %70 = arith.cmpf ogt, %68, %69 : vector<128x1xf32>
    %cst_40 = arith.constant 5.000000e-02 : f32
    %71 = vector.broadcast %cst_40 : f32 to vector<128x1xf32>
    %72 = arith.subf %68, %71 : vector<128x1xf32>
    %73 = arith.mulf %68, %68 : vector<128x1xf32>
    %cst_41 = arith.constant 5.000000e+00 : f32
    %74 = vector.broadcast %cst_41 : f32 to vector<128x1xf32>
    %75 = arith.mulf %73, %74 : vector<128x1xf32>
    %76 = arith.select %70, %72, %75 : vector<128x1xi1>, vector<128x1xf32>
    %77 = arith.addf %66, %76 : vector<128x1xf32>
    %78 = arith.minimumf %53, %77 : vector<128x1xf32>
    %79 = arith.select %18, %78, %53 : vector<128x1xf32>
    %80 = vector.shape_cast %79 : vector<128x1xf32> to vector<1x128x1xf32>
    %cst_42 = arith.constant dense<0.000000e+00> : vector<1xf32>
    %81 = vector.multi_reduction <add>, %80, %cst_42 [1, 2] : vector<1x128x1xf32> to vector<1xf32>
    %82 = vector.shape_cast %81 : vector<1xf32> to vector<1x1x1xf32>
    %83 = vector.extract %82[0, 0, 0] : f32 from vector<1x1x1xf32>
    %cst_43 = arith.constant 7.812500e-03 : f32
    %84 = arith.mulf %83, %cst_43 : f32
    %85 = vector.extract_strided_slice %3 {offsets = [0, 0], sizes = [64, 1], strides = [1, 1]} : vector<64x8xf32> to vector<64x1xf32>
    %86 = vector.extract_strided_slice %3 {offsets = [0, 1], sizes = [64, 1], strides = [1, 1]} : vector<64x8xf32> to vector<64x1xf32>
    %87 = vector.extract_strided_slice %3 {offsets = [0, 2], sizes = [64, 1], strides = [1, 1]} : vector<64x8xf32> to vector<64x1xf32>
    %88 = vector.extract_strided_slice %7 {offsets = [0, 0], sizes = [1, 96], strides = [1, 1]} : vector<8x96xf32> to vector<1x96xf32>
    %89 = vector.extract_strided_slice %7 {offsets = [1, 0], sizes = [1, 96], strides = [1, 1]} : vector<8x96xf32> to vector<1x96xf32>
    %90 = vector.extract_strided_slice %7 {offsets = [2, 0], sizes = [1, 96], strides = [1, 1]} : vector<8x96xf32> to vector<1x96xf32>
    %91 = vector.broadcast %85 : vector<64x1xf32> to vector<64x96xf32>
    %92 = vector.broadcast %88 : vector<1x96xf32> to vector<64x96xf32>
    %93 = arith.mulf %91, %92 : vector<64x96xf32>
    %94 = vector.broadcast %86 : vector<64x1xf32> to vector<64x96xf32>
    %95 = vector.broadcast %89 : vector<1x96xf32> to vector<64x96xf32>
    %96 = arith.mulf %94, %95 : vector<64x96xf32>
    %97 = arith.addf %93, %96 : vector<64x96xf32>
    %98 = vector.broadcast %87 : vector<64x1xf32> to vector<64x96xf32>
    %99 = vector.broadcast %90 : vector<1x96xf32> to vector<64x96xf32>
    %100 = arith.mulf %98, %99 : vector<64x96xf32>
    %101 = arith.addf %97, %100 : vector<64x96xf32>
    %102 = arith.mulf %85, %85 : vector<64x1xf32>
    %103 = arith.mulf %86, %86 : vector<64x1xf32>
    %104 = arith.addf %102, %103 : vector<64x1xf32>
    %105 = arith.mulf %87, %87 : vector<64x1xf32>
    %106 = arith.addf %104, %105 : vector<64x1xf32>
    %107 = arith.mulf %88, %88 : vector<1x96xf32>
    %108 = arith.mulf %89, %89 : vector<1x96xf32>
    %109 = arith.addf %107, %108 : vector<1x96xf32>
    %110 = arith.mulf %90, %90 : vector<1x96xf32>
    %111 = arith.addf %109, %110 : vector<1x96xf32>
    %112 = vector.broadcast %106 : vector<64x1xf32> to vector<64x96xf32>
    %113 = vector.broadcast %111 : vector<1x96xf32> to vector<64x96xf32>
    %114 = arith.addf %112, %113 : vector<64x96xf32>
    %cst_44 = arith.constant 2.000000e+00 : f32
    %115 = vector.broadcast %cst_44 : f32 to vector<64x96xf32>
    %116 = arith.mulf %115, %101 : vector<64x96xf32>
    %117 = arith.subf %114, %116 : vector<64x96xf32>
    %cst_45 = arith.constant 0.000000e+00 : f32
    %118 = vector.broadcast %cst_45 : f32 to vector<64x96xf32>
    %119 = arith.maximumf %117, %118 : vector<64x96xf32>
    %cst_46 = arith.constant dense<0x7F800000> : vector<64xf32>
    %120 = vector.multi_reduction <minimumf>, %119, %cst_46 [1] : vector<64x96xf32> to vector<64xf32>
    %121 = vector.shape_cast %120 : vector<64xf32> to vector<64x1xf32>
    %cst_47 = arith.constant dense<0x7F800000> : vector<96xf32>
    %122 = vector.multi_reduction <minimumf>, %119, %cst_47 [0] : vector<64x96xf32> to vector<96xf32>
    %123 = vector.shape_cast %122 : vector<96xf32> to vector<1x96xf32>
    %124 = vector.shape_cast %121 : vector<64x1xf32> to vector<1x64x1xf32>
    %cst_48 = arith.constant dense<0.000000e+00> : vector<1xf32>
    %125 = vector.multi_reduction <add>, %124, %cst_48 [1, 2] : vector<1x64x1xf32> to vector<1xf32>
    %126 = vector.shape_cast %125 : vector<1xf32> to vector<1x1x1xf32>
    %127 = vector.extract %126[0, 0, 0] : f32 from vector<1x1x1xf32>
    %cst_49 = arith.constant 1.562500e-02 : f32
    %128 = arith.mulf %127, %cst_49 : f32
    %129 = vector.shape_cast %123 : vector<1x96xf32> to vector<1x1x96xf32>
    %cst_50 = arith.constant dense<0.000000e+00> : vector<1xf32>
    %130 = vector.multi_reduction <add>, %129, %cst_50 [1, 2] : vector<1x1x96xf32> to vector<1xf32>
    %131 = vector.shape_cast %130 : vector<1xf32> to vector<1x1x1xf32>
    %132 = vector.extract %131[0, 0, 0] : f32 from vector<1x1x1xf32>
    %cst_51 = arith.constant 0.010416667 : f32
    %133 = arith.mulf %132, %cst_51 : f32
    %134 = arith.addf %128, %133 : f32
    %135 = arith.mulf %5, %5 : vector<64x8xf32>
    %cst_52 = arith.constant dense<0.000000e+00> : vector<64xf32>
    %136 = vector.multi_reduction <add>, %135, %cst_52 [1] : vector<64x8xf32> to vector<64xf32>
    %137 = vector.shape_cast %136 : vector<64xf32> to vector<64x1xf32>
    %138 = math.sqrt %137 : vector<64x1xf32>
    %139 = vector.shape_cast %138 : vector<64x1xf32> to vector<1x64x1xf32>
    %cst_53 = arith.constant dense<0.000000e+00> : vector<1xf32>
    %140 = vector.multi_reduction <add>, %139, %cst_53 [1, 2] : vector<1x64x1xf32> to vector<1xf32>
    %141 = vector.shape_cast %140 : vector<1xf32> to vector<1x1x1xf32>
    %142 = vector.extract %141[0, 0, 0] : f32 from vector<1x1x1xf32>
    %cst_54 = arith.constant 1.562500e-02 : f32
    %143 = arith.mulf %142, %cst_54 : f32
    %144 = arith.index_cast %arg0 : i32 to index
    %c0_55 = arith.constant 0 : index
    %145 = memref.load %arg2[%144, %c0_55] : memref<2x32xf32, #tpu.memory_space<smem>>
    %146 = arith.index_cast %arg0 : i32 to index
    %c1_56 = arith.constant 1 : index
    %147 = memref.load %arg2[%146, %c1_56] : memref<2x32xf32, #tpu.memory_space<smem>>
    %148 = arith.index_cast %arg0 : i32 to index
    %c2_57 = arith.constant 2 : index
    %149 = memref.load %arg2[%148, %c2_57] : memref<2x32xf32, #tpu.memory_space<smem>>
    %150 = arith.index_cast %arg0 : i32 to index
    %c3 = arith.constant 3 : index
    %151 = memref.load %arg2[%150, %c3] : memref<2x32xf32, #tpu.memory_space<smem>>
    %152 = arith.index_cast %arg0 : i32 to index
    %c4 = arith.constant 4 : index
    %153 = memref.load %arg2[%152, %c4] : memref<2x32xf32, #tpu.memory_space<smem>>
    %154 = arith.index_cast %arg0 : i32 to index
    %c5 = arith.constant 5 : index
    %155 = memref.load %arg2[%154, %c5] : memref<2x32xf32, #tpu.memory_space<smem>>
    %156 = arith.index_cast %arg0 : i32 to index
    %c6 = arith.constant 6 : index
    %157 = memref.load %arg2[%156, %c6] : memref<2x32xf32, #tpu.memory_space<smem>>
    %158 = arith.index_cast %arg0 : i32 to index
    %c7 = arith.constant 7 : index
    %159 = memref.load %arg2[%158, %c7] : memref<2x32xf32, #tpu.memory_space<smem>>
    %160 = arith.index_cast %arg0 : i32 to index
    %c8 = arith.constant 8 : index
    %161 = memref.load %arg2[%160, %c8] : memref<2x32xf32, #tpu.memory_space<smem>>
    %162 = arith.index_cast %arg0 : i32 to index
    %c9 = arith.constant 9 : index
    %163 = memref.load %arg2[%162, %c9] : memref<2x32xf32, #tpu.memory_space<smem>>
    %164 = arith.index_cast %arg0 : i32 to index
    %c10 = arith.constant 10 : index
    %165 = memref.load %arg2[%164, %c10] : memref<2x32xf32, #tpu.memory_space<smem>>
    %166 = arith.index_cast %arg0 : i32 to index
    %c11 = arith.constant 11 : index
    %167 = memref.load %arg2[%166, %c11] : memref<2x32xf32, #tpu.memory_space<smem>>
    %168 = arith.index_cast %arg0 : i32 to index
    %c12 = arith.constant 12 : index
    %169 = memref.load %arg2[%168, %c12] : memref<2x32xf32, #tpu.memory_space<smem>>
    %170 = arith.index_cast %arg0 : i32 to index
    %c13 = arith.constant 13 : index
    %171 = memref.load %arg2[%170, %c13] : memref<2x32xf32, #tpu.memory_space<smem>>
    %172 = arith.index_cast %arg0 : i32 to index
    %c14 = arith.constant 14 : index
    %173 = memref.load %arg2[%172, %c14] : memref<2x32xf32, #tpu.memory_space<smem>>
    %174 = arith.index_cast %arg0 : i32 to index
    %c15 = arith.constant 15 : index
    %175 = memref.load %arg2[%174, %c15] : memref<2x32xf32, #tpu.memory_space<smem>>
    %176 = arith.index_cast %arg0 : i32 to index
    %c16 = arith.constant 16 : index
    %177 = memref.load %arg2[%176, %c16] : memref<2x32xf32, #tpu.memory_space<smem>>
    %178 = arith.index_cast %arg0 : i32 to index
    %c17 = arith.constant 17 : index
    %179 = memref.load %arg2[%178, %c17] : memref<2x32xf32, #tpu.memory_space<smem>>
    %180 = arith.index_cast %arg0 : i32 to index
    %c18 = arith.constant 18 : index
    %181 = memref.load %arg2[%180, %c18] : memref<2x32xf32, #tpu.memory_space<smem>>
    %182 = arith.index_cast %arg0 : i32 to index
    %c19 = arith.constant 19 : index
    %183 = memref.load %arg2[%182, %c19] : memref<2x32xf32, #tpu.memory_space<smem>>
    %184 = arith.index_cast %arg0 : i32 to index
    %c20 = arith.constant 20 : index
    %185 = memref.load %arg2[%184, %c20] : memref<2x32xf32, #tpu.memory_space<smem>>
    %186 = arith.index_cast %arg0 : i32 to index
    %c21 = arith.constant 21 : index
    %187 = memref.load %arg2[%186, %c21] : memref<2x32xf32, #tpu.memory_space<smem>>
    %188 = arith.index_cast %arg0 : i32 to index
    %c22 = arith.constant 22 : index
    %189 = memref.load %arg2[%188, %c22] : memref<2x32xf32, #tpu.memory_space<smem>>
    %190 = arith.index_cast %arg0 : i32 to index
    %c23 = arith.constant 23 : index
    %191 = memref.load %arg2[%190, %c23] : memref<2x32xf32, #tpu.memory_space<smem>>
    %192 = vector.extract_strided_slice %9 {offsets = [0, 0], sizes = [1, 128], strides = [1, 1]} : vector<8x128xf32> to vector<1x128xf32>
    %193 = vector.extract_strided_slice %9 {offsets = [1, 0], sizes = [1, 128], strides = [1, 1]} : vector<8x128xf32> to vector<1x128xf32>
    %194 = vector.extract_strided_slice %9 {offsets = [2, 0], sizes = [1, 128], strides = [1, 1]} : vector<8x128xf32> to vector<1x128xf32>
    %195 = vector.extract_strided_slice %11 {offsets = [0, 0], sizes = [1, 128], strides = [1, 1]} : vector<8x128xf32> to vector<1x128xf32>
    %196 = vector.extract_strided_slice %11 {offsets = [1, 0], sizes = [1, 128], strides = [1, 1]} : vector<8x128xf32> to vector<1x128xf32>
    %197 = vector.extract_strided_slice %11 {offsets = [2, 0], sizes = [1, 128], strides = [1, 1]} : vector<8x128xf32> to vector<1x128xf32>
    %198 = vector.extract_strided_slice %13 {offsets = [0, 0], sizes = [1, 128], strides = [1, 1]} : vector<8x128xf32> to vector<1x128xf32>
    %199 = vector.extract_strided_slice %13 {offsets = [1, 0], sizes = [1, 128], strides = [1, 1]} : vector<8x128xf32> to vector<1x128xf32>
    %200 = vector.extract_strided_slice %13 {offsets = [2, 0], sizes = [1, 128], strides = [1, 1]} : vector<8x128xf32> to vector<1x128xf32>
    %201 = vector.broadcast %145 : f32 to vector<1x128xf32>
    %202 = arith.mulf %201, %192 : vector<1x128xf32>
    %203 = vector.broadcast %147 : f32 to vector<1x128xf32>
    %204 = arith.mulf %203, %193 : vector<1x128xf32>
    %205 = arith.addf %202, %204 : vector<1x128xf32>
    %206 = vector.broadcast %149 : f32 to vector<1x128xf32>
    %207 = arith.mulf %206, %194 : vector<1x128xf32>
    %208 = arith.addf %205, %207 : vector<1x128xf32>
    %209 = vector.broadcast %163 : f32 to vector<1x128xf32>
    %210 = arith.addf %208, %209 : vector<1x128xf32>
    %211 = vector.broadcast %169 : f32 to vector<1x128xf32>
    %212 = arith.mulf %211, %195 : vector<1x128xf32>
    %213 = vector.broadcast %171 : f32 to vector<1x128xf32>
    %214 = arith.mulf %213, %196 : vector<1x128xf32>
    %215 = arith.addf %212, %214 : vector<1x128xf32>
    %216 = vector.broadcast %173 : f32 to vector<1x128xf32>
    %217 = arith.mulf %216, %197 : vector<1x128xf32>
    %218 = arith.addf %215, %217 : vector<1x128xf32>
    %219 = vector.broadcast %187 : f32 to vector<1x128xf32>
    %220 = arith.addf %218, %219 : vector<1x128xf32>
    %221 = arith.subf %210, %220 : vector<1x128xf32>
    %222 = math.absf %221 : vector<1x128xf32>
    %223 = vector.shape_cast %222 : vector<1x128xf32> to vector<1x1x128xf32>
    %cst_58 = arith.constant dense<0.000000e+00> : vector<1xf32>
    %224 = vector.multi_reduction <add>, %223, %cst_58 [1, 2] : vector<1x1x128xf32> to vector<1xf32>
    %225 = vector.shape_cast %224 : vector<1xf32> to vector<1x1x1xf32>
    %226 = vector.extract %225[0, 0, 0] : f32 from vector<1x1x1xf32>
    %cst_59 = arith.constant 0.000000e+00 : f32
    %227 = arith.addf %cst_59, %226 : f32
    %228 = vector.broadcast %163 : f32 to vector<1x128xf32>
    %229 = arith.subf %198, %228 : vector<1x128xf32>
    %230 = vector.broadcast %145 : f32 to vector<1x128xf32>
    %231 = arith.mulf %230, %229 : vector<1x128xf32>
    %232 = vector.broadcast %165 : f32 to vector<1x128xf32>
    %233 = arith.subf %199, %232 : vector<1x128xf32>
    %234 = vector.broadcast %151 : f32 to vector<1x128xf32>
    %235 = arith.mulf %234, %233 : vector<1x128xf32>
    %236 = arith.addf %231, %235 : vector<1x128xf32>
    %237 = vector.broadcast %167 : f32 to vector<1x128xf32>
    %238 = arith.subf %200, %237 : vector<1x128xf32>
    %239 = vector.broadcast %157 : f32 to vector<1x128xf32>
    %240 = arith.mulf %239, %238 : vector<1x128xf32>
    %241 = arith.addf %236, %240 : vector<1x128xf32>
    %242 = arith.subf %241, %192 : vector<1x128xf32>
    %243 = math.absf %242 : vector<1x128xf32>
    %244 = vector.shape_cast %243 : vector<1x128xf32> to vector<1x1x128xf32>
    %cst_60 = arith.constant dense<0.000000e+00> : vector<1xf32>
    %245 = vector.multi_reduction <add>, %244, %cst_60 [1, 2] : vector<1x1x128xf32> to vector<1xf32>
    %246 = vector.shape_cast %245 : vector<1xf32> to vector<1x1x1xf32>
    %247 = vector.extract %246[0, 0, 0] : f32 from vector<1x1x1xf32>
    %cst_61 = arith.constant 0.000000e+00 : f32
    %248 = arith.addf %cst_61, %247 : f32
    %249 = vector.broadcast %151 : f32 to vector<1x128xf32>
    %250 = arith.mulf %249, %192 : vector<1x128xf32>
    %251 = vector.broadcast %153 : f32 to vector<1x128xf32>
    %252 = arith.mulf %251, %193 : vector<1x128xf32>
    %253 = arith.addf %250, %252 : vector<1x128xf32>
    %254 = vector.broadcast %155 : f32 to vector<1x128xf32>
    %255 = arith.mulf %254, %194 : vector<1x128xf32>
    %256 = arith.addf %253, %255 : vector<1x128xf32>
    %257 = vector.broadcast %165 : f32 to vector<1x128xf32>
    %258 = arith.addf %256, %257 : vector<1x128xf32>
    %259 = vector.broadcast %175 : f32 to vector<1x128xf32>
    %260 = arith.mulf %259, %195 : vector<1x128xf32>
    %261 = vector.broadcast %177 : f32 to vector<1x128xf32>
    %262 = arith.mulf %261, %196 : vector<1x128xf32>
    %263 = arith.addf %260, %262 : vector<1x128xf32>
    %264 = vector.broadcast %179 : f32 to vector<1x128xf32>
    %265 = arith.mulf %264, %197 : vector<1x128xf32>
    %266 = arith.addf %263, %265 : vector<1x128xf32>
    %267 = vector.broadcast %189 : f32 to vector<1x128xf32>
    %268 = arith.addf %266, %267 : vector<1x128xf32>
    %269 = arith.subf %258, %268 : vector<1x128xf32>
    %270 = math.absf %269 : vector<1x128xf32>
    %271 = vector.shape_cast %270 : vector<1x128xf32> to vector<1x1x128xf32>
    %cst_62 = arith.constant dense<0.000000e+00> : vector<1xf32>
    %272 = vector.multi_reduction <add>, %271, %cst_62 [1, 2] : vector<1x1x128xf32> to vector<1xf32>
    %273 = vector.shape_cast %272 : vector<1xf32> to vector<1x1x1xf32>
    %274 = vector.extract %273[0, 0, 0] : f32 from vector<1x1x1xf32>
    %275 = arith.addf %227, %274 : f32
    %276 = vector.broadcast %163 : f32 to vector<1x128xf32>
    %277 = arith.subf %198, %276 : vector<1x128xf32>
    %278 = vector.broadcast %147 : f32 to vector<1x128xf32>
    %279 = arith.mulf %278, %277 : vector<1x128xf32>
    %280 = vector.broadcast %165 : f32 to vector<1x128xf32>
    %281 = arith.subf %199, %280 : vector<1x128xf32>
    %282 = vector.broadcast %153 : f32 to vector<1x128xf32>
    %283 = arith.mulf %282, %281 : vector<1x128xf32>
    %284 = arith.addf %279, %283 : vector<1x128xf32>
    %285 = vector.broadcast %167 : f32 to vector<1x128xf32>
    %286 = arith.subf %200, %285 : vector<1x128xf32>
    %287 = vector.broadcast %159 : f32 to vector<1x128xf32>
    %288 = arith.mulf %287, %286 : vector<1x128xf32>
    %289 = arith.addf %284, %288 : vector<1x128xf32>
    %290 = arith.subf %289, %193 : vector<1x128xf32>
    %291 = math.absf %290 : vector<1x128xf32>
    %292 = vector.shape_cast %291 : vector<1x128xf32> to vector<1x1x128xf32>
    %cst_63 = arith.constant dense<0.000000e+00> : vector<1xf32>
    %293 = vector.multi_reduction <add>, %292, %cst_63 [1, 2] : vector<1x1x128xf32> to vector<1xf32>
    %294 = vector.shape_cast %293 : vector<1xf32> to vector<1x1x1xf32>
    %295 = vector.extract %294[0, 0, 0] : f32 from vector<1x1x1xf32>
    %296 = arith.addf %248, %295 : f32
    %297 = vector.broadcast %157 : f32 to vector<1x128xf32>
    %298 = arith.mulf %297, %192 : vector<1x128xf32>
    %299 = vector.broadcast %159 : f32 to vector<1x128xf32>
    %300 = arith.mulf %299, %193 : vector<1x128xf32>
    %301 = arith.addf %298, %300 : vector<1x128xf32>
    %302 = vector.broadcast %161 : f32 to vector<1x128xf32>
    %303 = arith.mulf %302, %194 : vector<1x128xf32>
    %304 = arith.addf %301, %303 : vector<1x128xf32>
    %305 = vector.broadcast %167 : f32 to vector<1x128xf32>
    %306 = arith.addf %304, %305 : vector<1x128xf32>
    %307 = vector.broadcast %181 : f32 to vector<1x128xf32>
    %308 = arith.mulf %307, %195 : vector<1x128xf32>
    %309 = vector.broadcast %183 : f32 to vector<1x128xf32>
    %310 = arith.mulf %309, %196 : vector<1x128xf32>
    %311 = arith.addf %308, %310 : vector<1x128xf32>
    %312 = vector.broadcast %185 : f32 to vector<1x128xf32>
    %313 = arith.mulf %312, %197 : vector<1x128xf32>
    %314 = arith.addf %311, %313 : vector<1x128xf32>
    %315 = vector.broadcast %191 : f32 to vector<1x128xf32>
    %316 = arith.addf %314, %315 : vector<1x128xf32>
    %317 = arith.subf %306, %316 : vector<1x128xf32>
    %318 = math.absf %317 : vector<1x128xf32>
    %319 = vector.shape_cast %318 : vector<1x128xf32> to vector<1x1x128xf32>
    %cst_64 = arith.constant dense<0.000000e+00> : vector<1xf32>
    %320 = vector.multi_reduction <add>, %319, %cst_64 [1, 2] : vector<1x1x128xf32> to vector<1xf32>
    %321 = vector.shape_cast %320 : vector<1xf32> to vector<1x1x1xf32>
    %322 = vector.extract %321[0, 0, 0] : f32 from vector<1x1x1xf32>
    %323 = arith.addf %275, %322 : f32
    %324 = vector.broadcast %163 : f32 to vector<1x128xf32>
    %325 = arith.subf %198, %324 : vector<1x128xf32>
    %326 = vector.broadcast %149 : f32 to vector<1x128xf32>
    %327 = arith.mulf %326, %325 : vector<1x128xf32>
    %328 = vector.broadcast %165 : f32 to vector<1x128xf32>
    %329 = arith.subf %199, %328 : vector<1x128xf32>
    %330 = vector.broadcast %155 : f32 to vector<1x128xf32>
    %331 = arith.mulf %330, %329 : vector<1x128xf32>
    %332 = arith.addf %327, %331 : vector<1x128xf32>
    %333 = vector.broadcast %167 : f32 to vector<1x128xf32>
    %334 = arith.subf %200, %333 : vector<1x128xf32>
    %335 = vector.broadcast %161 : f32 to vector<1x128xf32>
    %336 = arith.mulf %335, %334 : vector<1x128xf32>
    %337 = arith.addf %332, %336 : vector<1x128xf32>
    %338 = arith.subf %337, %194 : vector<1x128xf32>
    %339 = math.absf %338 : vector<1x128xf32>
    %340 = vector.shape_cast %339 : vector<1x128xf32> to vector<1x1x128xf32>
    %cst_65 = arith.constant dense<0.000000e+00> : vector<1xf32>
    %341 = vector.multi_reduction <add>, %340, %cst_65 [1, 2] : vector<1x1x128xf32> to vector<1xf32>
    %342 = vector.shape_cast %341 : vector<1xf32> to vector<1x1x1xf32>
    %343 = vector.extract %342[0, 0, 0] : f32 from vector<1x1x1xf32>
    %344 = arith.addf %296, %343 : f32
    %cst_66 = arith.constant 0.00260416674 : f32
    %345 = arith.mulf %323, %cst_66 : f32
    %cst_67 = arith.constant 0.00260416674 : f32
    %346 = arith.mulf %344, %cst_67 : f32
    %347 = arith.subf %9, %11 : vector<8x128xf32>
    %348 = math.absf %347 : vector<8x128xf32>
    %349 = vector.shape_cast %348 : vector<8x128xf32> to vector<1x8x128xf32>
    %cst_68 = arith.constant dense<0.000000e+00> : vector<1xf32>
    %350 = vector.multi_reduction <add>, %349, %cst_68 [1, 2] : vector<1x8x128xf32> to vector<1xf32>
    %351 = vector.shape_cast %350 : vector<1xf32> to vector<1x1x1xf32>
    %352 = vector.extract %351[0, 0, 0] : f32 from vector<1x1x1xf32>
    %cst_69 = arith.constant 0.00260416674 : f32
    %353 = arith.mulf %352, %cst_69 : f32
    %354 = arith.mulf %192, %192 : vector<1x128xf32>
    %355 = arith.mulf %194, %194 : vector<1x128xf32>
    %356 = arith.addf %354, %355 : vector<1x128xf32>
    %357 = math.sqrt %356 : vector<1x128xf32>
    %358 = arith.mulf %195, %195 : vector<1x128xf32>
    %359 = arith.mulf %197, %197 : vector<1x128xf32>
    %360 = arith.addf %358, %359 : vector<1x128xf32>
    %361 = math.sqrt %360 : vector<1x128xf32>
    %362 = arith.subf %357, %361 : vector<1x128xf32>
    %363 = math.absf %362 : vector<1x128xf32>
    %364 = vector.shape_cast %363 : vector<1x128xf32> to vector<1x1x128xf32>
    %cst_70 = arith.constant dense<0.000000e+00> : vector<1xf32>
    %365 = vector.multi_reduction <add>, %364, %cst_70 [1, 2] : vector<1x1x128xf32> to vector<1xf32>
    %366 = vector.shape_cast %365 : vector<1xf32> to vector<1x1x1xf32>
    %367 = vector.extract %366[0, 0, 0] : f32 from vector<1x1x1xf32>
    %368 = arith.subf %193, %196 : vector<1x128xf32>
    %369 = math.absf %368 : vector<1x128xf32>
    %370 = vector.shape_cast %369 : vector<1x128xf32> to vector<1x1x128xf32>
    %cst_71 = arith.constant dense<0.000000e+00> : vector<1xf32>
    %371 = vector.multi_reduction <add>, %370, %cst_71 [1, 2] : vector<1x1x128xf32> to vector<1xf32>
    %372 = vector.shape_cast %371 : vector<1xf32> to vector<1x1x1xf32>
    %373 = vector.extract %372[0, 0, 0] : f32 from vector<1x1x1xf32>
    %374 = arith.addf %367, %373 : f32
    %cst_72 = arith.constant 7.812500e-03 : f32
    %375 = arith.mulf %374, %cst_72 : f32
    %376 = arith.mulf %20, %375 : f32
    %377 = tpu.iota {dimensions = array<i32: 0>} : vector<8x128xi32>
    %cst_73 = arith.constant 0.000000e+00 : f32
    %378 = vector.broadcast %cst_73 : f32 to vector<8x128xf32>
    %c0_i32 = arith.constant 0 : i32
    %379 = vector.broadcast %c0_i32 : i32 to vector<8x128xi32>
    %380 = arith.cmpi eq, %377, %379 : vector<8x128xi32>
    %381 = vector.broadcast %84 : f32 to vector<8x128xf32>
    %382 = arith.select %380, %381, %378 : vector<8x128xi1>, vector<8x128xf32>
    %c1_i32_74 = arith.constant 1 : i32
    %383 = vector.broadcast %c1_i32_74 : i32 to vector<8x128xi32>
    %384 = arith.cmpi eq, %377, %383 : vector<8x128xi32>
    %385 = vector.broadcast %40 : f32 to vector<8x128xf32>
    %386 = arith.select %384, %385, %382 : vector<8x128xi1>, vector<8x128xf32>
    %c2_i32 = arith.constant 2 : i32
    %387 = vector.broadcast %c2_i32 : i32 to vector<8x128xi32>
    %388 = arith.cmpi eq, %377, %387 : vector<8x128xi32>
    %389 = vector.broadcast %134 : f32 to vector<8x128xf32>
    %390 = arith.select %388, %389, %386 : vector<8x128xi1>, vector<8x128xf32>
    %c3_i32 = arith.constant 3 : i32
    %391 = vector.broadcast %c3_i32 : i32 to vector<8x128xi32>
    %392 = arith.cmpi eq, %377, %391 : vector<8x128xi32>
    %393 = vector.broadcast %143 : f32 to vector<8x128xf32>
    %394 = arith.select %392, %393, %390 : vector<8x128xi1>, vector<8x128xf32>
    %c4_i32 = arith.constant 4 : i32
    %395 = vector.broadcast %c4_i32 : i32 to vector<8x128xi32>
    %396 = arith.cmpi eq, %377, %395 : vector<8x128xi32>
    %397 = vector.broadcast %345 : f32 to vector<8x128xf32>
    %398 = arith.select %396, %397, %394 : vector<8x128xi1>, vector<8x128xf32>
    %c5_i32 = arith.constant 5 : i32
    %399 = vector.broadcast %c5_i32 : i32 to vector<8x128xi32>
    %400 = arith.cmpi eq, %377, %399 : vector<8x128xi32>
    %401 = vector.broadcast %346 : f32 to vector<8x128xf32>
    %402 = arith.select %400, %401, %398 : vector<8x128xi1>, vector<8x128xf32>
    %c6_i32 = arith.constant 6 : i32
    %403 = vector.broadcast %c6_i32 : i32 to vector<8x128xi32>
    %404 = arith.cmpi eq, %377, %403 : vector<8x128xi32>
    %405 = vector.broadcast %376 : f32 to vector<8x128xf32>
    %406 = arith.select %404, %405, %402 : vector<8x128xi1>, vector<8x128xf32>
    %c7_i32 = arith.constant 7 : i32
    %407 = vector.broadcast %c7_i32 : i32 to vector<8x128xi32>
    %408 = arith.cmpi eq, %377, %407 : vector<8x128xi32>
    %409 = vector.broadcast %353 : f32 to vector<8x128xf32>
    %410 = arith.select %408, %409, %406 : vector<8x128xi1>, vector<8x128xf32>
    %c0_75 = arith.constant 0 : index
    %c0_76 = arith.constant 0 : index
    %c0_77 = arith.constant 0 : index
    %411 = vector.load %arg8[%c0_75, %c0_76, %c0_77] : memref<1x8x128xf32, #tpu.memory_space<vmem>>, vector<1x8x128xf32>
    %412 = vector.shape_cast %411 : vector<1x8x128xf32> to vector<8x128xf32>
    %413 = vector.shape_cast %410 : vector<8x128xf32> to vector<1x8x128xf32>
    tpu.vector_store %arg8[%c0_75, %c0_76, %c0_77], %413 {strides = array<i32>} : memref<1x8x128xf32, #tpu.memory_space<vmem>>, vector<1x8x128xf32>,
    return
  }
  func.func @transform_0(%arg0: i32, %arg1: memref<2x4xi32, #tpu.memory_space<smem>>, %arg2: memref<2x32xf32, #tpu.memory_space<smem>>) -> (i32, i32, i32) {
    %c0_i32 = arith.constant 0 : i32
    %c0_i32_0 = arith.constant 0 : i32
    %c0_i32_1 = arith.constant 0 : i32
    return %arg0, %c0_i32, %c0_i32_0 : i32, i32, i32
  }
  func.func @transform_1(%arg0: i32, %arg1: memref<2x4xi32, #tpu.memory_space<smem>>, %arg2: memref<2x32xf32, #tpu.memory_space<smem>>) -> (i32, i32, i32, i32) {
    %c0_i32 = arith.constant 0 : i32
    %c0_i32_0 = arith.constant 0 : i32
    %c0_i32_1 = arith.constant 0 : i32
    %c0_i32_2 = arith.constant 0 : i32
    return %arg0, %c0_i32, %c0_i32_0, %c0_i32_1 : i32, i32, i32, i32
  }
  func.func @transform_2(%arg0: i32, %arg1: memref<2x4xi32, #tpu.memory_space<smem>>, %arg2: memref<2x32xf32, #tpu.memory_space<smem>>) -> (i32, i32, i32) {
    %c0_i32 = arith.constant 0 : i32
    %c0_i32_0 = arith.constant 0 : i32
    %c0_i32_1 = arith.constant 0 : i32
    return %arg0, %c0_i32, %c0_i32_0 : i32, i32, i32
  }
  func.func @transform_3(%arg0: i32, %arg1: memref<2x4xi32, #tpu.memory_space<smem>>, %arg2: memref<2x32xf32, #tpu.memory_space<smem>>) -> (i32, i32, i32, i32) {
    %c0_i32 = arith.constant 0 : i32
    %c0_i32_0 = arith.constant 0 : i32
    %c0_i32_1 = arith.constant 0 : i32
    %c0_i32_2 = arith.constant 0 : i32
    return %arg0, %c0_i32, %c0_i32_0, %c0_i32_1 : i32, i32, i32, i32
  }
  func.func @transform_4(%arg0: i32, %arg1: memref<2x4xi32, #tpu.memory_space<smem>>, %arg2: memref<2x32xf32, #tpu.memory_space<smem>>) -> (i32, i32, i32) {
    %c0_i32 = arith.constant 0 : i32
    %c0_i32_0 = arith.constant 0 : i32
    %c0_i32_1 = arith.constant 0 : i32
    return %arg0, %c0_i32, %c0_i32_0 : i32, i32, i32
  }
  func.func @transform_5(%arg0: i32, %arg1: memref<2x4xi32, #tpu.memory_space<smem>>, %arg2: memref<2x32xf32, #tpu.memory_space<smem>>) -> (i32, i32, i32) {
    %c0_i32 = arith.constant 0 : i32
    %c0_i32_0 = arith.constant 0 : i32
    %c0_i32_1 = arith.constant 0 : i32
    return %arg0, %c0_i32, %c0_i32_0 : i32, i32, i32
  }
}

</mosaic_0001>

<bundles_post_ra>
// kernel: tpu_custom_call.1
= control target key start
LH: loop header
LB: loop body
LE: loop exit
PB: predicated region body
PF: predicated region fallthrough
CT: control target
= control target key end

     0   :  { %s4475_s0 = inlined_call_operand.vmem [shape: s32[2,4], index: 0, kind: input, shape index: {}]   ;;  %s4476_s2 = inlined_call_operand.vmem [shape: f32[2,128,64], index: 2, kind: input, shape index: {}]   ;;  %s4477_s3 = inlined_call_operand.vmem [shape: f32[2,2,64,8], index: 3, kind: input, shape index: {}]   ;;  %s4478_s4 = inlined_call_operand.vmem [shape: f32[2,8,96], index: 4, kind: input, shape index: {}]   ;;  %s4479_s5 = inlined_call_operand.vmem [shape: f32[2,3,8,128], index: 5, kind: input, shape index: {}]   ;;  %s4480_s6 = inlined_call_operand.vmem [shape: f32[2,128,8], index: 6, kind: input, shape index: {}]   ;;  %s4481_s7 = inlined_call_operand.hbm [shape: f32[2,8,128], index: 7, kind: output, shape index: {}]   ;;  %s4482_s1 = inlined_call_operand.vmem [shape: f32[2,32], index: 1, kind: input, shape index: {}]  }
   0x1   :  { %4513 = sst [smem:[#allocation41_spill]] %s4476_s2  ;;  %s12_s26 = sshll.u32 %s4475_s0, 4  ;;  %s13_s26 = int_to_ptr.vmem [resolvable:$true] %s12_s26 }
   0x2   :  { %4514 = sst [smem:[#allocation42_spill]] %s4477_s3  ;;  %s16_s29 = sshll.u32 %s4482_s1, 4  ;;  %s17_s29 = int_to_ptr.vmem [resolvable:$true] %s16_s29 }
   0x3   :  { %4515 = sst [smem:[#allocation43_spill]] %s4478_s4  ;;  %s2640_s30 = scalar_lea.vmem %s13_s26, 32 }
   0x4   :  { %4516 = sst [smem:[#allocation44_spill]] %s4479_s5  ;;  %p2641_p0 = scmp.ne.s32.totalorder %s13_s26, %s2640_s30 }
   0x5   :  { %p2645_p1 = scmp.lt.s32.totalorder %s13_s26, %s13_s26  ;;  %p2646_p2 = scmp.lt.s32.totalorder %s2640_s30, %s2640_s30 }
   0x7   :  { %p2647_p3 = por %p2646_p2, %p2645_p1 }
   0x9   :  { %p2648_p4 = pnand %p2647_p3, %p2641_p0 }
   0xb   :  { %2651 = shalt.err (!%p2648_p4)  }
   0xc   :  { %s2730_s8 = smov [#allocation3]   ;;  %s2652_s9 = scalar_lea.vmem %s17_s29, 32 }
   0xd   :  { %15 = dma.vmem_to_smem %s13_s26, 32, %s2730_s8, [#allocation2] }
   0xe   :  { %p2653_p5 = scmp.ne.s32.totalorder %s17_s29, %s2652_s9  ;;  %p2657_p6 = scmp.lt.s32.totalorder %s17_s29, %s17_s29 }
   0xf   :  { %p2658_p7 = scmp.lt.s32.totalorder %s2652_s9, %s2652_s9 }
  0x11   :  { %p2659_p8 = por %p2658_p7, %p2657_p6 }
  0x13   :  { %p2660_p9 = pnand %p2659_p8, %p2653_p5 }
  0x15   :  { %2663 = shalt.err (!%p2660_p9)  }
  0x16   :  { %s2731_s0 = smov [#allocation4]  }
  0x17   :  { %19 = dma.vmem_to_smem %s17_s29, 32, %s2731_s0, [#allocation2] }
  0x18   :  { %2708 = dma.done.wait [#allocation2], 64 }
  0x19   :  { %2709 = vsyncadd [#allocation2], 4294967232 }
  0x1a   :  { %21 = sfence }
  0x1b   :  { %22 = vsyncpa [#allocation6], 0 }
  0x1c   :  { %24 = vsyncpa [#allocation6 + $0x1], 0  ;;  %s2784_s1 = smov 0   ;;  %s2786_s10 = smov 0  }
  0x1d   :  { %s2788_s11 = smov 0   ;;  %s2790_s12 = smov 0  }
  0x1e LB: > { %s2805_s13 = sadd.s32 4294967295, %s2728_s12   ;;  %s2262_s14 = sadd.s32 4294967294, %s2728_s12   ;;  %s2728_s12 = sphi %s2790_s12, %s4618_s12   ;;  %s2724_s11 = sphi %s2788_s11, %s4617_s11   ;;  %s2720_s10 = sphi %s2786_s10, %s4616_s10   ;;  %s2716_s1 = sphi %s2784_s1, %s4615_s1  }
  0x1f   : > { %s2809_s15 = sadd.s32 1, %s2728_s12   ;;  %s167_s16 = sadd.s32 1, %s2724_s11 }
  0x20   : > { %s164_s17 = ssub.s32 %s2728_s12, %s2809_s15  ;;  %p177_p10 = scmp.ne.s32.totalorder %s2724_s11, %s2720_s10 }
  0x21   : > { %p165_p11 = scmp.eq.s32.totalorder %s164_s17, 0  ;;  %p178_p12 = scmp.eq.s32.totalorder %s2805_s13, 1 }
  0x22   : > { %p183_p13 = scmp.ne.s32.totalorder %s2720_s10, %s2716_s1  ;;  %p184_p0 = scmp.eq.s32.totalorder %s2262_s14, 1 }
  0x23   : > { %s2820_s18 = scalar_select %p165_p11, %s2724_s11, %s167_s16  }
  0x24   : > { %p2822_p1 = por %p178_p12, %p177_p10  ;;  %p2826_p2 = por %p184_p0, %p183_p13 }
  0x25   : > { %p2265_p3 = scmp.ge.s32.totalorder %s2728_s12, 1  ;;  %p241_p4 = scmp.lt.s32.totalorder %s2728_s12, 3 }
  0x27   : > { %p242_p5 = pnand %p2265_p3, %p241_p4 }
  0x29   : > { %245 = sbr.rel (%p242_p5) target bundleno = 1066 (0x42a), region = 40 }
  0x30   : > { %p288_p6 = scmp.lt.s32.totalorder %s2805_s13, 1  ;;  %vm372_vm0 = vcmask 523264   ;;  %s4519_s2 = sld [smem:[#allocation41_spill]]  ;;  %v4484_v32 = vmov 0   ;;  %v4483_v33 = vmov 1   ;;  %vm1008_vm1 = vcmask 64512  }
  0x31   : > { %2504 = vset.pattern.permute.xlu1 %v4484_v32  ;;  %2506 = vset.pattern.permute.xlu0 %v4483_v33  ;;  %s4520_s3 = sld [smem:[#allocation42_spill]]  ;;  %s2734_s29 = smov 127   ;;  %vm1596_vm2 = vcmask 785408  }
  0x32   : > { %s2834_s21 = scalar_select %p288_p6, %s2805_s13, 1 }
  0x33   : > { %s2735_s30 = smov 126   ;;  %s4540_s4 = sld [smem:[#allocation43_spill]] }
  0x34   : > { %s2837_s22 = sshll.u32 %s2834_s21, 7  ;;  %s2271_s8 = sshll.u32 %s2834_s21, 3 }
  0x35   : > { %s3464_s23 = scalar_lea.vmem %s4480_s6, %s2837_s22  ;;  %s2429_s24 = smul.u32 24, %s2834_s21 }
  0x36   : > { %s2843_s25 = scalar_lea.vmem %s4519_s2, %s2837_s22  ;;  %s4555_s5 = sld [smem:[#allocation44_spill]] }
  0x37   : > { %v312_v0 = vld [vmem:[%s2843_s25] sm:$0xff]  ;;  %v314_v1 = vld [vmem:[%s2843_s25 + $0x10] sm:$0xff]  ;;  %v313_v2 = vld [vmem:[%s2843_s25 + $0x8] sm:$0xff]  ;;  %s2979_s28 = scalar_lea.vmem %s4520_s3, %s2837_s22  ;;  %s3817_s22 = sshll.u32 %s2805_s13, 7 }
  0x38   : > { %v373_v3 = vsel %vm372_vm0, %v312_v0, -inf  ;;  %v379_v4 = vsel %vm372_vm0, %v314_v1, -inf  ;;  %v315_v5 = vld [vmem:[%s2843_s25 + $0x18] sm:$0xff]  ;;  %v376_v6 = vsel %vm372_vm0, %v313_v2, -inf  ;;  %v316_v8 = vld [vmem:[%s2843_s25 + $0x20] sm:$0xff]  ;;  %v317_v9 = vld [vmem:[%s2843_s25 + $0x28] sm:$0xff] }
  0x39   : > { %374 = vmax.xlane.f32.xlu0 %v373_v3  ;;  %380 = vmax.xlane.f32.xlu1 %v379_v4  ;;  %v382_v7 = vsel %vm372_vm0, %v315_v5, -inf  ;;  %v385_v10 = vsel %vm372_vm0, %v316_v8, -inf  ;;  %v388_v11 = vsel %vm372_vm0, %v317_v9, -inf  ;;  %v318_v12 = vld [vmem:[%s2843_s25 + $0x30] sm:$0xff]  ;;  %v319_v13 = vld [vmem:[%s2843_s25 + $0x38] sm:$0xff]  ;;  %v2862_v16 = vld [vmem:[%s2843_s25 + $0x40] sm:$0xff]  ;;  %s301_s14 = scalar_lea.vmem %s4540_s4, %s2271_s8 }
  0x3a   : > { %v391_v14 = vsel %vm372_vm0, %v318_v12, -inf  ;;  %v394_v15 = vsel %vm372_vm0, %v319_v13, -inf  ;;  %v2865_v17 = vld [vmem:[%s2843_s25 + $0x48] sm:$0xff]  ;;  %v397_v18 = vsel %vm372_vm0, %v2862_v16, -inf  ;;  %v2872_v20 = vld [vmem:[%s2843_s25 + $0x50] sm:$0xff]  ;;  %v2875_v21 = vld [vmem:[%s2843_s25 + $0x58] sm:$0xff] }
  0x3b   : > { %v400_v19 = vsel %vm372_vm0, %v2865_v17, -inf  ;;  %v403_v22 = vsel %vm372_vm0, %v2872_v20, -inf  ;;  %v406_v23 = vsel %vm372_vm0, %v2875_v21, -inf  ;;  %v2882_v24 = vld [vmem:[%s2843_s25 + $0x60] sm:$0xff]  ;;  %v2885_v25 = vld [vmem:[%s2843_s25 + $0x68] sm:$0xff]  ;;  %v2892_v28 = vld [vmem:[%s2843_s25 + $0x70] sm:$0xff] }
  0x3c   : > { %v409_v26 = vsel %vm372_vm0, %v2882_v24, -inf  ;;  %v412_v27 = vsel %vm372_vm0, %v2885_v25, -inf  ;;  %v2895_v29 = vld [vmem:[%s2843_s25 + $0x78] sm:$0xff]  ;;  %v415_v30 = vsel %vm372_vm0, %v2892_v28, -inf  ;;  %s3821_s25 = sld [smem:[#allocation4 + %s3817_s22]]  ;;  %s1786_s26 = sadd.s32 1, %s3817_s22 }
  0x3d   : > { %377 = vmax.xlane.f32.xlu0 %v376_v6  ;;  %383 = vmax.xlane.f32.xlu1 %v382_v7  ;;  %v418_v31 = vsel %vm372_vm0, %v2895_v29, -inf  ;;  %s1788_s27 = sadd.s32 2, %s3817_s22  ;;  %s3828_s13 = sld [smem:[#allocation4 + %s1786_s26]] }
  0x3e   : > { %s3830_s8 = sld [smem:[#allocation4 + %s1788_s27]]  ;;  %s1802_s9 = sadd.s32 9, %s3817_s22 }
  0x3f   : > { %s3833_s0 = sld [smem:[#allocation4 + %s1802_s9]]  ;;  %s1808_s21 = sadd.s32 12, %s3817_s22 }
  0x40   : > { %s1810_s16 = sadd.s32 13, %s3817_s22  ;;  %s1826_s26 = sadd.s32 21, %s3817_s22 }
  0x41   : > { %386 = vmax.xlane.f32.xlu0 %v385_v10  ;;  %389 = vmax.xlane.f32.xlu1 %v388_v11  ;;  %s3841_s17 = sld [smem:[#allocation4 + %s1810_s16]]  ;;  %s1794_s9 = sadd.s32 5, %s3817_s22 }
  0x42   : > { %s3848_s27 = sld [smem:[#allocation4 + %s1826_s26]]  ;;  %s1804_s16 = sadd.s32 10, %s3817_s22 }
  0x43   : > { %s1818_s26 = sadd.s32 17, %s3817_s22  ;;  %s285_s2 = sand.u32 1, %s2720_s10  }
  0x45   : > { %392 = vmax.xlane.f32.xlu0 %v391_v14  ;;  %395 = vmax.xlane.f32.xlu1 %v394_v15 }
  0x49   : > { %398 = vmax.xlane.f32.xlu0 %v397_v18  ;;  %401 = vmax.xlane.f32.xlu1 %v400_v19 }
  0x4d   : > { %404 = vmax.xlane.f32.xlu0 %v403_v22  ;;  %407 = vmax.xlane.f32.xlu1 %v406_v23 }
  0x51   : > { %410 = vmax.xlane.f32.xlu0 %v409_v26  ;;  %413 = vmax.xlane.f32.xlu1 %v412_v27 }
  0x55   : > { %416 = vmax.xlane.f32.xlu0 %v415_v30  ;;  %419 = vmax.xlane.f32.xlu1 %v418_v31 }
  0xc6   : > { %v375_v34 = vpop.xlane.xlu0 %374  ;;  %v381_v35 = vpop.xlane.xlu1 %380 }
  0xc7   : > { %v2903_v36 = vsub.f32 %v312_v0, %v375_v34  ;;  %v2905_v37 = vsub.f32 %v314_v1, %v381_v35 }
  0xc9   : > { %v437_v38 = vmul.f32 1.442695, %v2903_v36  ;;  %v441_v39 = vmul.f32 1.442695, %v2905_v37 }
  0xca   : > { %v378_v40 = vpop.xlane.xlu0 %377  ;;  %v384_v41 = vpop.xlane.xlu1 %383 }
  0xcb   : > { %2524 = vpow2.f32 %v437_v38  ;;  %v2909_v42 = vsub.f32 %v313_v2, %v378_v40  ;;  %v2911_v43 = vsub.f32 %v315_v5, %v384_v41  ;;  %v2996_v38 = vld [vmem:[%s2979_s28] sm:$0xff] }
  0xcc   : > { %2526 = vpow2.f32 %v441_v39  ;;  %v2999_v39 = vld [vmem:[%s2979_s28 + $0x8] sm:$0xff] }
  0xcd   : > { %v439_v44 = vmul.f32 1.442695, %v2909_v42  ;;  %v443_v45 = vmul.f32 1.442695, %v2911_v43 }
  0xce   : > { %v387_v46 = vpop.xlane.xlu0 %386  ;;  %v390_v47 = vpop.xlane.xlu1 %389 }
  0xcf   : > { %2528 = vpow2.f32 %v439_v44  ;;  %v2915_v48 = vsub.f32 %v316_v8, %v387_v46  ;;  %v2917_v49 = vsub.f32 %v317_v9, %v390_v47  ;;  %v2405_v44 = vpack.c.bf16 %v2999_v39, %v2996_v38 }
  0xd0   : > { %2530 = vpow2.f32 %v443_v45 }
  0xd1   : > { %v445_v50 = vmul.f32 1.442695, %v2915_v48  ;;  %v447_v51 = vmul.f32 1.442695, %v2917_v49  ;;  %2406 = vmatprep.subr.bf16.mxu0 %v2405_v44  ;;  %2421 = vmatprep.subr.bf16.mxu1 %v2405_v44 }
  0xd2   : > { %v393_v52 = vpop.xlane.xlu0 %392  ;;  %v396_v53 = vpop.xlane.xlu1 %395  ;;  %2408 = vmatpush3.bf16.msra.mxu0 %v2405_v44  ;;  %2425 = vmatpush3.bf16.msra.mxu1 %v2405_v44 }
  0xd3   : > { %2532 = vpow2.f32 %v445_v50  ;;  %v2921_v54 = vsub.f32 %v318_v12, %v393_v52  ;;  %v2923_v55 = vsub.f32 %v319_v13, %v396_v53  ;;  %v3020_v52 = vld [vmem:[%s2979_s28 + $0x10] sm:$0xff]  ;;  %v3023_v53 = vld [vmem:[%s2979_s28 + $0x18] sm:$0xff] }
  0xd4   : > { %2534 = vpow2.f32 %v447_v51 }
  0xd5   : > { %v2925_v56 = vpop.eup %2524  ;;  %v449_v57 = vmul.f32 1.442695, %v2921_v54  ;;  %v451_v58 = vmul.f32 1.442695, %v2923_v55 }
  0xd6   : > { %v2929_v59 = vpop.eup %2526  ;;  %v399_v60 = vpop.xlane.xlu0 %398  ;;  %v469_v61 = vsel %vm372_vm0, %v2925_v56, 0.0 }
  0xd7   : > { %v402_v62 = vpop.xlane.xlu1 %401  ;;  %2536 = vpow2.f32 %v449_v57  ;;  %v2934_v63 = vsub.f32 %v2862_v16, %v399_v60  ;;  %470 = vadd.xlane.f32.xlu0 %v469_v61  ;;  %v475_v1 = vsel %vm372_vm0, %v2929_v59, 0.0  ;;  %v2409_v57 = vpack.c.bf16 %v3023_v53, %v3020_v52 }
  0xd8   : > { %v2937_v0 = vsub.f32 %v2865_v17, %v402_v62  ;;  %2538 = vpow2.f32 %v451_v58 }
  0xd9   : > { %v2941_v2 = vpop.eup %2528  ;;  %v453_v3 = vmul.f32 1.442695, %v2934_v63  ;;  %2410 = vmatprep.subr.bf16.mxu0 %v2409_v57  ;;  %2422 = vmatprep.subr.bf16.mxu1 %v2409_v57 }
  0xda   : > { %v455_v4 = vmul.f32 1.442695, %v2937_v0  ;;  %v2945_v5 = vpop.eup %2530  ;;  %v405_v6 = vpop.xlane.xlu0 %404  ;;  %v472_v7 = vsel %vm372_vm0, %v2941_v2, 0.0  ;;  %2412 = vmatpush3.bf16.msra.mxu0 %v2409_v57  ;;  %2426 = vmatpush3.bf16.msra.mxu1 %v2409_v57 }
  0xdb   : > { %v408_v8 = vpop.xlane.xlu1 %407  ;;  %2540 = vpow2.f32 %v453_v3  ;;  %v2950_v9 = vsub.f32 %v2872_v20, %v405_v6  ;;  %476 = vadd.xlane.f32.xlu0 %v475_v1  ;;  %473 = vadd.xlane.f32.xlu1 %v472_v7  ;;  %v478_v11 = vsel %vm372_vm0, %v2945_v5, 0.0  ;;  %v3036_v1 = vld [vmem:[%s2979_s28 + $0x20] sm:$0xff]  ;;  %v3039_v3 = vld [vmem:[%s2979_s28 + $0x28] sm:$0xff] }
  0xdc   : > { %v2953_v10 = vsub.f32 %v2875_v21, %v408_v8  ;;  %2542 = vpow2.f32 %v455_v4  ;;  %v2413_v4 = vpack.c.bf16 %v3039_v3, %v3036_v1 }
  0xdd   : > { %v2957_v12 = vpop.eup %2532  ;;  %v457_v13 = vmul.f32 1.442695, %v2950_v9 }
  0xde   : > { %v459_v14 = vmul.f32 1.442695, %v2953_v10  ;;  %v2961_v15 = vpop.eup %2534  ;;  %v411_v16 = vpop.xlane.xlu0 %410  ;;  %v481_v17 = vsel %vm372_vm0, %v2957_v12, 0.0  ;;  %2414 = vmatprep.subr.bf16.mxu0 %v2413_v4  ;;  %2423 = vmatprep.subr.bf16.mxu1 %v2413_v4 }
  0xdf   : > { %v414_v18 = vpop.xlane.xlu1 %413  ;;  %2544 = vpow2.f32 %v457_v13  ;;  %v2966_v19 = vsub.f32 %v2882_v24, %v411_v16  ;;  %479 = vadd.xlane.f32.xlu1 %v478_v11  ;;  %482 = vadd.xlane.f32.xlu0 %v481_v17  ;;  %v484_v21 = vsel %vm372_vm0, %v2961_v15, 0.0  ;;  %v3052_v13 = vld [vmem:[%s2979_s28 + $0x30] sm:$0xff] }
  0xe0   : > { %v2969_v20 = vsub.f32 %v2885_v25, %v414_v18  ;;  %2546 = vpow2.f32 %v459_v14  ;;  %v3055_v14 = vld [vmem:[%s2979_s28 + $0x38] sm:$0xff]  ;;  %2416 = vmatpush3.bf16.msra.mxu0 %v2413_v4  ;;  %2427 = vmatpush3.bf16.msra.mxu1 %v2413_v4  ;;  %v3063_v18 = vmul.f32 %v2999_v39, %v2999_v39 }
  0xe1   : > { %v2973_v22 = vpop.eup %2536  ;;  %v461_v23 = vmul.f32 1.442695, %v2966_v19  ;;  %v2417_v16 = vpack.c.bf16 %v3055_v14, %v3052_v13 }
  0xe2   : > { %v463_v24 = vmul.f32 1.442695, %v2969_v20  ;;  %v2983_v26 = vpop.eup %2538  ;;  %v417_v25 = vpop.xlane.xlu0 %416  ;;  %v487_v27 = vsel %vm372_vm0, %v2973_v22, 0.0 }
  0xe3   : > { %v420_v30 = vpop.xlane.xlu1 %419  ;;  %2548 = vpow2.f32 %v461_v23  ;;  %v2988_v31 = vsub.f32 %v2892_v28, %v417_v25  ;;  %485 = vadd.xlane.f32.xlu1 %v484_v21  ;;  %488 = vadd.xlane.f32.xlu0 %v487_v27  ;;  %v490_v35 = vsel %vm372_vm0, %v2983_v26, 0.0  ;;  %v3067_v21 = vmul.f32 %v2996_v38, %v2996_v38 }
  0xe4   : > { %v2991_v34 = vsub.f32 %v2895_v29, %v420_v30  ;;  %2550 = vpow2.f32 %v463_v24  ;;  %2418 = vmatprep.subr.bf16.mxu0 %v2417_v16  ;;  %2424 = vmatprep.subr.bf16.mxu1 %v2417_v16  ;;  %v3072_v23 = vmul.f32 %v3020_v52, %v3020_v52  ;;  %v3080_v24 = vmul.f32 %v3023_v53, %v3023_v53 }
  0xe5   : > { %v3001_v40 = vpop.eup %2540  ;;  %v465_v41 = vmul.f32 1.442695, %v2988_v31  ;;  %2420 = vmatpush3.bf16.msra.mxu0 %v2417_v16  ;;  %2428 = vmatpush3.bf16.msra.mxu1 %v2417_v16  ;;  %v3086_v25 = vmul.f32 %v3036_v1, %v3036_v1  ;;  %v3092_v27 = vmul.f32 %v3039_v3, %v3039_v3  ;;  %v3098_v30 = vmul.f32 %v3052_v13, %v3052_v13 }
  0xe6   : > { %v467_v28 = vmul.f32 1.442695, %v2991_v34  ;;  %v3007_v29 = vpop.eup %2542  ;;  %v493_v45 = vsel %vm372_vm0, %v3001_v40, 0.0 }
  0xe7   : > { %2552 = vpow2.f32 %v465_v41  ;;  %491 = vadd.xlane.f32.xlu1 %v490_v35  ;;  %494 = vadd.xlane.f32.xlu0 %v493_v45  ;;  %v496_v46 = vsel %vm372_vm0, %v3007_v29, 0.0  ;;  %v3104_v35 = vmul.f32 %v3055_v14, %v3055_v14  ;;  %v4486_v41 = vmov 2  }
  0xe8   : > { %2554 = vpow2.f32 %v467_v28 }
  0xe9   : > { %v3013_v47 = vpop.eup %2544 }
  0xea   : > { %v3015_v50 = vpop.eup %2546  ;;  %v499_v51 = vsel %vm372_vm0, %v3013_v47, 0.0 }
  0xeb   : > { %497 = vadd.xlane.f32.xlu1 %v496_v46  ;;  %500 = vadd.xlane.f32.xlu0 %v499_v51  ;;  %v502_v58 = vsel %vm372_vm0, %v3015_v50, 0.0 }
  0xed   : > { %v3029_v60 = vpop.eup %2548 }
  0xee   : > { %v3031_v61 = vpop.eup %2550  ;;  %v505_v62 = vsel %vm372_vm0, %v3029_v60, 0.0 }
  0xef   : > { %503 = vadd.xlane.f32.xlu1 %v502_v58  ;;  %506 = vadd.xlane.f32.xlu0 %v505_v62  ;;  %v508_v6 = vsel %vm372_vm0, %v3031_v61, 0.0 }
  0xf1   : > { %v3045_v7 = vpop.eup %2552 }
  0xf2   : > { %v3047_v8 = vpop.eup %2554  ;;  %v511_v11 = vsel %vm372_vm0, %v3045_v7, 0.0 }
  0xf3   : > { %509 = vadd.xlane.f32.xlu1 %v508_v6  ;;  %512 = vadd.xlane.f32.xlu0 %v511_v11  ;;  %v514_v17 = vsel %vm372_vm0, %v3047_v8, 0.0 }
  0xf7   : > { %515 = vadd.xlane.f32.xlu1 %v514_v17 }
 0x108   : > { %1450 = vrot.lane.b32.xlu1 %v3063_v18, %s2734_s29 }
 0x109   : > { %1448 = vrot.lane.b32.xlu0 %v3067_v21, %s2734_s29 }
 0x10c   : > { %1452 = vrot.lane.b32.xlu1 %v3072_v23, %s2734_s29 }
 0x10d   : > { %1482 = vrot.lane.b32.xlu0 %v3063_v18, %s2735_s30 }
 0x110   : > { %1480 = vrot.lane.b32.xlu1 %v3067_v21, %s2735_s30 }
 0x111   : > { %1484 = vrot.lane.b32.xlu0 %v3072_v23, %s2735_s30 }
 0x114   : > { %1454 = vrot.lane.b32.xlu1 %v3080_v24, %s2734_s29 }
 0x115   : > { %1486 = vrot.lane.b32.xlu0 %v3080_v24, %s2735_s30 }
 0x118   : > { %1456 = vrot.lane.b32.xlu1 %v3086_v25, %s2734_s29 }
 0x119   : > { %1488 = vrot.lane.b32.xlu0 %v3086_v25, %s2735_s30 }
 0x11c   : > { %1458 = vrot.lane.b32.xlu1 %v3092_v27, %s2734_s29 }
 0x11d   : > { %1490 = vrot.lane.b32.xlu0 %v3092_v27, %s2735_s30 }
 0x120   : > { %1460 = vrot.lane.b32.xlu1 %v3098_v30, %s2734_s29 }
 0x121   : > { %1492 = vrot.lane.b32.xlu0 %v3098_v30, %s2735_s30 }
 0x124   : > { %1462 = vrot.lane.b32.xlu1 %v3104_v35, %s2734_s29 }
 0x125   : > { %1333 = vperm.xlu0 %2506, %v2999_v39  }
 0x128   : > { %1494 = vrot.lane.b32.xlu1 %v3104_v35, %s2735_s30  ;;  %s306_s30 = scalar_lea.vmem %s4555_s5, %s2429_s24 }
 0x129   : > { %1341 = vperm.xlu0 %2506, %v3023_v53  }
 0x12c   : > { %1283 = vperm.xlu1 %2504, %v2999_v39  }
 0x12d   : > { %1345 = vperm.xlu0 %2506, %v3036_v1  }
 0x130   : > { %2505 = vset.pattern.permute.xlu1 %v4483_v33 }
 0x131   : > { %1329 = vperm.xlu1 %2505, %v2996_v38   ;;  %1349 = vperm.xlu0 %2506, %v3039_v3  }
 0x135   : > { %2507 = vset.pattern.permute.xlu1 %v4484_v32  ;;  %1357 = vperm.xlu0 %2506, %v3055_v14  }
 0x136   : > { %1288 = vperm.xlu1 %2507, %v3020_v52  }
 0x139   : > { %2520 = vset.pattern.permute.xlu0 %v4486_v41 }
 0x13a   : > { %2508 = vset.pattern.permute.xlu1 %v4483_v33  ;;  %1381 = vperm.xlu0 %2520, %v2996_v38  }
 0x13b   : > { %1337 = vperm.xlu1 %2508, %v3020_v52  }
 0x13e   : > { %1409 = vperm.xlu0 %2520, %v3055_v14  }
 0x13f   : > { %2509 = vset.pattern.permute.xlu1 %v4486_v41 }
 0x140   : > { %1385 = vperm.xlu1 %2509, %v2999_v39  }
 0x142   : > { %2523 = vset.pattern.permute.xlu0 %v4484_v32 }
 0x143   : > { %1278 = vperm.xlu0 %2523, %v2996_v38  }
 0x144   : > { %2510 = vset.pattern.permute.xlu1 %v4484_v32 }
 0x145   : > { %1293 = vperm.xlu1 %2510, %v3023_v53  }
 0x149   : > { %2511 = vset.pattern.permute.xlu1 %v4486_v41 }
 0x14a   : > { %1389 = vperm.xlu1 %2511, %v3020_v52  }
 0x14e   : > { %2512 = vset.pattern.permute.xlu1 %v4484_v32 }
 0x14f   : > { %1298 = vperm.xlu1 %2512, %v3036_v1  }
 0x153   : > { %2513 = vset.pattern.permute.xlu1 %v4486_v41 }
 0x154   : > { %1393 = vperm.xlu1 %2513, %v3023_v53  }
 0x158   : > { %2514 = vset.pattern.permute.xlu1 %v4484_v32 }
 0x164   : > { %v3137_v39 = vpop.xlane.xlu0 %470 }
 0x165   : > { %2556 = vrcp.f32 %v3137_v39 }
 0x168   : > { %v3140_v38 = vpop.xlane.xlu1 %473  ;;  %v3142_v28 = vpop.xlane.xlu0 %476 }
 0x169   : > { %4521 = vst [vmem:[#allocation9_spill] sm:$0xff] %v3140_v38  ;;  %4522 = vst [vmem:[#allocation10_spill] sm:$0xff] %v3142_v28  ;;  %2558 = vrcp.f32 %v3140_v38 }
 0x16a   : > { %2560 = vrcp.f32 %v3142_v28 }
 0x16c   : > { %v3146_v44 = vpop.xlane.xlu1 %479  ;;  %v3148_v45 = vpop.xlane.xlu0 %482 }
 0x16d   : > { %4523 = vst [vmem:[#allocation11_spill] sm:$0xff] %v3146_v44  ;;  %4524 = vst [vmem:[#allocation12_spill] sm:$0xff] %v3148_v45  ;;  %2562 = vrcp.f32 %v3146_v44 }
 0x16e   : > { %2564 = vrcp.f32 %v3148_v45  ;;  %v2279_v45 = vld [vmem:[%s2979_s28 + $0x60] sm:$0xff] }
 0x16f   : > { %v2557_v46 = vpop.eup %2556 }
 0x170   : > { %v3152_v51 = vpop.xlane.xlu1 %485  ;;  %v3154_v52 = vpop.xlane.xlu0 %488  ;;  %v3157_v53 = vmul.f32 %v2557_v46, %v2925_v56 }
 0x171   : > { %4525 = vst [vmem:[#allocation13_spill] sm:$0xff] %v3152_v51  ;;  %4526 = vst [vmem:[#allocation14_spill] sm:$0xff] %v3154_v52  ;;  %2566 = vrcp.f32 %v3152_v51 }
 0x172   : > { %2381 = vmatprep.mubr.msk.f32.mxu0 %vm372_vm0, %v3157_v53  ;;  %2568 = vrcp.f32 %v3154_v52 }
 0x173   : > { %v2559_v57 = vpop.eup %2558 }
 0x174   : > { %v3163_v58 = vpop.xlane.xlu1 %491  ;;  %v3165_v62 = vpop.xlane.xlu0 %494  ;;  %v3168_v4 = vmul.f32 %v2559_v57, %v2941_v2 }
 0x175   : > { %4527 = vst [vmem:[#allocation15_spill] sm:$0xff] %v3163_v58  ;;  %4528 = vst [vmem:[#allocation16_spill] sm:$0xff] %v3165_v62  ;;  %v2561_v6 = vpop.eup %2560  ;;  %2570 = vrcp.f32 %v3163_v58 }
 0x176   : > { %2382 = vmatmul.mubr.msk.f32.vlgmr.msra.gmra.mrb[0].mxu0 %vm372_vm0, %v3168_v4  ;;  %v3174_v56 = vmul.f32 %v2561_v6, %v2929_v59  ;;  %2572 = vrcp.f32 %v3165_v62 }
 0x177   : > { %v2563_v11 = vpop.eup %2562 }
 0x178   : > { %2384 = vmatprep.mubr.msk.f32.mxu0 %vm372_vm0, %v3174_v56  ;;  %v3179_v16 = vpop.xlane.xlu1 %497  ;;  %v3181_v17 = vpop.xlane.xlu0 %500  ;;  %v3184_v2 = vmul.f32 %v2563_v11, %v2945_v5 }
 0x179   : > { %4529 = vst [vmem:[#allocation17_spill] sm:$0xff] %v3179_v16  ;;  %4530 = vst [vmem:[#allocation18_spill] sm:$0xff] %v3181_v17  ;;  %v2565_v46 = vpop.eup %2564  ;;  %2574 = vrcp.f32 %v3179_v16 }
 0x17a   : > { %2385 = vmatmul.mubr.msk.f32.gmra.mrb[2].mxu0 %vm372_vm0, %v3184_v2  ;;  %v3190_v59 = vmul.f32 %v2565_v46, %v2957_v12  ;;  %2576 = vrcp.f32 %v3181_v17 }
 0x17b   : > { %v2567_v57 = vpop.eup %2566 }
 0x17c   : > { %2387 = vmatprep.mubr.msk.f32.mxu0 %vm372_vm0, %v3190_v59  ;;  %v3195_v6 = vpop.xlane.xlu1 %503  ;;  %v3197_v33 = vpop.xlane.xlu0 %506  ;;  %v3200_v5 = vmul.f32 %v2567_v57, %v2961_v15 }
 0x17d   : > { %4531 = vst [vmem:[#allocation19_spill] sm:$0xff] %v3195_v6  ;;  %4532 = vst [vmem:[#allocation20_spill] sm:$0xff] %v3197_v33  ;;  %v2569_v11 = vpop.eup %2568  ;;  %2578 = vrcp.f32 %v3195_v6 }
 0x17e   : > { %2388 = vmatmul.mubr.msk.f32.gmra.mrb[4].mxu0 %vm372_vm0, %v3200_v5  ;;  %v3206_v12 = vmul.f32 %v2569_v11, %v2973_v22  ;;  %2580 = vrcp.f32 %v3197_v33 }
 0x17f   : > { %v2571_v46 = vpop.eup %2570 }
 0x180   : > { %2390 = vmatprep.mubr.msk.f32.mxu0 %vm372_vm0, %v3206_v12  ;;  %v3211_v32 = vpop.xlane.xlu1 %509  ;;  %v3213_v41 = vpop.xlane.xlu0 %512  ;;  %v3216_v15 = vmul.f32 %v2571_v46, %v2983_v26 }
 0x181   : > { %4533 = vst [vmem:[#allocation21_spill] sm:$0xff] %v3211_v32  ;;  %4534 = vst [vmem:[#allocation22_spill] sm:$0xff] %v3213_v41  ;;  %v2573_v57 = vpop.eup %2572  ;;  %2582 = vrcp.f32 %v3211_v32 }
 0x182   : > { %2391 = vmatmul.mubr.msk.f32.gmra.mrb[6].mxu0 %vm372_vm0, %v3216_v15  ;;  %v3222_v22 = vmul.f32 %v2573_v57, %v3001_v40  ;;  %2584 = vrcp.f32 %v3213_v41 }
 0x183   : > { %v2575_v11 = vpop.eup %2574 }
 0x184   : > { %2393 = vmatprep.mubr.msk.f32.mxu1 %vm372_vm0, %v3222_v22  ;;  %v3227_v33 = vpop.xlane.xlu1 %515  ;;  %v3230_v26 = vmul.f32 %v2575_v11, %v3007_v29  ;;  %v1449_v46 = vpop.permute.xlu0 %1448 }
 0x185   : > { %4535 = vst [vmem:[#allocation23_spill] sm:$0xff] %v3227_v33  ;;  %v2577_v6 = vpop.eup %2576  ;;  %2586 = vrcp.f32 %v3227_v33 }
 0x186   : > { %2394 = vmatmul.mubr.msk.f32.vlgmr.msra.gmra.mrb[0].mxu1 %vm372_vm0, %v3230_v26  ;;  %v3236_v40 = vmul.f32 %v2577_v6, %v3013_v47 }
 0x187   : > { %v2579_v57 = vpop.eup %2578 }
 0x188   : > { %2396 = vmatprep.mubr.msk.f32.mxu1 %vm372_vm0, %v3236_v40  ;;  %v1451_v41 = vpop.permute.xlu1 %1450  ;;  %v3241_v32 = vmul.f32 %v2579_v57, %v3015_v50  ;;  %v1483_v29 = vpop.permute.xlu0 %1482  ;;  %v1472_v57 = vadd.f32 %v1449_v46, %v3067_v21 }
 0x189   : > { %v2581_v11 = vpop.eup %2580  ;;  %v1473_v17 = vadd.f32 %v1451_v41, %v3063_v18 }
 0x18a   : > { %2397 = vmatmul.mubr.msk.f32.gmra.mrb[2].mxu1 %vm372_vm0, %v3241_v32  ;;  %v3247_v33 = vmul.f32 %v2581_v11, %v3029_v60  ;;  %v4536_v11 = vmov 2  }
 0x18b   : > { %v2583_v47 = vpop.eup %2582  ;;  %v1505_v6 = vadd.f32 %v1483_v29, %v1473_v17 }
 0x18c   : > { %2399 = vmatprep.mubr.msk.f32.mxu1 %vm372_vm0, %v3247_v33  ;;  %v1453_v16 = vpop.permute.xlu1 %1452  ;;  %v3252_v62 = vmul.f32 %v2583_v47, %v3031_v61  ;;  %v2585_v50 = vpop.eup %2584 }
 0x18d   : > { %1527 = vperm.xlu1 %2514, %v1505_v6   ;;  %v3258_v18 = vmul.f32 %v2585_v50, %v3045_v7  ;;  %v1485_v61 = vpop.permute.xlu0 %1484  ;;  %v1474_v21 = vadd.f32 %v1453_v16, %v3072_v23  ;;  %v4538_v23 = vmov 1  }
 0x18e   : > { %2400 = vmatmul.mubr.msk.f32.gmra.mrb[4].mxu1 %vm372_vm0, %v3252_v62 }
 0x18f   : > { %v2587_v60 = vpop.eup %2586  ;;  %2402 = vmatprep.mubr.msk.f32.mxu1 %vm372_vm0, %v3258_v18 }
 0x190   : > { %v1481_v41 = vpop.permute.xlu1 %1480  ;;  %v3263_v17 = vmul.f32 %v2587_v60, %v3047_v8  ;;  %v1506_v8 = vadd.f32 %v1485_v61, %v1474_v21  ;;  %v1316_v21 = vlaneseq }
 0x191   : > { %v1504_v29 = vadd.f32 %v1481_v41, %v1472_v57  ;;  %1303 = vperm.xlu1 %2514, %v3039_v3   ;;  %v1487_v46 = vpop.permute.xlu0 %1486  ;;  %v4537_v57 = vmov 0  }
 0x192   : > { %2403 = vmatmul.mubr.msk.f32.gmra.mrb[6].mxu1 %vm372_vm0, %v3263_v17 }
 0x193   : > { %1522 = vperm.xlu0 %2523, %v1504_v29  }
 0x194   : > { %v1455_v7 = vpop.permute.xlu1 %1454 }
 0x195   : > { %2515 = vset.pattern.permute.xlu1 %v4536_v11  ;;  %v1475_v47 = vadd.f32 %v1455_v7, %v3080_v24  ;;  %v1489_v29 = vpop.permute.xlu0 %1488 }
 0x196   : > { %1397 = vperm.xlu1 %2515, %v3036_v1  }
 0x197   : > { %1308 = vperm.xlu0 %2523, %v3052_v13   ;;  %v1507_v6 = vadd.f32 %v1487_v46, %v1475_v47 }
 0x198   : > { %v1457_v50 = vpop.permute.xlu1 %1456 }
 0x199   : > { %v1476_v7 = vadd.f32 %v1457_v50, %v3086_v25 }
 0x19a   : > { %2516 = vset.pattern.permute.xlu1 %v4537_v57 }
 0x19b   : > { %1532 = vperm.xlu1 %2516, %v1506_v8   ;;  %1537 = vperm.xlu0 %2523, %v1507_v6   ;;  %v1508_v8 = vadd.f32 %v1489_v29, %v1476_v7 }
 0x19c   : > { %v1459_v60 = vpop.permute.xlu1 %1458 }
 0x19d   : > { %v1477_v47 = vadd.f32 %v1459_v60, %v3092_v27  ;;  %v3299_v60 = vld [vmem:[%s301_s14] sm:$0xff]  ;;  %s3836_s14 = sld [smem:[#allocation4 + %s1808_s21]] }
 0x19e   : > { %s3873_s21 = sld [smem:[#allocation4 + %s1794_s9]]  ;;  %s1796_s9 = sadd.s32 6, %s3817_s22 }
 0x19f   : > { %2517 = vset.pattern.permute.xlu1 %v4538_v23 }
 0x1a0   : > { %1353 = vperm.xlu1 %2517, %v3052_v13   ;;  %v1461_v16 = vpop.permute.xlu1 %1460 }
 0x1a1   : > { %v1478_v25 = vadd.f32 %v1461_v16, %v3098_v30 }
 0x1a4   : > { %2518 = vset.pattern.permute.xlu1 %v4536_v11  ;;  %v1463_v24 = vpop.permute.xlu1 %1462 }
 0x1a5   : > { %1401 = vperm.xlu1 %2518, %v3039_v3   ;;  %v1479_v1 = vadd.f32 %v1463_v24, %v3104_v35  ;;  %v1491_v3 = vpop.permute.xlu0 %1490  ;;  %v3286_v35 = vshrl.u32 %v1316_v21, 7  ;;  %v2276_v21 = vld [vmem:[%s2979_s28 + $0x48] sm:$0xff] }
 0x1a7   : > { %4539 = vst [vmem:[#allocation24_spill] sm:$0xff] %v3286_v35  ;;  %v1362_v27 = vsub.s32 1, %v3286_v35 }
 0x1a8   : > { %v1495_v41 = vpop.permute.xlu1 %1494 }
 0x1a9   : > { %2519 = vset.pattern.permute.xlu1 %v4537_v57  ;;  %v1511_v61 = vadd.f32 %v1495_v41, %v1479_v1  ;;  %v3307_v24 = vrot.slane %v3299_v60, %v1362_v27 }
 0x1aa   : > { %1313 = vperm.xlu1 %2519, %v3055_v14   ;;  %v4496_v14 = vsub.s32 0, %v3286_v35 }
 0x1ab   : > { %1557 = vperm.xlu0 %2523, %v1511_v61  }
 0x1ac   : > { %v3282_v46 = vpop.permute.xlu1 %1283 }
 0x1ae   : > { %2521 = vset.pattern.permute.xlu1 %v4536_v11  ;;  %v1493_v11 = vpop.permute.xlu0 %1492 }
 0x1af   : > { %1405 = vperm.xlu1 %2521, %v3052_v13   ;;  %v1509_v13 = vadd.f32 %v1491_v3, %v1477_v47  ;;  %v1510_v23 = vadd.f32 %v1493_v11, %v1478_v25  ;;  %v1673_v47 = vmul.f32 %v2276_v21, %v2276_v21 }
 0x1b0   : > { %v3290_v6 = vpop.permute.xlu1 %1329 }
 0x1b2   : > { %v1334_v41 = vpop.permute.xlu0 %1333 }
 0x1b3   : > { %2522 = vset.pattern.permute.xlu1 %v4537_v57  ;;  %v3304_v57 = vrot.slane %v3299_v60, %v4496_v14 }
 0x1b4   : > { %1542 = vperm.xlu1 %2522, %v1508_v8   ;;  %v1414_v8 = vsub.s32 2, %v3286_v35 }
 0x1b5   : > { %v1289_v50 = vpop.permute.xlu1 %1288 }
 0x1b6   : > { %v1322_v30 = vmul.f32 %v3304_v57, %v1289_v50  ;;  %v1342_v7 = vpop.permute.xlu0 %1341  ;;  %v1683_v50 = vsel %vm1008_vm1, %v1673_v47, 0.0 }
 0x1b7   : > { %v1367_v3 = vmul.f32 %v3307_v24, %v1342_v7 }
 0x1b8   : > { %1547 = vperm.xlu1 %2522, %v1509_v13   ;;  %v2278_v13 = vld [vmem:[%s2979_s28 + $0x58] sm:$0xff] }
 0x1ba   : > { %v1338_v16 = vpop.permute.xlu1 %1337  ;;  %v1346_v58 = vpop.permute.xlu0 %1345 }
 0x1bb   : > { %v1366_v1 = vmul.f32 %v3307_v24, %v1338_v16  ;;  %v2280_v16 = vld [vmem:[%s2979_s28 + $0x68] sm:$0xff] }
 0x1bc   : > { %1552 = vperm.xlu1 %2522, %v1510_v23   ;;  %v1675_v23 = vmul.f32 %v2278_v13, %v2278_v13  ;;  %v1677_v14 = vmul.f32 %v2280_v16, %v2280_v16 }
 0x1bd   : > { %v1374_v61 = vadd.f32 %v1366_v1, %v1322_v30  ;;  %v3320_v30 = vrot.slane %v3299_v60, %v1414_v8 }
 0x1be   : > { %v1689_v21 = vsel %vm1008_vm1, %v1675_v23, 0.0  ;;  %v1695_v13 = vsel %vm1008_vm1, %v1677_v14, 0.0 }
 0x1bf   : > { %v3311_v29 = vpop.permute.xlu1 %1385 }
 0x1c4   : > { %v1294_v25 = vpop.permute.xlu1 %1293 }
 0x1c5   : > { %v1323_v11 = vmul.f32 %v3304_v57, %v1294_v25  ;;  %v2282_v25 = vld [vmem:[%s2979_s28 + $0x78] sm:$0xff] }
 0x1c7   : > { %v1375_v27 = vadd.f32 %v1367_v3, %v1323_v11  ;;  %v1368_v3 = vmul.f32 %v3307_v24, %v1346_v58  ;;  %v1679_v11 = vmul.f32 %v2282_v25, %v2282_v25  ;;  %v1676_v25 = vmul.f32 %v2279_v45, %v2279_v45 }
 0x1c9   : > { %v1390_v1 = vpop.permute.xlu1 %1389 }
 0x1ca   : > { %v1418_v7 = vmul.f32 %v3320_v30, %v1390_v1  ;;  %1684 = vadd.xlane.f32.xlu0 %v1683_v50  ;;  %v2275_v1 = vld [vmem:[%s2979_s28 + $0x40] sm:$0xff] }
 0x1cb   : > { %v1672_v58 = vmul.f32 %v2275_v1, %v2275_v1  ;;  %v1321_v1 = vmul.f32 %v3304_v57, %v3282_v46  ;;  %v4541_v46 = vsub.s32 0, %v3286_v35 }
 0x1cc   : > { %v3325_v52 = vadd.f32 %v1418_v7, %v1374_v61  ;;  %v1701_v61 = vsel %vm1008_vm1, %v1679_v11, 0.0 }
 0x1cd   : > { %v1680_v51 = vsel %vm1008_vm1, %v1672_v58, 0.0  ;;  %v1365_v58 = vmul.f32 %v3307_v24, %v1334_v41 }
 0x1ce   : > { %v1299_v47 = vpop.permute.xlu1 %1298  ;;  %1690 = vadd.xlane.f32.xlu0 %v1689_v21  ;;  %v2277_v21 = vld [vmem:[%s2979_s28 + $0x50] sm:$0xff] }
 0x1cf   : > { %v1324_v8 = vmul.f32 %v3304_v57, %v1299_v47  ;;  %v1674_v47 = vmul.f32 %v2277_v21, %v2277_v21 }
 0x1d1   : > { %v3331_v50 = vadd.f32 %v1368_v3, %v1324_v8  ;;  %v1686_v14 = vsel %vm1008_vm1, %v1674_v47, 0.0  ;;  %v2281_v3 = vld [vmem:[%s2979_s28 + $0x70] sm:$0xff]  ;;  %v1692_v8 = vsel %vm1008_vm1, %v1676_v25, 0.0  ;;  %v1373_v25 = vadd.f32 %v1365_v58, %v1321_v1  ;;  %s1790_s28 = sadd.s32 3, %s3817_s22 }
 0x1d2   : > { %1696 = vadd.xlane.f32.xlu0 %v1695_v13  ;;  %v1678_v13 = vmul.f32 %v2281_v3, %v2281_v3  ;;  %v1417_v3 = vmul.f32 %v3320_v30, %v3311_v29  ;;  %s3855_s29 = sld [smem:[#allocation4 + %s1790_s28]] }
 0x1d3   : > { %v1394_v23 = vpop.permute.xlu1 %1393  ;;  %s3895_s28 = sld [smem:[#allocation4 + %s1818_s26]]  ;;  %s1820_s26 = sadd.s32 18, %s3817_s22 }
 0x1d4   : > { %v1419_v16 = vmul.f32 %v3320_v30, %v1394_v23  ;;  %v1698_v11 = vsel %vm1008_vm1, %v1678_v13, 0.0 }
 0x1d6   : > { %v1427_v7 = vadd.f32 %v1419_v16, %v1375_v27  ;;  %1702 = vadd.xlane.f32.xlu0 %v1701_v61  ;;  %v3343_v27 = vpop.permute.xlu0 %1349 }
 0x1da   : > { %v3345_v23 = vpop.permute.xlu0 %1357 }
 0x1de   : > { %v1382_v61 = vpop.permute.xlu0 %1381 }
 0x1df   : > { %v1416_v44 = vmul.f32 %v3320_v30, %v1382_v61 }
 0x1e0   : > { %1681 = vadd.xlane.f32.xlu1 %v1680_v51  ;;  %v1512_v51 = vmul.f32 %v3299_v60, %v3299_v60 }
 0x1e2   : > { %v3349_v16 = vpop.permute.xlu0 %1409  ;;  %v1514_v45 = vrot.slane %v1512_v51, 1  ;;  %v1517_v47 = vrot.slane %v1512_v51, 2 }
 0x1e4   : > { %1687 = vadd.xlane.f32.xlu1 %v1686_v14  ;;  %v1516_v21 = vadd.f32 %v1514_v45, %v1512_v51 }
 0x1e6   : > { %v1279_v14 = vpop.permute.xlu0 %1278  ;;  %v1519_v13 = vadd.f32 %v1517_v47, %v1516_v21 }
 0x1e7   : > { %v1320_v60 = vmul.f32 %v3304_v57, %v1279_v14 }
 0x1e8   : > { %1693 = vadd.xlane.f32.xlu1 %v1692_v8  ;;  %v1364_v8 = vmul.f32 %v3307_v24, %v3290_v6  ;;  %v3362_v28 = vrot.slane %v1519_v13, %v4541_v46  ;;  %v1574_v46 = vmul.f32 2.0, %v3325_v52 }
 0x1ea   : > { %v1372_v41 = vadd.f32 %v1364_v8, %v1320_v60 }
 0x1ec   : > { %1699 = vadd.xlane.f32.xlu1 %v1698_v11  ;;  %v1425_v11 = vadd.f32 %v1417_v3, %v1373_v25  ;;  %v1424_v58 = vadd.f32 %v1416_v44, %v1372_v41  ;;  %v582_v25 = vmul.f32 %v3168_v4, %v2909_v42  ;;  %v1575_v41 = vmul.f32 2.0, %v1427_v7 }
 0x1ed   : > { %v581_v42 = vmul.f32 %v3157_v53, %v2903_v36  ;;  %v585_v36 = vmul.f32 %v3190_v59, %v2915_v48 }
 0x1ee   : > { %v1573_v51 = vmul.f32 2.0, %v1425_v11  ;;  %v1572_v21 = vmul.f32 2.0, %v1424_v58  ;;  %v600_v13 = vsel %vm372_vm0, %v582_v25, 0.0  ;;  %v583_v11 = vmul.f32 %v3174_v56, %v2905_v37 }
 0x1ef   : > { %v584_v37 = vmul.f32 %v3184_v2, %v2911_v43  ;;  %v597_v7 = vsel %vm372_vm0, %v581_v42, 0.0  ;;  %v609_v43 = vsel %vm372_vm0, %v585_v36, 0.0  ;;  %v587_v2 = vmul.f32 %v3206_v12, %v2921_v54 }
 0x1f0   : > { %v603_v58 = vsel %vm372_vm0, %v583_v11, 0.0  ;;  %v590_v12 = vmul.f32 %v3230_v26, %v2937_v0  ;;  %v1369_v0 = vmul.f32 %v3307_v24, %v3343_v27 }
 0x20c   : > { %v1528_v45 = vpop.permute.xlu1 %1527 }
 0x20d   : > { %v1565_v1 = vadd.f32 %v3362_v28, %v1528_v45 }
 0x20f   : > { %v1581_v29 = vsub.f32 %v1565_v1, %v1573_v51 }
 0x210   : > { %v3365_v38 = vpop.permute.xlu1 %1303 }
 0x211   : > { %v1589_v6 = vmax.f32 %v1581_v29, 0.0  ;;  %v1325_v26 = vmul.f32 %v3304_v57, %v3365_v38 }
 0x212   : > { %v1523_v47 = vpop.permute.xlu0 %1522 }
 0x213   : > { %v1564_v14 = vadd.f32 %v3362_v28, %v1523_v47  ;;  %v3369_v61 = vsel %vm1596_vm2, %v1589_v6, inf  ;;  %v586_v47 = vmul.f32 %v3200_v5, %v2917_v49  ;;  %v615_v5 = vsel %vm372_vm0, %v587_v2, 0.0 }
 0x214   : > { %1601 = vmin.xlane.f32.xlu1 %v3369_v61  ;;  %v1377_v27 = vadd.f32 %v1369_v0, %v1325_v26 }
 0x215   : > { %v1580_v3 = vsub.f32 %v1564_v14, %v1572_v21  ;;  %v1398_v8 = vpop.permute.xlu1 %1397  ;;  %v606_v21 = vsel %vm372_vm0, %v584_v37, 0.0  ;;  %v612_v59 = vsel %vm372_vm0, %v586_v47, 0.0 }
 0x216   : > { %v1309_v44 = vpop.permute.xlu0 %1308 }
 0x217   : > { %v1588_v60 = vmax.f32 %v1580_v3, 0.0  ;;  %v588_v3 = vmul.f32 %v3216_v15, %v2923_v55  ;;  %v1371_v55 = vmul.f32 %v3307_v24, %v3345_v23  ;;  %v1423_v15 = vmul.f32 %v3320_v30, %v3349_v16 }
 0x218   : > { %601 = vadd.xlane.f32.xlu1 %v600_v13  ;;  %v589_v13 = vmul.f32 %v3222_v22, %v2934_v63  ;;  %v624_v63 = vsel %vm372_vm0, %v590_v12, 0.0  ;;  %v1420_v23 = vmul.f32 %v3320_v30, %v1398_v8 }
 0x219   : > { %v3379_v51 = vsel %vm1596_vm2, %v1588_v60, inf  ;;  %v618_v54 = vsel %vm372_vm0, %v588_v3, 0.0 }
 0x21a   : > { %1598 = vmin.xlane.f32.xlu0 %v3379_v51  ;;  %v1533_v4 = vpop.permute.xlu1 %1532  ;;  %v1538_v45 = vpop.permute.xlu0 %1537  ;;  %v621_v11 = vsel %vm372_vm0, %v589_v13, 0.0  ;;  %v1428_v38 = vadd.f32 %v1420_v23, %v3331_v50  ;;  %v354_v23 = vld [vmem:[%s3464_s23 + $0x18] sm:$0xff] }
 0x21b   : > { %v1566_v1 = vadd.f32 %v3362_v28, %v1533_v4  ;;  %v1567_v52 = vadd.f32 %v3362_v28, %v1538_v45  ;;  %v1326_v4 = vmul.f32 %v3304_v57, %v1309_v44 }
 0x21c   : > { %604 = vadd.xlane.f32.xlu1 %v603_v58 }
 0x21d   : > { %v1582_v56 = vsub.f32 %v1566_v1, %v1574_v46  ;;  %v1583_v53 = vsub.f32 %v1567_v52, %v1575_v41  ;;  %v591_v41 = vmul.f32 %v3236_v40, %v2950_v9  ;;  %v592_v40 = vmul.f32 %v3241_v32, %v2953_v10 }
 0x21e   : > { %598 = vadd.xlane.f32.xlu0 %v597_v7  ;;  %v1576_v7 = vmul.f32 2.0, %v1428_v38 }
 0x21f   : > { %v1590_v29 = vmax.f32 %v1582_v56, 0.0  ;;  %v1354_v6 = vpop.permute.xlu1 %1353  ;;  %v1591_v14 = vmax.f32 %v1583_v53, 0.0  ;;  %v627_v9 = vsel %vm372_vm0, %v591_v41, 0.0  ;;  %v630_v56 = vsel %vm372_vm0, %v592_v40, 0.0 }
 0x220   : > { %607 = vadd.xlane.f32.xlu1 %v606_v21  ;;  %v1370_v16 = vmul.f32 %v3307_v24, %v1354_v6 }
 0x221   : > { %v3399_v25 = vsel %vm1596_vm2, %v1591_v14, inf  ;;  %v3402_v48 = vsel %vm1596_vm2, %v1590_v29, inf }
 0x222   : > { %610 = vadd.xlane.f32.xlu0 %v609_v43  ;;  %v1378_v52 = vadd.f32 %v1370_v16, %v1326_v4  ;;  %v3476_v16 = vld [vmem:[%s3464_s23 + $0x10] sm:$0xff] }
 0x224   : > { %v1402_v49 = vpop.permute.xlu1 %1401  ;;  %613 = vadd.xlane.f32.xlu1 %v612_v59 }
 0x225   : > { %v1421_v8 = vmul.f32 %v3320_v30, %v1402_v49 }
 0x226   : > { %616 = vadd.xlane.f32.xlu0 %v615_v5 }
 0x227   : > { %v1429_v36 = vadd.f32 %v1421_v8, %v1377_v27 }
 0x228   : > { %619 = vadd.xlane.f32.xlu1 %v618_v54 }
 0x229   : > { %v1314_v60 = vpop.permute.xlu1 %1313 }
 0x22a   : > { %v1327_v46 = vmul.f32 %v3304_v57, %v1314_v60  ;;  %622 = vadd.xlane.f32.xlu0 %v621_v11  ;;  %v1558_v22 = vpop.permute.xlu0 %1557 }
 0x22b   : > { %v1571_v58 = vadd.f32 %v3362_v28, %v1558_v22 }
 0x22c   : > { %v1379_v42 = vadd.f32 %v1371_v55, %v1327_v46  ;;  %625 = vadd.xlane.f32.xlu1 %v624_v63  ;;  %v351_v63 = vld [vmem:[%s3464_s23] sm:$0xff] }
 0x22e   : > { %v1431_v45 = vadd.f32 %v1423_v15, %v1379_v42  ;;  %v1406_v1 = vpop.permute.xlu1 %1405 }
 0x22f   : > { %v1422_v24 = vmul.f32 %v3320_v30, %v1406_v1  ;;  %v1577_v30 = vmul.f32 2.0, %v1429_v36 }
 0x230   : > { %v1579_v37 = vmul.f32 2.0, %v1431_v45  ;;  %628 = vadd.xlane.f32.xlu1 %v627_v9 }
 0x231   : > { %v1430_v32 = vadd.f32 %v1422_v24, %v1378_v52  ;;  %v3501_v52 = vld [vmem:[%s3464_s23 + $0x38] sm:$0xff] }
 0x232   : > { %v1587_v57 = vsub.f32 %v1571_v58, %v1579_v37  ;;  %v3483_v58 = vld [vmem:[%s3464_s23 + $0x28] sm:$0xff]  ;;  %v3498_v37 = vld [vmem:[%s3464_s23 + $0x20] sm:$0xff] }
 0x233   : > { %v1543_v44 = vpop.permute.xlu1 %1542  ;;  %v1578_v43 = vmul.f32 2.0, %v1430_v32 }
 0x234   : > { %v1595_v53 = vmax.f32 %v1587_v57, 0.0  ;;  %v1568_v29 = vadd.f32 %v3362_v28, %v1543_v44  ;;  %631 = vadd.xlane.f32.xlu1 %v630_v56 }
 0x236   : > { %v1584_v10 = vsub.f32 %v1568_v29, %v1576_v7  ;;  %v3439_v50 = vsel %vm1596_vm2, %v1595_v53, inf  ;;  %v3514_v7 = vld [vmem:[%s3464_s23 + $0x30] sm:$0xff] }
 0x237   : > { %v1548_v6 = vpop.permute.xlu1 %1547  ;;  %v1624_v21 = vmin.f32 %v3399_v25, %v3439_v50 }
 0x238   : > { %v1592_v47 = vmax.f32 %v1584_v10, 0.0  ;;  %v1569_v14 = vadd.f32 %v3362_v28, %v1548_v6 }
 0x23a   : > { %v3445_v2 = vsel %vm1596_vm2, %v1592_v47, inf  ;;  %v1585_v59 = vsub.f32 %v1569_v14, %v1577_v30  ;;  %v360_v30 = vld [vmem:[%s3464_s23 + $0x48] sm:$0xff]  ;;  %v359_v14 = vld [vmem:[%s3464_s23 + $0x40] sm:$0xff] }
 0x23b   : > { %v1621_v3 = vmin.f32 %v3379_v51, %v3445_v2  ;;  %v1553_v49 = vpop.permute.xlu1 %1552 }
 0x23c   : > { %v1593_v5 = vmax.f32 %v1585_v59, 0.0  ;;  %v1570_v13 = vadd.f32 %v3362_v28, %v1553_v49 }
 0x23e   : > { %v3451_v54 = vsel %vm1596_vm2, %v1593_v5, inf  ;;  %v1586_v12 = vsub.f32 %v1570_v13, %v1578_v43  ;;  %v362_v13 = vld [vmem:[%s3464_s23 + $0x58] sm:$0xff] }
 0x23f   : > { %v1622_v60 = vmin.f32 %v3369_v61, %v3451_v54  ;;  %v352_v61 = vld [vmem:[%s3464_s23 + $0x8] sm:$0xff] }
 0x240   : > { %v1594_v11 = vmax.f32 %v1586_v12, 0.0 }
 0x241   : > { %v1625_v55 = vmin.f32 %v1621_v3, %v1622_v60 }
 0x242   : > { %v3456_v15 = vsel %vm1596_vm2, %v1594_v11, inf  ;;  %v361_v11 = vld [vmem:[%s3464_s23 + $0x50] sm:$0xff] }
 0x243   : > { %v1623_v46 = vmin.f32 %v3402_v48, %v3456_v15 }
 0x245   : > { %v1626_v28 = vmin.f32 %v1623_v46, %v1624_v21  ;;  %v364_v46 = vld [vmem:[%s3464_s23 + $0x68] sm:$0xff] }
 0x247   : > { %v3467_v51 = vmin.f32 %v1625_v55, %v1626_v28  ;;  %v363_v28 = vld [vmem:[%s3464_s23 + $0x60] sm:$0xff] }
 0x249   : > { %v2383_v22 = vpop.f32.mrb[0].mxu0 }
 0x24a   : > { %v3470_v41 = vadd.f32 %v2383_v22, %v352_v61  ;;  %v817_v0 = vpop.f32.mrb[1].mxu0  ;;  %v897_v45 = vsub.f32 %v2383_v22, %v352_v61 }
 0x24b   : > { %v3472_v26 = vadd.f32 %v817_v0, %v351_v63 }
 0x24c   : > { %v913_v38 = vand.u32 2147483647, %v897_v45  ;;  %v896_v45 = vsub.f32 %v817_v0, %v351_v63 }
 0x24d   : > { %v2386_v42 = vpop.f32.mrb[2].mxu0 }
 0x24e   : > { %v3478_v4 = vpop.f32.mrb[3].mxu0  ;;  %v3480_v1 = vadd.f32 %v2386_v42, %v354_v23  ;;  %v961_v44 = vmul.f32 %v913_v38, %v913_v38  ;;  %v2303_v53 = vadd.f32 -0.05, %v913_v38  ;;  %vm929_vm3 = vcmp.gt.f32.partialorder %v913_v38, 0.1 }
 0x24f   : > { %v3487_v9 = vadd.f32 %v3478_v4, %v3476_v16  ;;  %v898_v0 = vsub.f32 %v3478_v4, %v3476_v16 }
 0x250   : > { %v977_v29 = vmul.f32 5.0, %v961_v44 }
 0x251   : > { %v3489_v40 = vpop.f32.mrb[4].mxu0 }
 0x252   : > { %v3491_v27 = vpop.f32.mrb[5].mxu0  ;;  %v3495_v8 = vadd.f32 %v3489_v40, %v3483_v58  ;;  %v3522_v21 = vsel %vm929_vm3, %v2303_v53, %v977_v29  ;;  %v3545_v53 = vld [vmem:[%s3464_s23 + $0x78] sm:$0xff] }
 0x253   : > { %v3505_v24 = vadd.f32 %v3491_v27, %v3498_v37  ;;  %v1012_v47 = vsel %vm1008_vm1, %v3522_v21, 0.0 }
 0x254   : > { %1013 = vadd.xlane.f32.xlu0 %v1012_v47 }
 0x255   : > { %v3507_v57 = vpop.f32.mrb[6].mxu0 }
 0x256   : > { %v3511_v56 = vadd.f32 %v3507_v57, %v3501_v52  ;;  %v3516_v36 = vpop.f32.mrb[7].mxu0 }
 0x257   : > { %v3520_v10 = vadd.f32 %v3516_v36, %v3514_v7 }
 0x259   : > { %v2395_v32 = vpop.f32.mrb[0].mxu1 }
 0x25a   : > { %v857_v6 = vpop.f32.mrb[1].mxu1  ;;  %v3528_v59 = vadd.f32 %v2395_v32, %v360_v30  ;;  %v905_v5 = vsub.f32 %v2395_v32, %v360_v30  ;;  %v899_v32 = vsub.f32 %v2386_v42, %v354_v23 }
 0x25b   : > { %v3530_v49 = vadd.f32 %v857_v6, %v359_v14  ;;  %v904_v38 = vsub.f32 %v857_v6, %v359_v14  ;;  %v3560_v6 = vmul.f32 %v3247_v33, %v2966_v19  ;;  %v365_v33 = vld [vmem:[%s3464_s23 + $0x70] sm:$0xff]  ;;  %v914_v19 = vand.u32 2147483647, %v898_v0  ;;  %s1812_s23 = sadd.s32 14, %s3817_s22 }
 0x25c   : > { %v921_v61 = vand.u32 2147483647, %v905_v5  ;;  %v915_v63 = vand.u32 2147483647, %v899_v32  ;;  %v1628_v0 = vrot.slane %v3467_v51, 4  ;;  %s3845_s24 = sld [smem:[#allocation4 + %s1812_s23]] }
 0x25d   : > { %v2398_v43 = vpop.f32.mrb[2].mxu1  ;;  %4542 = vst [vmem:[#allocation25_spill] sm:$0xff] %v3530_v49  ;;  %v920_v49 = vand.u32 2147483647, %v904_v38  ;;  %vm930_vm8 = vcmp.gt.f32.partialorder %v914_v19, 0.1 }
 0x25e   : > { %v867_v3 = vpop.f32.mrb[3].mxu1  ;;  %v3536_v55 = vadd.f32 %v2398_v43, %v362_v13  ;;  %v969_v35 = vmul.f32 %v921_v61, %v921_v61  ;;  %v2311_v23 = vadd.f32 -0.05, %v921_v61  ;;  %v907_v42 = vsub.f32 %v2398_v43, %v362_v13 }
 0x25f   : > { %v3542_v44 = vadd.f32 %v867_v3, %v361_v11  ;;  %vm937_vm4 = vcmp.gt.f32.partialorder %v921_v61, 0.1  ;;  %v968_v38 = vmul.f32 %v920_v49, %v920_v49  ;;  %v963_v5 = vmul.f32 %v915_v63, %v915_v63 }
 0x260   : > { %4543 = vst [vmem:[#allocation26_spill] sm:$0xff] %v3536_v55  ;;  %v912_v55 = vand.u32 2147483647, %v896_v45  ;;  %v985_v14 = vmul.f32 5.0, %v969_v35  ;;  %v903_v45 = vsub.f32 %v3507_v57, %v3501_v52  ;;  %v906_v16 = vsub.f32 %v867_v3, %v361_v11 }
 0x261   : > { %v2401_v12 = vpop.f32.mrb[4].mxu1  ;;  %4544 = vst [vmem:[#allocation27_spill] sm:$0xff] %v3542_v44  ;;  %v901_v35 = vsub.f32 %v3489_v40, %v3483_v58  ;;  %v923_v52 = vand.u32 2147483647, %v907_v42  ;;  %v2310_v57 = vadd.f32 -0.05, %v920_v49  ;;  %v902_v3 = vsub.f32 %v3516_v36, %v3514_v7 }
 0x262   : > { %v3533_v60 = vpop.f32.mrb[5].mxu1  ;;  %v3549_v30 = vadd.f32 %v2401_v12, %v364_v46  ;;  %v960_v32 = vmul.f32 %v912_v55, %v912_v55  ;;  %v3568_v4 = vsel %vm937_vm4, %v2311_v23, %v985_v14  ;;  %v909_v43 = vsub.f32 %v2401_v12, %v364_v46 }
 0x263   : > { %v3552_v47 = vadd.f32 %v3533_v60, %v363_v28  ;;  %v1036_v13 = vsel %vm1008_vm1, %v3568_v4, 0.0  ;;  %v984_v61 = vmul.f32 5.0, %v968_v38  ;;  %v3577_v44 = vand.u32 2147483647, %v903_v45 }
 0x264   : > { %4545 = vst [vmem:[#allocation28_spill] sm:$0xff] %v3549_v30  ;;  %v2302_v30 = vadd.f32 -0.05, %v912_v55  ;;  %1037 = vadd.xlane.f32.xlu1 %v1036_v13  ;;  %vm936_vm5 = vcmp.gt.f32.partialorder %v920_v49, 0.1  ;;  %v908_v40 = vsub.f32 %v3533_v60, %v363_v28  ;;  %v976_v46 = vmul.f32 5.0, %v960_v32 }
 0x265   : > { %v3540_v22 = vpop.f32.mrb[6].mxu1  ;;  %4546 = vst [vmem:[#allocation29_spill] sm:$0xff] %v3552_v47  ;;  %v922_v58 = vand.u32 2147483647, %v906_v16  ;;  %v3585_v12 = vsel %vm936_vm5, %v2310_v57, %v984_v61  ;;  %vm928_vm6 = vcmp.gt.f32.partialorder %v912_v55, 0.1  ;;  %v971_v36 = vmul.f32 %v923_v52, %v923_v52 }
 0x266   : > { %v3547_v29 = vpop.f32.mrb[7].mxu1  ;;  %v3564_v47 = vadd.f32 %v3540_v22, %v3545_v53  ;;  %v2305_v23 = vadd.f32 -0.05, %v915_v63  ;;  %v917_v7 = vand.u32 2147483647, %v901_v35  ;;  %v3592_v49 = vsel %vm928_vm6, %v2302_v30, %v976_v46 }
 0x267   : > { %v3582_v11 = vadd.f32 %v3547_v29, %v365_v33  ;;  %v967_v60 = vmul.f32 %v3577_v44, %v3577_v44  ;;  %v3598_v28 = vand.u32 2147483647, %v902_v3  ;;  %v1009_v14 = vsel %vm1008_vm1, %v3592_v49, 0.0  ;;  %v3611_v3 = vpop.xlane.xlu0 %1684 }
 0x268   : > { %4547 = vst [vmem:[#allocation30_spill] sm:$0xff] %v3564_v47  ;;  %v900_v47 = vsub.f32 %v3491_v27, %v3498_v37  ;;  %v3587_v27 = vand.u32 2147483647, %v909_v43  ;;  %v1033_v37 = vsel %vm1008_vm1, %v3585_v12, 0.0  ;;  %v2313_v45 = vadd.f32 -0.05, %v923_v52  ;;  %1010 = vadd.xlane.f32.xlu1 %v1009_v14 }
 0x269   : > { %1034 = vadd.xlane.f32.xlu0 %v1033_v37  ;;  %v3602_v55 = vand.u32 2147483647, %v908_v40  ;;  %v962_v38 = vmul.f32 %v914_v19, %v914_v19  ;;  %v979_v32 = vmul.f32 5.0, %v963_v5  ;;  %vm931_vm7 = vcmp.gt.f32.partialorder %v915_v63, 0.1 }
 0x26a   : > { %v3594_v42 = vand.u32 2147483647, %v900_v47  ;;  %v973_v30 = vmul.f32 %v3587_v27, %v3587_v27  ;;  %v910_v47 = vsub.f32 %v3547_v29, %v365_v33  ;;  %v970_v35 = vmul.f32 %v922_v58, %v922_v58 }
 0x26b   : > { %v2304_v43 = vadd.f32 -0.05, %v914_v19  ;;  %v978_v13 = vmul.f32 5.0, %v962_v38  ;;  %v3609_v57 = vsel %vm931_vm7, %v2305_v23, %v979_v32  ;;  %v987_v61 = vmul.f32 5.0, %v971_v36 }
 0x26c   : > { %v1018_v5 = vsel %vm1008_vm1, %v3609_v57, 0.0  ;;  %v986_v40 = vmul.f32 5.0, %v970_v35  ;;  %vm939_vm9 = vcmp.gt.f32.partialorder %v923_v52, 0.1  ;;  %v2312_v37 = vadd.f32 -0.05, %v922_v58 }
 0x26d   : > { %v3604_v16 = vpop.xlane.xlu1 %1681  ;;  %v3615_v46 = vsel %vm930_vm8, %v2304_v43, %v978_v13  ;;  %1019 = vadd.xlane.f32.xlu1 %v1018_v5  ;;  %v3617_v29 = vsel %vm939_vm9, %v2313_v45, %v987_v61  ;;  %v965_v63 = vmul.f32 %v917_v7, %v917_v7  ;;  %v926_v33 = vand.u32 2147483647, %v910_v47 }
 0x26e   : > { %v1015_v23 = vsel %vm1008_vm1, %v3615_v46, 0.0  ;;  %vm938_vm10 = vcmp.gt.f32.partialorder %v922_v58, 0.1  ;;  %v983_v36 = vmul.f32 5.0, %v967_v60  ;;  %v2309_v19 = vadd.f32 -0.05, %v3577_v44 }
 0x26f   : > { %1016 = vadd.xlane.f32.xlu0 %v1015_v23  ;;  %v3622_v14 = vsel %vm938_vm10, %v2312_v37, %v986_v40  ;;  %v981_v38 = vmul.f32 5.0, %v965_v63  ;;  %v594_v52 = vmul.f32 %v3252_v62, %v2969_v20  ;;  %v964_v45 = vmul.f32 %v3594_v42, %v3594_v42  ;;  %v3638_v62 = vpop.xlane.xlu0 %1690 }
 0x270   : > { %v1042_v47 = vsel %vm1008_vm1, %v3617_v29, 0.0  ;;  %vm935_vm11 = vcmp.gt.f32.partialorder %v3577_v44, 0.1  ;;  %v1629_v58 = vmin.f32 %v3467_v51, %v1628_v0  ;;  %v966_v60 = vmul.f32 %v3598_v28, %v3598_v28 }
 0x271   : > { %v3626_v32 = vpop.xlane.xlu1 %1687  ;;  %1043 = vadd.xlane.f32.xlu1 %v1042_v47  ;;  %v2307_v35 = vadd.f32 -0.05, %v917_v7  ;;  %v3636_v43 = vsel %vm935_vm11, %v2309_v19, %v983_v36  ;;  %v989_v20 = vmul.f32 5.0, %v973_v30  ;;  %v972_v13 = vmul.f32 %v3602_v55, %v3602_v55 }
 0x272   : > { %v974_v61 = vmul.f32 %v926_v33, %v926_v33  ;;  %v1039_v5 = vsel %vm1008_vm1, %v3622_v14, 0.0  ;;  %vm933_vm12 = vcmp.gt.f32.partialorder %v917_v7, 0.1  ;;  %v2306_v51 = vadd.f32 -0.05, %v3594_v42 }
 0x273   : > { %v2315_v44 = vadd.f32 -0.05, %v3587_v27  ;;  %1040 = vadd.xlane.f32.xlu0 %v1039_v5  ;;  %v3646_v0 = vsel %vm933_vm12, %v2307_v35, %v981_v38  ;;  %v595_v30 = vmul.f32 %v3258_v18, %v2988_v31  ;;  %v2308_v40 = vadd.f32 -0.05, %v3598_v28 }
 0x274   : > { %v1030_v37 = vsel %vm1008_vm1, %v3636_v43, 0.0  ;;  %vm941_vm13 = vcmp.gt.f32.partialorder %v3587_v27, 0.1  ;;  %v1630_v63 = vrot.slane %v1629_v58, 2  ;;  %v982_v23 = vmul.f32 5.0, %v966_v60 }
 0x275   : > { %1031 = vadd.xlane.f32.xlu1 %v1030_v37  ;;  %v3654_v7 = vsel %vm941_vm13, %v2315_v44, %v989_v20  ;;  %v980_v36 = vmul.f32 5.0, %v964_v45  ;;  %2588 = vrsqrt.f32 %v3604_v16  ;;  %v3657_v19 = vpop.xlane.xlu1 %1693  ;;  %v990_v38 = vmul.f32 5.0, %v974_v61  ;;  %v3670_v20 = vpop.xlane.xlu0 %1696 }
 0x276   : > { %4548 = vst [vmem:[#allocation31_spill] sm:$0xff] %v3654_v7  ;;  %v1024_v31 = vsel %vm1008_vm1, %v3646_v0, 0.0  ;;  %v988_v18 = vmul.f32 5.0, %v972_v13  ;;  %2590 = vrsqrt.f32 %v3626_v32  ;;  %v2314_v47 = vadd.f32 -0.05, %v3602_v55 }
 0x277   : > { %v4549_v27 = vsub.f32 %v3540_v22, %v3545_v53  ;;  %v2316_v35 = vadd.f32 -0.05, %v926_v33  ;;  %1025 = vadd.xlane.f32.xlu0 %v1024_v31  ;;  %v596_v45 = vmul.f32 %v3263_v17, %v2991_v34  ;;  %v1048_v61 = vsel %vm1008_vm1, %v3654_v7, 0.0 }
 0x278   : > { %vm932_vm14 = vcmp.gt.f32.partialorder %v3594_v42, 0.1  ;;  %vm940_vm15 = vcmp.gt.f32.partialorder %v3602_v55, 0.1  ;;  %2592 = vrsqrt.f32 %v3611_v3  ;;  %vm942_vm2 = vcmp.gt.f32.partialorder %v926_v33, 0.1 }
 0x279   : > { %v3666_v60 = vand.u32 2147483647, %v4549_v27  ;;  %1607 = vmin.xlane.f32.xlu1 %v3399_v25  ;;  %v3678_v22 = vsel %vm932_vm14, %v2306_v51, %v980_v36  ;;  %vm934_vm3 = vcmp.gt.f32.partialorder %v3598_v28, 0.1  ;;  %2594 = vrsqrt.f32 %v3657_v19  ;;  %v3696_v28 = vpop.xlane.xlu1 %1699  ;;  %v3712_v44 = vpop.xlane.xlu0 %1702 }
 0x27a   : > { %v3682_v34 = vsel %vm940_vm15, %v2314_v47, %v988_v18  ;;  %v3684_v17 = vsel %vm942_vm2, %v2316_v35, %v990_v38  ;;  %v3686_v53 = vsel %vm934_vm3, %v2308_v40, %v982_v23  ;;  %2596 = vrsqrt.f32 %v3638_v62 }
 0x27b   : > { %4550 = vst [vmem:[#allocation32_spill] sm:$0xff] %v3682_v34  ;;  %4551 = vst [vmem:[#allocation33_spill] sm:$0xff] %v3684_v17  ;;  %1049 = vadd.xlane.f32.xlu0 %v1048_v61  ;;  %v636_v42 = vsel %vm372_vm0, %v594_v52, 0.0  ;;  %v639_v25 = vsel %vm372_vm0, %v595_v30, 0.0  ;;  %v3692_v55 = vsel %vm372_vm0, %v596_v45, 0.0  ;;  %v3694_v33 = vmin.f32 %v1629_v58, %v1630_v63 }
 0x27c   : > { %v3700_v13 = vmul.f32 %v3666_v60, %v3666_v60  ;;  %v1021_v5 = vsel %vm1008_vm1, %v3678_v22, 0.0  ;;  %vm661_vm4 = vcmask 7168   ;;  %2598 = vrsqrt.f32 %v3696_v28 }
 0x27d   : > { %637 = vadd.xlane.f32.xlu1 %v636_v42  ;;  %v1045_v52 = vsel %vm1008_vm1, %v3682_v34, 0.0  ;;  %v1051_v58 = vsel %vm1008_vm1, %v3684_v17, 0.0  ;;  %v1027_v51 = vsel %vm1008_vm1, %v3686_v53, 0.0  ;;  %2600 = vrsqrt.f32 %v3670_v20 }
 0x27e   : > { %vm1706_vm5 = vcmp.eq.f32.partialorder %v3604_v16, inf  ;;  %vm1708_vm6 = vcmp.eq.f32.partialorder %v3604_v16, 0.0  ;;  %v1709_v30 = vand.u32 2147483648, %v3604_v16  ;;  %2602 = vrsqrt.f32 %v3712_v44 }
 0x27f   : > { %v2589_v40 = vpop.eup %2588  ;;  %1022 = vadd.xlane.f32.xlu0 %v1021_v5  ;;  %v1632_v37 = vrot.slane %v3694_v33, 1  ;;  %vm1720_vm7 = vcmp.eq.f32.partialorder %v3626_v32, inf  ;;  %vm1722_vm8 = vcmp.eq.f32.partialorder %v3626_v32, 0.0  ;;  %v1723_v63 = vand.u32 2147483648, %v3626_v32 }
 0x280   : > { %v2591_v23 = vpop.eup %2590  ;;  %v1705_v36 = vmul.f32 %v2589_v40, %v3604_v16  ;;  %vm1713_vm9 = vcmp.eq.f32.partialorder %v3611_v3, inf  ;;  %vm1715_vm10 = vcmp.eq.f32.partialorder %v3611_v3, 0.0  ;;  %v1716_v38 = vand.u32 2147483648, %v3611_v3 }
 0x281   : > { %1052 = vadd.xlane.f32.xlu1 %v1051_v58  ;;  %v1719_v31 = vmul.f32 %v2591_v23, %v3626_v32  ;;  %vm1734_vm11 = vcmp.eq.f32.partialorder %v3657_v19, inf  ;;  %vm1736_vm12 = vcmp.eq.f32.partialorder %v3657_v19, 0.0  ;;  %v1737_v18 = vand.u32 2147483648, %v3657_v19 }
 0x282   : > { %v2593_v47 = vpop.eup %2592  ;;  %v1707_v27 = vsel %vm1706_vm5, %v3604_v16, %v1705_v36  ;;  %vm1727_vm13 = vcmp.eq.f32.partialorder %v3638_v62, inf  ;;  %vm1729_vm14 = vcmp.eq.f32.partialorder %v3638_v62, 0.0  ;;  %v1730_v35 = vand.u32 2147483648, %v3638_v62 }
 0x283   : > { %v2595_v45 = vpop.eup %2594  ;;  %1046 = vadd.xlane.f32.xlu0 %v1045_v52  ;;  %v1710_v61 = vsel %vm1708_vm6, %v1709_v30, %v1707_v27  ;;  %v1721_v42 = vsel %vm1720_vm7, %v3626_v32, %v1719_v31  ;;  %v1712_v5 = vmul.f32 %v2593_v47, %v3611_v3  ;;  %vm1748_vm15 = vcmp.eq.f32.partialorder %v3696_v28, inf }
 0x284   : > { %v2597_v58 = vpop.eup %2596  ;;  %v1724_v40 = vsel %vm1722_vm8, %v1723_v63, %v1721_v42  ;;  %v1733_v23 = vmul.f32 %v2595_v45, %v3657_v19  ;;  %v1751_v36 = vand.u32 2147483648, %v3696_v28  ;;  %vm1741_vm2 = vcmp.eq.f32.partialorder %v3670_v20, inf }
 0x285   : > { %640 = vadd.xlane.f32.xlu1 %v639_v25  ;;  %v1760_v16 = vsel %vm661_vm4, %v1710_v61, 0.0  ;;  %v1714_v52 = vsel %vm1713_vm9, %v3611_v3, %v1712_v5  ;;  %v1726_v30 = vmul.f32 %v2597_v58, %v3638_v62  ;;  %vm1743_vm3 = vcmp.eq.f32.partialorder %v3670_v20, 0.0 }
 0x286   : > { %v2599_v31 = vpop.eup %2598  ;;  %v1717_v32 = vsel %vm1715_vm10, %v1716_v38, %v1714_v52  ;;  %v1735_v63 = vsel %vm1734_vm11, %v3657_v19, %v1733_v23  ;;  %v1744_v25 = vand.u32 2147483648, %v3670_v20  ;;  %vm1755_vm5 = vcmp.eq.f32.partialorder %v3712_v44, inf }
 0x287   : > { %v2601_v47 = vpop.eup %2600  ;;  %1028 = vadd.xlane.f32.xlu0 %v1027_v51  ;;  %v1761_v27 = vsel %vm661_vm4, %v1717_v32, 0.0  ;;  %v1728_v45 = vsel %vm1727_vm13, %v3638_v62, %v1726_v30  ;;  %v1747_v61 = vmul.f32 %v2599_v31, %v3696_v28  ;;  %v1763_v3 = vsel %vm661_vm4, %v1724_v40, 0.0 }
 0x288   : > { %v2603_v38 = vpop.eup %2602  ;;  %v1740_v42 = vmul.f32 %v2601_v47, %v3670_v20  ;;  %v1731_v5 = vsel %vm1729_vm14, %v1730_v35, %v1728_v45  ;;  %v1738_v58 = vsel %vm1736_vm12, %v1737_v18, %v1735_v63  ;;  %v1762_v51 = vadd.f32 %v1761_v27, %v1760_v16 }
 0x289   : > { %643 = vadd.xlane.f32.xlu1 %v3692_v55  ;;  %v1754_v23 = vmul.f32 %v2603_v38, %v3712_v44  ;;  %v1749_v52 = vsel %vm1748_vm15, %v3696_v28, %v1747_v61  ;;  %vm1750_vm6 = vcmp.eq.f32.partialorder %v3696_v28, 0.0  ;;  %v1765_v40 = vsel %vm661_vm4, %v1731_v5, 0.0 }
 0x28a   : > { %v991_v30 = vmul.f32 5.0, %v3700_v13  ;;  %v1742_v62 = vsel %vm1741_vm2, %v3670_v20, %v1740_v42  ;;  %v1758_v19 = vand.u32 2147483648, %v3712_v44  ;;  %v1764_v18 = vadd.f32 %v1763_v3, %v1762_v51  ;;  %v3858_v51 = vld [vmem:[%s306_s30 + $0x8] sm:$0xff] }
 0x28b   : > { %1604 = vmin.xlane.f32.xlu0 %v3402_v48  ;;  %v1745_v55 = vsel %vm1743_vm3, %v1744_v25, %v1742_v62  ;;  %v1756_v28 = vsel %vm1755_vm5, %v3712_v44, %v1754_v23  ;;  %vm1757_vm7 = vcmp.eq.f32.partialorder %v3712_v44, 0.0  ;;  %v1767_v13 = vsel %vm661_vm4, %v1738_v58, 0.0  ;;  %v3860_v23 = vld [vmem:[%s306_s30 + $0x10] sm:$0xff] }
 0x28c   : > { %v1633_v35 = vmin.f32 %v3694_v33, %v1632_v37  ;;  %v1752_v16 = vsel %vm1750_vm6, %v1751_v36, %v1749_v52  ;;  %v1766_v31 = vadd.f32 %v1765_v40, %v1764_v18  ;;  %v2317_v32 = vadd.f32 -0.05, %v3666_v60 }
 0x28d   : > { %1619 = vmin.xlane.f32.xlu1 %v3439_v50  ;;  %vm1659_vm8 = vcmask 778240   ;;  %v1769_v48 = vsel %vm661_vm4, %v1745_v55, 0.0  ;;  %v633_v20 = vsel %vm372_vm0, %v3560_v6, 0.0  ;;  %vm943_vm9 = vcmp.gt.f32.partialorder %v3666_v60, 0.1 }
 0x28e   : > { %v1759_v44 = vsel %vm1757_vm7, %v1758_v19, %v1756_v28  ;;  %v1768_v63 = vadd.f32 %v1767_v13, %v1766_v31  ;;  %v3801_v25 = vsel %vm943_vm9, %v2317_v32, %v991_v30  ;;  %v1771_v33 = vsel %vm661_vm4, %v1752_v16, 0.0 }
 0x28f   : > { %634 = vadd.xlane.f32.xlu0 %v633_v20  ;;  %4552 = vst [vmem:[#allocation34_spill] sm:$0xff] %v3801_v25  ;;  %v1660_v37 = vsel %vm1659_vm8, %v1633_v35, 0.0  ;;  %v1773_v50 = vsel %vm661_vm4, %v1759_v44, 0.0  ;;  %v1054_v47 = vsel %vm1008_vm1, %v3801_v25, 0.0  ;;  %v4507_v58 = vstv %s3830_s8 }
 0x290   : > { %v1770_v36 = vadd.f32 %v1769_v48, %v1768_v63  ;;  %v1846_v40 = vstv %s3833_s0  ;;  %v1848_v62 = vstv %s3836_s14  ;;  %v1850_v55 = vstv %s3841_s17  ;;  %s1814_s0 = sadd.s32 15, %s3817_s22  ;;  %s1816_s17 = sadd.s32 16, %s3817_s22 }
 0x291   : > { %1661 = vadd.xlane.f32.xlu1 %v1660_v37  ;;  %v3871_v19 = vsub.f32 %v3860_v23, %v1846_v40  ;;  %v1849_v35 = vmul.f32 %v3858_v51, %v1848_v62  ;;  %v1851_v16 = vmul.f32 %v3858_v51, %v1850_v55  ;;  %v1856_v31 = vstv %s3845_s24  ;;  %s3885_s14 = sld [smem:[#allocation4 + %s1814_s0]]  ;;  %s1828_s24 = sadd.s32 22, %s3817_s22 }
 0x292   : > { %v1772_v6 = vadd.f32 %v1771_v33, %v1770_v36  ;;  %v1857_v32 = vmul.f32 %v3858_v51, %v1856_v31  ;;  %s3889_s23 = sld [smem:[#allocation4 + %s1816_s17]]  ;;  %v1882_v63 = vstv %s3855_s29  ;;  %v1862_v37 = vstv %s3848_s27  ;;  %s1798_s27 = sadd.s32 7, %s3817_s22 }
 0x293   : > { %1055 = vadd.xlane.f32.xlu0 %v1054_v47  ;;  %v1853_v44 = vrot.slane %v1851_v16, 1  ;;  %vm1866_vm0 = vcmask 1040384   ;;  %s3909_s29 = sld [smem:[#allocation4 + %s1796_s9]]  ;;  %v1931_v16 = vstv %s3895_s28  ;;  %s1824_s9 = sadd.s32 20, %s3817_s22 }
 0x294   : > { %v3807_v60 = vadd.f32 %v1773_v50, %v1772_v6  ;;  %v1859_v33 = vrot.slane %v1857_v32, 2  ;;  %v1932_v31 = vmul.f32 %v3858_v51, %v1931_v16  ;;  %s3945_s28 = sld [smem:[#allocation4 + %s1824_s9]] }
 0x295   : > { %v1855_v47 = vadd.f32 %v1853_v44, %v1849_v35 }
 0x296   : > { %4553 = vst [vmem:[#allocation35_spill] sm:$0xff] %v3807_v60 }
 0x297   : > { %1610 = vmin.xlane.f32.xlu0 %v3445_v2  ;;  %v3839_v2 = vld [vmem:[%s306_s30] sm:$0xff]  ;;  %s3877_s30 = sld [smem:[#allocation4 + %s1804_s16]]  ;;  %s1800_s16 = sadd.s32 8, %s3817_s22  ;;  %v1923_v62 = vstv %s3885_s14 }
 0x298   : > { %v1841_v52 = vmul.f32 %v4507_v58, %v3839_v2  ;;  %v2050_v28 = vsub.f32 %v3839_v2, %v3858_v51  ;;  %v1909_v6 = vmul.f32 %v1882_v63, %v3839_v2  ;;  %s3924_s0 = sld [smem:[#allocation4 + %s1800_s16]]  ;;  %v1925_v55 = vstv %s3889_s23 }
 0x299   : > { %v1926_v35 = vmul.f32 %v3858_v51, %v1925_v55  ;;  %s3935_s14 = sld [smem:[#allocation4 + %s1820_s26]] }
 0x29a   : > { %v1843_v18 = vrot.slane %v1841_v52, 2  ;;  %v3904_v50 = vand.u32 2147483647, %v2050_v28  ;;  %v2001_v58 = vstv %s3945_s28 }
 0x29b   : > { %1613 = vmin.xlane.f32.xlu0 %v3451_v54  ;;  %v1832_v54 = vstv %s3821_s25  ;;  %s1792_s25 = sadd.s32 4, %s3817_s22 }
 0x29c   : > { %v1833_v42 = vmul.f32 %v1832_v54, %v3839_v2  ;;  %v3893_v48 = vmul.f32 %v3871_v19, %v1832_v54 }
 0x29f   : > { %1616 = vmin.xlane.f32.xlu0 %v3456_v15  ;;  %v1834_v15 = vstv %s3828_s13  ;;  %s3866_s13 = sld [smem:[#allocation4 + %s1792_s25]] }
 0x2a0   : > { %v1835_v5 = vmul.f32 %v1834_v15, %v3839_v2  ;;  %s3900_s25 = sld [smem:[#allocation4 + %s1828_s24]]  ;;  %s1822_s24 = sadd.s32 19, %s3817_s22 }
 0x2a1   : > { %v1602_v27 = vpop.xlane.xlu1 %1601  ;;  %s3940_s23 = sld [smem:[#allocation4 + %s1822_s24]] }
 0x2a2   : > { %v1635_v45 = vsel %vm661_vm4, %v1602_v27, 0.0  ;;  %v1837_v30 = vrot.slane %v1835_v5, 1  ;;  %v1861_v5 = vadd.f32 %v1859_v33, %v1855_v47  ;;  %v1928_v47 = vrot.slane %v1926_v35, 1 }
 0x2a4   : > { %v1839_v13 = vadd.f32 %v1837_v30, %v1833_v42  ;;  %v1952_v42 = vmul.f32 %v3871_v19, %v1834_v15  ;;  %v1863_v28 = vadd.f32 %v1862_v37, %v1861_v5 }
 0x2a5   : > { %v1910_v36 = vstv %s3866_s13  ;;  %s3916_s13 = sld [smem:[#allocation4 + %s1798_s27]]  ;;  %s1830_s27 = sadd.s32 23, %s3817_s22 }
 0x2a6   : > { %v1845_v20 = vadd.f32 %v1843_v18, %v1839_v13  ;;  %v1911_v27 = vmul.f32 %v1910_v36, %v3839_v2  ;;  %v1924_v18 = vmul.f32 %v3858_v51, %v1923_v62  ;;  %v1937_v32 = vstv %s3900_s25  ;;  %s3949_s16 = sld [smem:[#allocation4 + %s1830_s27]] }
 0x2a7   : > { %v1599_v61 = vpop.xlane.xlu0 %1598 }
 0x2a8   : > { %v1634_v3 = vsel %vm661_vm4, %v1599_v61, 0.0  ;;  %v1847_v61 = vadd.f32 %v1846_v40, %v1845_v20  ;;  %v1913_v30 = vrot.slane %v1911_v27, 1  ;;  %v1934_v27 = vrot.slane %v1932_v31, 2 }
 0x2a9   : > { %v3813_v38 = vadd.f32 %v1635_v45, %v1634_v3  ;;  %v4506_v45 = vstv %s3873_s21  ;;  %v1880_v3 = vstv %s3877_s30  ;;  %s1806_s30 = sadd.s32 11, %s3817_s22 }
 0x2aa   : > { %v1917_v54 = vmul.f32 %v4506_v45, %v3839_v2  ;;  %v3921_v52 = vsub.f32 %v3860_v23, %v1880_v3  ;;  %s3929_s17 = sld [smem:[#allocation4 + %s1806_s30]]  ;;  %v1915_v13 = vadd.f32 %v1913_v30, %v1909_v6  ;;  %v1864_v33 = vsub.f32 %v1847_v61, %v1863_v28 }
 0x2ab   : > { %4554 = vst [vmem:[#allocation36_spill] sm:$0xff] %v3813_v38  ;;  %v1890_v6 = vstv %s3909_s29  ;;  %v1930_v61 = vadd.f32 %v1928_v47, %v1924_v18  ;;  %v1986_v28 = vstv %s3924_s0  ;;  %v1993_v18 = vstv %s3935_s14 }
 0x2ac   : > { %v1919_v40 = vrot.slane %v1917_v54, 2  ;;  %v1883_v20 = vmul.f32 %v1882_v63, %v3921_v52  ;;  %v1953_v44 = vmul.f32 %v1910_v36, %v3921_v52  ;;  %v1958_v54 = vstv %s3916_s13 }
 0x2ad   : > { %v1980_v5 = vmul.f32 %v1890_v6, %v3839_v2  ;;  %v1865_v63 = vand.u32 2147483647, %v1864_v33  ;;  %v1981_v62 = vmul.f32 %v1958_v54, %v3839_v2  ;;  %v1936_v31 = vadd.f32 %v1934_v27, %v1930_v61 }
 0x2ae   : > { %v1921_v37 = vadd.f32 %v1919_v40, %v1915_v13  ;;  %v1885_v30 = vrot.slane %v1883_v20, 1  ;;  %v3954_v40 = vpop.xlane.xlu1 %601  ;;  %v1955_v35 = vrot.slane %v1953_v44, 1 }
 0x2af   : > { %v1867_v16 = vsel %vm1866_vm0, %v1865_v63, 0.0  ;;  %v1983_v33 = vrot.slane %v1981_v62, 1  ;;  %v1938_v15 = vadd.f32 %v1937_v32, %v1936_v31  ;;  %v2007_v63 = vstv %s3949_s16 }
 0x2b0   : > { %v1922_v36 = vadd.f32 %v1921_v37, %v1880_v3  ;;  %v1888_v55 = vstv %s3929_s17  ;;  %v1887_v13 = vadd.f32 %v1885_v30, %v3893_v48  ;;  %1868 = vadd.xlane.f32.xlu1 %v1867_v16  ;;  %v1987_v3 = vmul.f32 %v1986_v28, %v3839_v2 }
 0x2b1   : > { %v1889_v20 = vsub.f32 %v3860_v23, %v1888_v55  ;;  %v1995_v37 = vstv %s3940_s23  ;;  %v1957_v47 = vadd.f32 %v1955_v35, %v1952_v42  ;;  %v1985_v45 = vadd.f32 %v1983_v33, %v1980_v5 }
 0x2b2   : > { %v1994_v48 = vmul.f32 %v3858_v51, %v1993_v18  ;;  %v1996_v44 = vmul.f32 %v3858_v51, %v1995_v37  ;;  %v1989_v30 = vrot.slane %v1987_v3, 2  ;;  %v1939_v61 = vsub.f32 %v1922_v36, %v1938_v15  ;;  %v3969_v60 = vpop.xlane.xlu1 %604 }
 0x2b3   : > { %v1891_v27 = vmul.f32 %v1890_v6, %v1889_v20  ;;  %v2002_v62 = vmul.f32 %v3858_v51, %v2001_v58  ;;  %v1959_v16 = vmul.f32 %v1958_v54, %v1889_v20  ;;  %v2099_v5 = vrot.slane %v3904_v50, 1 }
 0x2b4   : > { %v1998_v23 = vrot.slane %v1996_v44, 1  ;;  %v1991_v42 = vadd.f32 %v1989_v30, %v1985_v45  ;;  %v4556_v35 = vstv %s3830_s8  ;;  %v1940_v33 = vand.u32 2147483647, %v1939_v61  ;;  %s4031_s8 = sld [smem:[#allocation3 + %s3817_s22]] }
 0x2b5   : > { %v1893_v32 = vrot.slane %v1891_v27, 2  ;;  %v2022_v31 = vmul.f32 %v3871_v19, %v4556_v35  ;;  %v2004_v18 = vrot.slane %v2002_v62, 2  ;;  %v1961_v37 = vrot.slane %v1959_v16, 2 }
 0x2b6   : > { %v2000_v3 = vadd.f32 %v1998_v23, %v1994_v48  ;;  %v1992_v6 = vadd.f32 %v1991_v42, %v1888_v55  ;;  %v3976_v36 = vsel %vm1866_vm0, %v2099_v5, 0.0  ;;  %v4558_v58 = vstv %s3873_s21  ;;  %v3989_v16 = vpop.xlane.xlu1 %607 }
 0x2b7   : > { %v1895_v15 = vadd.f32 %v1893_v32, %v1887_v13  ;;  %4557 = vst [vmem:[#allocation37_spill] sm:$0xff] %v3976_v36  ;;  %v2023_v54 = vmul.f32 %v4558_v58, %v3921_v52  ;;  %v1941_v45 = vsel %vm1866_vm0, %v1940_v33, 0.0  ;;  %v1963_v30 = vadd.f32 %v1961_v37, %v1957_v47  ;;  %v4002_v58 = vpop.xlane.xlu0 %598 }
 0x2b8   : > { %v2006_v44 = vadd.f32 %v2004_v18, %v2000_v3  ;;  %v2028_v27 = vmul.f32 %v1986_v28, %v1889_v20  ;;  %1942 = vadd.xlane.f32.xlu1 %v1941_v45  ;;  %v2062_v48 = vmul.f32 %v3839_v2, %v3839_v2  ;;  %v4559_v13 = vrot.slane %v3839_v2, 1  ;;  %v4563_v45 = vld [vmem:[#allocation9_spill] sm:$0xff] }
 0x2b9   : > { %v1896_v19 = vsub.f32 %v1895_v15, %v3839_v2  ;;  %v2025_v61 = vrot.slane %v2023_v54, 1  ;;  %v2074_v52 = vmul.f32 %v3858_v51, %v3858_v51  ;;  %v2033_v28 = vrot.slane %v3839_v2, 2 }
 0x2ba   : > { %v2008_v55 = vadd.f32 %v2007_v63, %v2006_v44  ;;  %v1967_v23 = vsub.f32 %v1963_v30, %v4559_v13  ;;  %v2030_v62 = vrot.slane %v2028_v27, 2  ;;  %v2064_v20 = vrot.slane %v2062_v48, 2  ;;  %v3999_v2 = vpop.xlane.xlu1 %613  ;;  %v4564_v44 = vld [vmem:[#allocation10_spill] sm:$0xff]  ;;  %v4565_v30 = vld [vmem:[#allocation11_spill] sm:$0xff]  ;;  %v4566_v27 = vld [vmem:[#allocation12_spill] sm:$0xff]  ;;  %p369_p7 = scmp.eq.s32.totalorder %s4031_s8, 1 }
 0x2bb   : > { %v1897_v42 = vand.u32 2147483647, %v1896_v19  ;;  %v2027_v47 = vadd.f32 %v2025_v61, %v2022_v31  ;;  %v2076_v35 = vrot.slane %v2074_v52, 2  ;;  %v4567_v61 = vld [vmem:[#allocation13_spill] sm:$0xff] }
 0x2bc   : > { %v2009_v32 = vsub.f32 %v1992_v6, %v2008_v55  ;;  %v1968_v5 = vand.u32 2147483647, %v1967_v23  ;;  %v2066_v3 = vadd.f32 %v2064_v20, %v2062_v48  ;;  %v4568_v48 = vld [vmem:[#allocation14_spill] sm:$0xff]  ;;  %v4016_v55 = vpop.xlane.xlu0 %610  ;;  %s4081_s21 = scalar_select %p369_p7, 1, 0 }
 0x2bd   : > { %v3993_v33 = vsel %vm1866_vm0, %v1897_v42, 0.0  ;;  %v2032_v63 = vadd.f32 %v2030_v62, %v2027_v47  ;;  %v2078_v51 = vadd.f32 %v2076_v35, %v2074_v52  ;;  %v4569_v52 = vld [vmem:[#allocation15_spill] sm:$0xff]  ;;  %v4570_v47 = vld [vmem:[#allocation16_spill] sm:$0xff] }
 0x2be   : > { %4560 = vst [vmem:[#allocation38_spill] sm:$0xff] %v3993_v33  ;;  %v2010_v18 = vand.u32 2147483647, %v2009_v32  ;;  %v3996_v37 = vsel %vm1866_vm0, %v1968_v5, 0.0  ;;  %2604 = vrsqrt.f32 %v2066_v3  ;;  %v4012_v19 = vpop.xlane.xlu1 %619  ;;  %vm2069_vm1 = vcmp.eq.f32.partialorder %v2066_v3, inf  ;;  %v4571_v32 = vld [vmem:[#allocation17_spill] sm:$0xff] }
 0x2bf   : > { %4561 = vst [vmem:[#allocation39_spill] sm:$0xff] %v3996_v37  ;;  %v2035_v15 = vsub.f32 %v2032_v63, %v2033_v28  ;;  %2606 = vrsqrt.f32 %v2078_v51  ;;  %v2072_v13 = vand.u32 2147483648, %v2066_v3  ;;  %vm2071_vm10 = vcmp.eq.f32.partialorder %v2066_v3, 0.0 }
 0x2c0   : > { %v2011_v31 = vsel %vm1866_vm0, %v2010_v18, 0.0  ;;  %2608 = vlog2.f32 %v3137_v39  ;;  %vm2081_vm11 = vcmp.eq.f32.partialorder %v2078_v51, inf  ;;  %vm2083_vm12 = vcmp.eq.f32.partialorder %v2078_v51, 0.0 }
 0x2c1   : > { %2012 = vadd.xlane.f32.xlu1 %v2011_v31  ;;  %v2036_v6 = vand.u32 2147483647, %v2035_v15  ;;  %2610 = vlog2.f32 %v4563_v45  ;;  %v4572_v15 = vld [vmem:[#allocation18_spill] sm:$0xff]  ;;  %v4573_v45 = vld [vmem:[#allocation19_spill] sm:$0xff] }
 0x2c2   : > { %2612 = vlog2.f32 %v4564_v44  ;;  %v4021_v5 = vpop.xlane.xlu1 %625  ;;  %v4025_v44 = vpop.xlane.xlu0 %616 }
 0x2c3   : > { %v4005_v54 = vsel %vm1866_vm0, %v2036_v6, 0.0  ;;  %2614 = vlog2.f32 %v4565_v30 }
 0x2c4   : > { %4562 = vst [vmem:[#allocation40_spill] sm:$0xff] %v4005_v54  ;;  %2616 = vlog2.f32 %v4566_v27 }
 0x2c5   : > { %2052 = vadd.xlane.f32.xlu1 %v3904_v50  ;;  %2618 = vlog2.f32 %v4567_v61  ;;  %v2084_v50 = vand.u32 2147483648, %v2078_v51 }
 0x2c6   : > { %2620 = vlog2.f32 %v4568_v48 }
 0x2c7   : > { %2622 = vlog2.f32 %v4569_v52  ;;  %v4035_v52 = vpop.xlane.xlu1 %628 }
 0x2c8   : > { %v2605_v39 = vpop.eup %2604  ;;  %2624 = vlog2.f32 %v4570_v47 }
 0x2c9   : > { %v2607_v23 = vpop.eup %2606  ;;  %v2068_v62 = vmul.f32 %v2605_v39, %v2066_v3  ;;  %2626 = vlog2.f32 %v4571_v32  ;;  %v4575_v39 = vld [vmem:[#allocation21_spill] sm:$0xff] }
 0x2ca   : > { %v2080_v42 = vmul.f32 %v2607_v23, %v2078_v51  ;;  %v2609_v20 = vpop.eup %2608  ;;  %2628 = vlog2.f32 %v4572_v15  ;;  %v4576_v23 = vld [vmem:[#allocation22_spill] sm:$0xff] }
 0x2cb   : > { %v2070_v28 = vsel %vm2069_vm1, %v2066_v3, %v2068_v62  ;;  %v2611_v18 = vpop.eup %2610  ;;  %2630 = vlog2.f32 %v4573_v45  ;;  %v4574_v3 = vld [vmem:[#allocation20_spill] sm:$0xff]  ;;  %v4577_v62 = vld [vmem:[#allocation23_spill] sm:$0xff] }
 0x2cc   : > { %v2073_v35 = vsel %vm2071_vm10, %v2072_v13, %v2070_v28  ;;  %v2082_v63 = vsel %vm2081_vm11, %v2078_v51, %v2080_v42  ;;  %v2613_v6 = vpop.eup %2612  ;;  %2632 = vlog2.f32 %v4574_v3  ;;  %v4040_v28 = vpop.xlane.xlu0 %622  ;;  %v552_v15 = vmul.f32 0.6931472, %v2611_v18 }
 0x2cd   : > { %v2085_v31 = vsel %vm2083_vm12, %v2084_v50, %v2082_v63  ;;  %v2615_v27 = vpop.eup %2614  ;;  %2634 = vlog2.f32 %v4575_v39  ;;  %v1090_v50 = vand.u32 2147483647, %v3470_v41 }
 0x2ce   : > { %v2086_v30 = vsub.f32 %v2073_v35, %v2085_v31  ;;  %v2617_v61 = vpop.eup %2616  ;;  %2636 = vlog2.f32 %v4576_v23  ;;  %v550_v31 = vmul.f32 0.6931472, %v2609_v20  ;;  %v4042_v3 = vmul.f32 0.6931472, %v2615_v27 }
 0x2cf   : > { %v2619_v13 = vpop.eup %2618  ;;  %2638 = vlog2.f32 %v4577_v62  ;;  %v1138_v63 = vmul.f32 %v1090_v50, %v1090_v50  ;;  %v4044_v39 = vmul.f32 0.6931472, %v2617_v61  ;;  %v1089_v23 = vand.u32 2147483647, %v3472_v26 }
 0x2d0   : > { %v2087_v48 = vand.u32 2147483647, %v2086_v30  ;;  %v2621_v51 = vpop.eup %2620  ;;  %v554_v30 = vmul.f32 0.6931472, %v2613_v6  ;;  %v645_v20 = vsub.f32 %v550_v31, %v4002_v58  ;;  %v4062_v26 = vand.u32 2147483647, %v3480_v1 }
 0x2d1   : > { %v2623_v47 = vpop.eup %2622  ;;  %v4049_v62 = vmul.f32 0.6931472, %v2621_v51  ;;  %v1154_v61 = vmul.f32 5.0, %v1138_v63  ;;  %v646_v33 = vsub.f32 %v552_v15, %v3954_v40  ;;  %vm1106_vm13 = vcmp.gt.f32.partialorder %v1090_v50, 0.1 }
 0x2d2   : > { %v4038_v42 = vsel %vm1866_vm0, %v2087_v48, 0.0  ;;  %v2625_v32 = vpop.eup %2624  ;;  %v4047_v48 = vmul.f32 0.6931472, %v2619_v13  ;;  %v4056_v37 = vmul.f32 0.6931472, %v2623_v47  ;;  %v1137_v63 = vmul.f32 %v1089_v23, %v1089_v23 }
 0x2d3   : > { %4578 = vst [vmem:[#allocation9_spill] sm:$0xff] %v4038_v42  ;;  %v2627_v35 = vpop.eup %2626  ;;  %v4051_v42 = vpop.xlane.xlu1 %631  ;;  %v4058_v6 = vmul.f32 0.6931472, %v2625_v32  ;;  %v2319_v32 = vadd.f32 -0.05, %v1090_v50  ;;  %v662_v25 = vsel %vm661_vm4, %v645_v20, 0.0  ;;  %v1140_v40 = vmul.f32 %v4062_v26, %v4062_v26 }
 0x2d4   : > { %v2629_v45 = vpop.eup %2628  ;;  %v4064_v13 = vmul.f32 0.6931472, %v2627_v35  ;;  %v1091_v35 = vand.u32 2147483647, %v3487_v9  ;;  %vm1105_vm14 = vcmp.gt.f32.partialorder %v1089_v23, 0.1 }
 0x2d5   : > { %v2631_v41 = vpop.eup %2630  ;;  %v4067_v36 = vmul.f32 0.6931472, %v2629_v45  ;;  %v663_v45 = vsel %vm661_vm4, %v646_v33, 0.0  ;;  %v2318_v20 = vadd.f32 -0.05, %v1089_v23 }
 0x2d6   : > { %v2633_v18 = vpop.eup %2632  ;;  %v4069_v38 = vmul.f32 0.6931472, %v2631_v41  ;;  %v647_v41 = vsub.f32 %v554_v30, %v3969_v60  ;;  %v664_v17 = vadd.f32 %v663_v45, %v662_v25  ;;  %vm1108_vm15 = vcmp.gt.f32.partialorder %v4062_v26, 0.1 }
 0x2d7   : > { %v2635_v27 = vpop.eup %2634  ;;  %v4075_v1 = vmul.f32 0.6931472, %v2633_v18  ;;  %v2321_v7 = vadd.f32 -0.05, %v4062_v26  ;;  %v4100_v33 = vand.u32 2147483647, %v3505_v24  ;;  %v648_v25 = vsub.f32 %v4042_v3, %v3989_v16 }
 0x2d8   : > { %v2637_v51 = vpop.eup %2636  ;;  %v4085_v15 = vmul.f32 0.6931472, %v2635_v27  ;;  %v1217_v27 = vstv %s4081_s21  ;;  %vm1107_vm3 = vcmp.gt.f32.partialorder %v1091_v35, 0.1  ;;  %v2320_v45 = vadd.f32 -0.05, %v1091_v35 }
 0x2d9   : > { %v2639_v47 = vpop.eup %2638  ;;  %4579 = vst [vmem:[#allocation10_spill] sm:$0xff] %v4075_v1  ;;  %v4087_v50 = vmul.f32 0.6931472, %v2637_v51  ;;  %v1153_v1 = vmul.f32 5.0, %v1137_v63  ;;  %v4097_v51 = vand.u32 2147483647, %v3495_v8 }
 0x2da   : > { %4580 = vst [vmem:[#allocation11_spill] sm:$0xff] %v4085_v15  ;;  %v4091_v9 = vmul.f32 0.6931472, %v2639_v47  ;;  %vm4112_vm2 = vcmp.eq.s32.totalorder %v1217_v27, 1  ;;  %v667_v23 = vsel %vm661_vm4, %v648_v25, 0.0 }
 0x2db   : > { %4581 = vst [vmem:[#allocation12_spill] sm:$0xff] %v4087_v50  ;;  %v1169_v24 = vsel %vm1105_vm14, %v2318_v20, %v1153_v1  ;;  %v4118_v16 = vadd.f32 -0.05, %v4097_v51  ;;  %v4134_v27 = vand.u32 2147483647, %v3520_v10 }
 0x2dc   : > { %4582 = vst [vmem:[#allocation13_spill] sm:$0xff] %v4091_v9  ;;  %vm1110_vm5 = vcmp.gt.f32.partialorder %v4097_v51, 0.1  ;;  %vm1109_vm6 = vcmp.gt.f32.partialorder %v4100_v33, 0.1 }
 0x2dd   : > { %vm1111_vm0 = vcmp.gt.f32.partialorder %v4134_v27, 0.1 }
 0x2e1   : > { %v4053_v54 = vpop.xlane.xlu0 %1013 }
 0x2e2   : > { %v1058_v58 = vsub.f32 %v4053_v54, %v3522_v21  ;;  %v1170_v21 = vsel %vm1106_vm13, %v2319_v32, %v1154_v61  ;;  %v1139_v61 = vmul.f32 %v1091_v35, %v1091_v35  ;;  %v1156_v32 = vmul.f32 5.0, %v1140_v40 }
 0x2e3   : > { %v4110_v40 = vand.u32 2147483647, %v3511_v56  ;;  %v1141_v56 = vmul.f32 %v4100_v33, %v4100_v33 }
 0x2e4   : > { %v1186_v18 = vadd.f32 %v1170_v21, %v1058_v58  ;;  %v665_v58 = vsel %vm661_vm4, %v647_v41, 0.0  ;;  %v1155_v41 = vmul.f32 5.0, %v1139_v61  ;;  %v4608_v21 = vld [vmem:[#allocation37_spill] sm:$0xff] }
 0x2e5   : > { %v666_v8 = vadd.f32 %v665_v58, %v664_v17  ;;  %v649_v17 = vsub.f32 %v4044_v39, %v4016_v55  ;;  %v1144_v61 = vmul.f32 %v4110_v40, %v4110_v40  ;;  %v1172_v55 = vsel %vm1108_vm15, %v2321_v7, %v1156_v32 }
 0x2e6   : > { %v1202_v47 = vmin.f32 %v4053_v54, %v1186_v18  ;;  %v4139_v39 = vand.u32 2147483647, %v3528_v59  ;;  %v650_v59 = vsub.f32 %v4047_v48, %v3999_v2  ;;  %v4161_v35 = vadd.f32 -0.05, %v4110_v40 }
 0x2e7   : > { %v668_v58 = vadd.f32 %v667_v23, %v666_v8  ;;  %v669_v25 = vsel %vm661_vm4, %v649_v17, 0.0  ;;  %v1171_v8 = vsel %vm1107_vm3, %v2320_v45, %v1155_v41  ;;  %v4155_v23 = vmul.f32 5.0, %v1141_v56  ;;  %v4585_v45 = vld [vmem:[#allocation25_spill] sm:$0xff] }
 0x2e8   : > { %v1220_v1 = vsel %vm4112_vm2, %v1202_v47, %v4053_v54  ;;  %v4164_v41 = vand.u32 2147483647, %v4585_v45  ;;  %v4171_v56 = vadd.f32 -0.05, %v4134_v27  ;;  %vm1114_vm7 = vcmp.gt.f32.partialorder %v4139_v39, 0.1 }
 0x2e9   : > { %v1236_v47 = vsel %vm661_vm4, %v1220_v1, 0.0  ;;  %v670_v17 = vadd.f32 %v669_v25, %v668_v58  ;;  %vm1112_vm8 = vcmp.gt.f32.partialorder %v4110_v40, 0.1 }
 0x2ea   : > { %vm1113_vm9 = vcmp.gt.f32.partialorder %v4164_v41, 0.1 }
 0x2f1   : > { %v4073_v31 = vpop.xlane.xlu1 %1037 }
 0x2f5   : > { %v1011_v30 = vpop.xlane.xlu1 %1010 }
 0x2f6   : > { %v4102_v60 = vpop.xlane.xlu0 %1034  ;;  %v1057_v63 = vsub.f32 %v1011_v30, %v3592_v49  ;;  %v1142_v49 = vmul.f32 %v4097_v51, %v4097_v51 }
 0x2f8   : > { %v1185_v9 = vadd.f32 %v1169_v24, %v1057_v63 }
 0x2fa   : > { %v1020_v3 = vpop.xlane.xlu1 %1019  ;;  %v1201_v18 = vmin.f32 %v1011_v30, %v1185_v9 }
 0x2fb   : > { %v1060_v20 = vsub.f32 %v1020_v3, %v3609_v57 }
 0x2fc   : > { %v1017_v63 = vpop.xlane.xlu0 %1016  ;;  %v1219_v54 = vsel %vm4112_vm2, %v1201_v18, %v1011_v30  ;;  %v1158_v30 = vmul.f32 5.0, %v1142_v49  ;;  %v4168_v49 = vmul.f32 5.0, %v1144_v61  ;;  %v1143_v18 = vmul.f32 %v4134_v27, %v4134_v27 }
 0x2fd   : > { %v1059_v9 = vsub.f32 %v1017_v63, %v3615_v46  ;;  %v1188_v57 = vadd.f32 %v1172_v55, %v1060_v20  ;;  %v1235_v10 = vsel %vm661_vm4, %v1219_v54, 0.0  ;;  %v4153_v46 = vadd.f32 -0.05, %v4100_v33  ;;  %v4586_v20 = vld [vmem:[#allocation26_spill] sm:$0xff] }
 0x2fe   : > { %v4148_v24 = vpop.xlane.xlu1 %1043  ;;  %v1237_v7 = vadd.f32 %v1236_v47, %v1235_v10  ;;  %v4176_v58 = vand.u32 2147483647, %v4586_v20  ;;  %v1146_v54 = vmul.f32 %v4139_v39, %v4139_v39 }
 0x2ff   : > { %v1187_v26 = vadd.f32 %v1171_v8, %v1059_v9  ;;  %v1204_v32 = vmin.f32 %v1020_v3, %v1188_v57  ;;  %v671_v9 = vsel %vm661_vm4, %v650_v59, 0.0  ;;  %v4587_v57 = vld [vmem:[#allocation27_spill] sm:$0xff]  ;;  %v1145_v59 = vmul.f32 %v4164_v41, %v4164_v41 }
 0x300   : > { %v4157_v1 = vpop.xlane.xlu0 %1040  ;;  %v4188_v25 = vand.u32 2147483647, %v4587_v57  ;;  %v672_v47 = vadd.f32 %v671_v9, %v670_v17  ;;  %v2327_v17 = vadd.f32 -0.05, %v4139_v39  ;;  %v1148_v20 = vmul.f32 %v4176_v58, %v4176_v58 }
 0x301   : > { %v1203_v2 = vmin.f32 %v1017_v63, %v1187_v26  ;;  %v1222_v48 = vsel %vm4112_vm2, %v1204_v32, %v1020_v3  ;;  %v651_v3 = vsub.f32 %v4049_v62, %v4025_v44  ;;  %v4588_v32 = vld [vmem:[#allocation28_spill] sm:$0xff]  ;;  %v4589_v62 = vld [vmem:[#allocation29_spill] sm:$0xff]  ;;  %v652_v57 = vsub.f32 %v4056_v37, %v4012_v19 }
 0x302   : > { %v4178_v55 = vpop.xlane.xlu1 %1031  ;;  %v1240_v8 = vsel %vm661_vm4, %v1222_v48, 0.0  ;;  %v4198_v44 = vand.u32 2147483647, %v4588_v32  ;;  %v2326_v48 = vadd.f32 -0.05, %v4164_v41  ;;  %v1162_v37 = vmul.f32 5.0, %v1146_v54 }
 0x303   : > { %v1221_v61 = vsel %vm4112_vm2, %v1203_v2, %v1017_v63  ;;  %v4201_v63 = vand.u32 2147483647, %v4589_v62  ;;  %v4203_v2 = vmul.f32 5.0, %v1143_v18  ;;  %v1147_v18 = vmul.f32 %v4188_v25, %v4188_v25 }
 0x304   : > { %v1238_v10 = vsel %vm661_vm4, %v1221_v61, 0.0  ;;  %v4192_v26 = vpop.xlane.xlu0 %1025  ;;  %v673_v61 = vsel %vm661_vm4, %v651_v3, 0.0  ;;  %v1150_v19 = vmul.f32 %v4198_v44, %v4198_v44  ;;  %v1174_v54 = vsel %vm1110_vm5, %v4118_v16, %v1158_v30 }
 0x305   : > { %v1239_v45 = vadd.f32 %v1238_v10, %v1237_v7  ;;  %v1062_v7 = vsub.f32 %v4192_v26, %v3646_v0  ;;  %v4591_v10 = vld [vmem:[#allocation30_spill] sm:$0xff]  ;;  %v674_v3 = vadd.f32 %v673_v61, %v672_v47  ;;  %v1161_v0 = vmul.f32 5.0, %v1145_v59 }
 0x306   : > { %v4209_v9 = vpop.xlane.xlu1 %1607  ;;  %v4222_v62 = vand.u32 2147483647, %v4591_v10  ;;  %v653_v47 = vsub.f32 %v4058_v6, %v4040_v28  ;;  %vm1115_vm1 = vcmp.gt.f32.partialorder %v4188_v25, 0.1  ;;  %v2328_v59 = vadd.f32 -0.05, %v4188_v25 }
 0x307   : > { %4590 = vst [vmem:[#allocation14_spill] sm:$0xff] %v4209_v9  ;;  %v4214_v32 = vadd.f32 %v1240_v8, %v1239_v45  ;;  %v4225_v9 = vand.u32 2147483647, %v3582_v11  ;;  %v1149_v8 = vmul.f32 %v4201_v63, %v4201_v63  ;;  %v4236_v45 = vadd.f32 -0.05, %v4176_v58 }
 0x308   : > { %v4227_v50 = vpop.xlane.xlu0 %1049  ;;  %v4238_v11 = vmul.f32 5.0, %v1148_v20  ;;  %v2331_v61 = vadd.f32 -0.05, %v4198_v44  ;;  %v675_v10 = vsel %vm661_vm4, %v652_v57, 0.0  ;;  %v1190_v15 = vadd.f32 %v1174_v54, %v1062_v7 }
 0x309   : > { %4592 = vst [vmem:[#allocation15_spill] sm:$0xff] %v4227_v50  ;;  %4593 = vst [vmem:[#allocation16_spill] sm:$0xff] %v4236_v45  ;;  %v1163_v20 = vmul.f32 5.0, %v1147_v18  ;;  %v1152_v50 = vmul.f32 %v4222_v62, %v4222_v62  ;;  %v1151_v28 = vmul.f32 %v4225_v9, %v4225_v9  ;;  %v676_v6 = vadd.f32 %v675_v10, %v674_v3 }
 0x30a   : > { %4594 = vst [vmem:[#allocation17_spill] sm:$0xff] %v4238_v11  ;;  %v4254_v16 = vpop.xlane.xlu1 %637  ;;  %v1166_v30 = vmul.f32 5.0, %v1150_v19  ;;  %v2330_v34 = vadd.f32 -0.05, %v4201_v63  ;;  %v1165_v45 = vmul.f32 5.0, %v1149_v8  ;;  %v677_v7 = vsel %vm661_vm4, %v653_v47, 0.0 }
 0x30b   : > { %v4259_v57 = vadd.f32 -0.05, %v4222_v62  ;;  %v654_v18 = vsub.f32 %v4064_v13, %v4021_v5  ;;  %v1173_v3 = vsel %vm1109_vm6, %v4153_v46, %v4155_v23  ;;  %vm1116_vm10 = vcmp.gt.f32.partialorder %v4176_v58, 0.1 }
 0x30c   : > { %v1023_v51 = vpop.xlane.xlu0 %1022  ;;  %vm1118_vm11 = vcmp.gt.f32.partialorder %v4198_v44, 0.1  ;;  %v1206_v19 = vmin.f32 %v4192_v26, %v1190_v15  ;;  %v1064_v8 = vsub.f32 %v4178_v55, %v3636_v43  ;;  %vm1117_vm12 = vcmp.gt.f32.partialorder %v4201_v63, 0.1 }
 0x30d   : > { %v1061_v11 = vsub.f32 %v1023_v51, %v3678_v22  ;;  %v1065_v22 = vsub.f32 %v4102_v60, %v3585_v12  ;;  %v4276_v5 = vmul.f32 5.0, %v1152_v50  ;;  %v2332_v13 = vadd.f32 -0.05, %v4225_v9 }
 0x30e   : > { %v1167_v33 = vmul.f32 5.0, %v1151_v28  ;;  %v678_v46 = vadd.f32 %v677_v7, %v676_v6  ;;  %v655_v54 = vsub.f32 %v4067_v36, %v4035_v52  ;;  %v1178_v12 = vsel %vm1114_vm7, %v2327_v17, %v1162_v37  ;;  %v4296_v52 = vpop.xlane.xlu1 %1052 }
 0x30f   : > { %v1189_v47 = vadd.f32 %v1173_v3, %v1061_v11  ;;  %v1066_v43 = vsub.f32 %v4073_v31, %v3568_v4  ;;  %v679_v11 = vsel %vm661_vm4, %v654_v18, 0.0  ;;  %v1177_v50 = vsel %vm1113_vm9, %v2326_v48, %v1161_v0 }
 0x310   : > { %v4279_v23 = vpop.xlane.xlu0 %1046  ;;  %v1067_v10 = vsub.f32 %v4157_v1, %v3622_v14  ;;  %v1176_v36 = vsel %vm1112_vm8, %v4161_v35, %v4168_v49  ;;  %v1193_v39 = vadd.f32 %v1177_v50, %v1065_v22  ;;  %v1224_v4 = vsel %vm4112_vm2, %v1206_v19, %v4192_v26  ;;  %v4596_v7 = vld [vmem:[#allocation16_spill] sm:$0xff] }
 0x311   : > { %v1205_v15 = vmin.f32 %v1023_v51, %v1189_v47  ;;  %v1192_v17 = vadd.f32 %v1176_v36, %v1064_v8  ;;  %v680_v48 = vadd.f32 %v679_v11, %v678_v46  ;;  %v1179_v14 = vsel %vm1115_vm1, %v2328_v59, %v1163_v20  ;;  %v4602_v36 = vld [vmem:[#allocation10_spill] sm:$0xff] }
 0x312   : > { %v1175_v40 = vsel %vm1111_vm0, %v4171_v56, %v4203_v2  ;;  %v681_v49 = vsel %vm661_vm4, %v655_v54, 0.0  ;;  %v1194_v0 = vadd.f32 %v1178_v12, %v1066_v43  ;;  %v656_v6 = vsub.f32 %v4069_v38, %v4051_v42  ;;  %v4597_v42 = vld [vmem:[#allocation32_spill] sm:$0xff]  ;;  %v641_v18 = vpop.xlane.xlu1 %640  ;;  %v4598_v54 = vld [vmem:[#allocation31_spill] sm:$0xff]  ;;  %v4601_v43 = vld [vmem:[#allocation33_spill] sm:$0xff] }
 0x313   : > { %v1223_v41 = vsel %vm4112_vm2, %v1205_v15, %v1023_v51  ;;  %v1195_v25 = vadd.f32 %v1179_v14, %v1067_v10  ;;  %v1068_v59 = vsub.f32 %v4148_v24, %v3617_v29  ;;  %v1244_v20 = vsel %vm661_vm4, %v1224_v4, 0.0  ;;  %v4599_v12 = vld [vmem:[#allocation15_spill] sm:$0xff] }
 0x314   : > { %v1242_v37 = vsel %vm661_vm4, %v1223_v41, 0.0  ;;  %v1029_v35 = vpop.xlane.xlu0 %1028  ;;  %v1209_v27 = vmin.f32 %v4102_v60, %v1193_v39  ;;  %v1208_v56 = vmin.f32 %v4178_v55, %v1192_v17  ;;  %vm1119_vm13 = vcmp.gt.f32.partialorder %v4225_v9, 0.1 }
 0x315   : > { %v1243_v26 = vadd.f32 %v1242_v37, %v4214_v32  ;;  %v1063_v28 = vsub.f32 %v1029_v35, %v3686_v53  ;;  %v4595_v32 = vld [vmem:[#allocation17_spill] sm:$0xff]  ;;  %v1182_v38 = vsel %vm1118_vm11, %v2331_v61, %v1166_v30  ;;  %v1069_v29 = vsub.f32 %v4279_v23, %v4597_v42 }
 0x316   : > { %v1180_v53 = vsel %vm1116_vm10, %v4596_v7, %v4595_v32  ;;  %vm1120_vm14 = vcmp.gt.f32.partialorder %v4222_v62, 0.1  ;;  %v1210_v22 = vmin.f32 %v4073_v31, %v1194_v0  ;;  %v1181_v9 = vsel %vm1117_vm12, %v2330_v34, %v1165_v45  ;;  %v4600_v45 = vld [vmem:[#allocation11_spill] sm:$0xff] }
 0x317   : > { %v1245_v2 = vadd.f32 %v1244_v20, %v1243_v26  ;;  %v1191_v51 = vadd.f32 %v1175_v40, %v1063_v28  ;;  %v1183_v19 = vsel %vm1119_vm13, %v2332_v13, %v1167_v33  ;;  %v682_v47 = vadd.f32 %v681_v49, %v680_v48  ;;  %v644_v48 = vpop.xlane.xlu1 %643  ;;  %v4603_v40 = vld [vmem:[#allocation12_spill] sm:$0xff] }
 0x318   : > { %v1605_v3 = vpop.xlane.xlu0 %1604  ;;  %v683_v58 = vsel %vm661_vm4, %v656_v6, 0.0  ;;  %v1211_v44 = vmin.f32 %v4157_v1, %v1195_v25  ;;  %v1196_v61 = vadd.f32 %v1180_v53, %v1068_v59  ;;  %v1227_v30 = vsel %vm4112_vm2, %v1209_v27, %v4102_v60  ;;  %v4604_v59 = vld [vmem:[#allocation13_spill] sm:$0xff]  ;;  %v4605_v27 = vld [vmem:[#allocation34_spill] sm:$0xff] }
 0x319   : > { %v1207_v8 = vmin.f32 %v1029_v35, %v1191_v51  ;;  %v1226_v46 = vsel %vm4112_vm2, %v1208_v56, %v4178_v55  ;;  %v1070_v63 = vsub.f32 %v4599_v12, %v4598_v54  ;;  %v658_v13 = vsub.f32 %v4600_v45, %v4254_v16 }
 0x31a   : > { %v1197_v33 = vadd.f32 %v1181_v9, %v1069_v29  ;;  %v1071_v15 = vsub.f32 %v4296_v52, %v4601_v43  ;;  %v684_v50 = vadd.f32 %v683_v58, %v682_v47  ;;  %v1228_v55 = vsel %vm4112_vm2, %v1210_v22, %v4073_v31  ;;  %v4607_v47 = vld [vmem:[#allocation14_spill] sm:$0xff] }
 0x31b   : > { %v1225_v34 = vsel %vm4112_vm2, %v1207_v8, %v1029_v35  ;;  %v1250_v4 = vsel %vm661_vm4, %v1227_v30, 0.0  ;;  %v1229_v16 = vsel %vm4112_vm2, %v1211_v44, %v4157_v1  ;;  %v1212_v17 = vmin.f32 %v4148_v24, %v1196_v61 }
 0x31c   : > { %v1246_v11 = vsel %vm661_vm4, %v1225_v34, 0.0  ;;  %v635_v60 = vpop.xlane.xlu0 %634  ;;  %v1248_v41 = vsel %vm661_vm4, %v1226_v46, 0.0  ;;  %v1198_v14 = vadd.f32 %v1182_v38, %v1070_v63  ;;  %v659_v35 = vsub.f32 %v4603_v40, %v641_v18  ;;  %v4612_v40 = vld [vmem:[#allocation40_spill] sm:$0xff] }
 0x31d   : > { %v1247_v10 = vadd.f32 %v1246_v11, %v1245_v2  ;;  %v657_v39 = vsub.f32 %v4602_v36, %v635_v60  ;;  %v687_v49 = vsel %vm661_vm4, %v658_v13, 0.0  ;;  %v1213_v0 = vmin.f32 %v4279_v23, %v1197_v33 }
 0x31e   : > { %v1199_v26 = vadd.f32 %v1183_v19, %v1071_v15  ;;  %v1637_v1 = vsel %vm661_vm4, %v1605_v3, 0.0  ;;  %v660_v20 = vsub.f32 %v4604_v59, %v644_v48  ;;  %v1252_v2 = vsel %vm661_vm4, %v1228_v55, 0.0  ;;  %v4606_v3 = vld [vmem:[#allocation36_spill] sm:$0xff]  ;;  %v4609_v48 = vld [vmem:[#allocation35_spill] sm:$0xff] }
 0x31f   : > { %v1249_v37 = vadd.f32 %v1248_v41, %v1247_v10  ;;  %v685_v31 = vsel %vm661_vm4, %v657_v39, 0.0  ;;  %v1230_v51 = vsel %vm4112_vm2, %v1212_v17, %v4148_v24  ;;  %v1184_v7 = vsel %vm1120_vm14, %v4259_v57, %v4276_v5 }
 0x320   : > { %v686_v28 = vadd.f32 %v685_v31, %v684_v50  ;;  %v1056_v6 = vpop.xlane.xlu0 %1055  ;;  %v1214_v53 = vmin.f32 %v4599_v12, %v1198_v14  ;;  %v689_v42 = vsel %vm661_vm4, %v659_v35, 0.0  ;;  %v1254_v18 = vsel %vm661_vm4, %v1229_v16, 0.0  ;;  %v1620_v50 = vpop.xlane.xlu1 %1619  ;;  %v4610_v14 = vld [vmem:[#allocation38_spill] sm:$0xff]  ;;  %v4613_v35 = vld [vmem:[#allocation9_spill] sm:$0xff] }
 0x321   : > { %v1251_v25 = vadd.f32 %v1250_v4, %v1249_v37  ;;  %v1072_v56 = vsub.f32 %v1056_v6, %v4605_v27  ;;  %v1638_v22 = vadd.f32 %v1637_v1, %v4606_v3  ;;  %v1231_v24 = vsel %vm4112_vm2, %v1213_v0, %v4279_v23  ;;  %v4611_v37 = vld [vmem:[#allocation39_spill] sm:$0xff] }
 0x322   : > { %v688_v32 = vadd.f32 %v687_v49, %v686_v28  ;;  %v1215_v8 = vmin.f32 %v4296_v52, %v1199_v26  ;;  %v691_v57 = vsel %vm661_vm4, %v660_v20, 0.0  ;;  %v1256_v5 = vsel %vm661_vm4, %v1230_v51, 0.0 }
 0x323   : > { %v1253_v38 = vadd.f32 %v1252_v2, %v1251_v25  ;;  %v1200_v29 = vadd.f32 %v1184_v7, %v1072_v56  ;;  %v1639_v58 = vsel %vm661_vm4, %v4607_v47, 0.0  ;;  %v1232_v61 = vsel %vm4112_vm2, %v1214_v53, %v4599_v12 }
 0x324   : > { %v1611_v9 = vpop.xlane.xlu0 %1610  ;;  %v690_v19 = vadd.f32 %v689_v42, %v688_v32  ;;  %v1258_v23 = vsel %vm661_vm4, %v1231_v24, 0.0  ;;  %v1640_v63 = vadd.f32 %v1639_v58, %v1638_v22  ;;  %v1233_v45 = vsel %vm4112_vm2, %v1215_v8, %v4296_v52  ;;  %v1662_v31 = vpop.xlane.xlu1 %1661 }
 0x325   : > { %v1255_v62 = vadd.f32 %v1254_v18, %v1253_v38  ;;  %v1216_v30 = vmin.f32 %v1056_v6, %v1200_v29  ;;  %v1641_v46 = vsel %vm661_vm4, %v1611_v9, 0.0  ;;  %v1260_v43 = vsel %vm661_vm4, %v1232_v61, 0.0 }
 0x326   : > { %v692_v44 = vadd.f32 %v691_v57, %v690_v19  ;;  %v1642_v15 = vadd.f32 %v1641_v46, %v1640_v63  ;;  %v1262_v60 = vsel %vm661_vm4, %v1233_v45, 0.0  ;;  %v1647_v16 = vsel %vm661_vm4, %v1620_v50, 0.0 }
 0x327   : > { %v1257_v54 = vadd.f32 %v1256_v5, %v1255_v62  ;;  %v1234_v12 = vsel %vm4112_vm2, %v1216_v30, %v1056_v6  ;;  %v1663_v28 = vrot.slane %v1662_v31, 4 }
 0x328   : > { %693 = vadd.xlane.f32.xlu0 %v692_v44  ;;  %v1614_v34 = vpop.xlane.xlu0 %1613  ;;  %v1264_v52 = vsel %vm661_vm4, %v1234_v12, 0.0 }
 0x329   : > { %v1643_v13 = vsel %vm661_vm4, %v1614_v34, 0.0  ;;  %v1259_v33 = vadd.f32 %v1258_v23, %v1257_v54  ;;  %v1664_v20 = vadd.f32 %v1663_v28, %v1662_v31 }
 0x32a   : > { %v1644_v55 = vadd.f32 %v1643_v13, %v1642_v15 }
 0x32b   : > { %v1261_v11 = vadd.f32 %v1260_v43, %v1259_v33  ;;  %v1665_v51 = vrot.slane %v1664_v20, 2 }
 0x32c   : > { %v1617_v10 = vpop.xlane.xlu0 %1616 }
 0x32d   : > { %v1645_v36 = vsel %vm661_vm4, %v1617_v10, 0.0  ;;  %v1263_v39 = vadd.f32 %v1262_v60, %v1261_v11  ;;  %v1666_v9 = vadd.f32 %v1665_v51, %v1664_v20 }
 0x32e   : > { %v1646_v4 = vadd.f32 %v1645_v36, %v1644_v55 }
 0x32f   : > { %v1265_v17 = vadd.f32 %v1264_v52, %v1263_v39  ;;  %v1667_v61 = vrot.slane %v1666_v9, 1 }
 0x330   : > { %v1648_v41 = vadd.f32 %v1647_v16, %v1646_v4 }
 0x331   : > { %1266 = vadd.xlane.f32.xlu1 %v1265_v17  ;;  %v1668_v60 = vadd.f32 %v1667_v61, %v1666_v9 }
 0x332   : > { %1649 = vadd.xlane.f32.xlu0 %v1648_v41 }
 0x335   : > { %2102 = vadd.xlane.f32.xlu1 %v4608_v21 }
 0x336   : > { %1775 = vadd.xlane.f32.xlu0 %v4609_v48 }
 0x33a   : > { %1899 = vadd.xlane.f32.xlu0 %v4610_v14 }
 0x33d   : > { %v1869_v49 = vpop.xlane.xlu1 %1868 }
 0x33e   : > { %1970 = vadd.xlane.f32.xlu0 %v4611_v37  ;;  %v1870_v27 = vrot.slane %v1869_v49, 4 }
 0x340   : > { %v1871_v32 = vadd.f32 %v1870_v27, %v1869_v49 }
 0x342   : > { %2038 = vadd.xlane.f32.xlu0 %v4612_v40  ;;  %v1872_v19 = vrot.slane %v1871_v32, 2 }
 0x344   : > { %v1873_v54 = vadd.f32 %v1872_v19, %v1871_v32 }
 0x345   : > { %v1943_v0 = vpop.xlane.xlu1 %1942 }
 0x346   : > { %2089 = vadd.xlane.f32.xlu0 %v4613_v35  ;;  %v1944_v38 = vrot.slane %v1943_v0, 4  ;;  %v1874_v36 = vrot.slane %v1873_v54, 1 }
 0x348   : > { %v1945_v8 = vadd.f32 %v1944_v38, %v1943_v0  ;;  %v1875_v40 = vadd.f32 %v1874_v36, %v1873_v54 }
 0x34a   : > { %v1946_v23 = vrot.slane %v1945_v8, 2 }
 0x34c   : > { %v1947_v17 = vadd.f32 %v1946_v23, %v1945_v8 }
 0x34e   : > { %v2013_v26 = vpop.xlane.xlu1 %2012 }
 0x34f   : > { %v2014_v62 = vrot.slane %v2013_v26, 4 }
 0x351   : > { %v2015_v63 = vadd.f32 %v2014_v62, %v2013_v26  ;;  %v1948_v26 = vrot.slane %v1947_v17, 1 }
 0x352   : > { %v2053_v59 = vpop.xlane.xlu1 %2052 }
 0x353   : > { %v2054_v34 = vrot.slane %v2053_v59, 4  ;;  %v2016_v39 = vrot.slane %v2015_v63, 2  ;;  %v1949_v51 = vadd.f32 %v1948_v26, %v1947_v17 }
 0x355   : > { %v2055_v52 = vadd.f32 %v2054_v34, %v2053_v59  ;;  %v2017_v28 = vadd.f32 %v2016_v39, %v2015_v63 }
 0x357   : > { %v2056_v31 = vrot.slane %v2055_v52, 2  ;;  %v2018_v32 = vrot.slane %v2017_v28, 1 }
 0x359   : > { %v2019_v9 = vadd.f32 %v2018_v32, %v2017_v28 }
 0x3b5   : > { %v694_v6 = vpop.xlane.xlu0 %693 }
 0x3b6   : > { %v695_v25 = vrot.slane %v694_v6, 4 }
 0x3b8   : > { %v696_v1 = vadd.f32 %v695_v25, %v694_v6 }
 0x3ba   : > { %v697_v56 = vrot.slane %v696_v1, 2 }
 0x3bc   : > { %v698_v2 = vadd.f32 %v697_v56, %v696_v1 }
 0x3be   : > { %v1267_v7 = vpop.xlane.xlu1 %1266  ;;  %v699_v53 = vrot.slane %v698_v2, 1 }
 0x3bf   : > { %v1268_v42 = vrot.slane %v1267_v7, 4  ;;  %v1650_v29 = vpop.xlane.xlu0 %1649 }
 0x3c0   : > { %v1651_v18 = vrot.slane %v1650_v29, 4  ;;  %v700_v3 = vadd.f32 %v699_v53, %v698_v2 }
 0x3c1   : > { %v1269_v22 = vadd.f32 %v1268_v42, %v1267_v7  ;;  %v2057_v7 = vadd.f32 %v2056_v31, %v2055_v52 }
 0x3c2   : > { %v1652_v24 = vadd.f32 %v1651_v18, %v1650_v29  ;;  %2430 = vpush %v700_v3  ;;  %v2103_v12 = vpop.xlane.xlu1 %2102 }
 0x3c3   : > { %v1270_v57 = vrot.slane %v1269_v22, 2  ;;  %v1776_v5 = vpop.xlane.xlu0 %1775  ;;  %v2104_v16 = vrot.slane %v2103_v12, 4  ;;  %v2058_v19 = vrot.slane %v2057_v7, 1 }
 0x3c4   : > { %v1653_v47 = vrot.slane %v1652_v24, 2  ;;  %v1777_v58 = vrot.slane %v1776_v5, 4 }
 0x3c5   : > { %v1271_v44 = vadd.f32 %v1270_v57, %v1269_v22  ;;  %v2105_v49 = vadd.f32 %v2104_v16, %v2103_v12 }
 0x3c6   : > { %v1778_v30 = vadd.f32 %v1777_v58, %v1776_v5  ;;  %v1654_v46 = vadd.f32 %v1653_v47, %v1652_v24  ;;  %v2059_v5 = vadd.f32 %v2058_v19, %v2057_v7 }
 0x3c7   : > { %v1900_v45 = vpop.xlane.xlu0 %1899  ;;  %v1272_v13 = vrot.slane %v1271_v44, 1  ;;  %v2106_v56 = vrot.slane %v2105_v49, 2 }
 0x3c8   : > { %v1779_v33 = vrot.slane %v1778_v30, 2  ;;  %v1901_v43 = vrot.slane %v1900_v45, 4  ;;  %v1655_v15 = vrot.slane %v1654_v46, 1 }
 0x3c9   : > { %v1273_v11 = vadd.f32 %v1272_v13, %v1271_v44  ;;  %v2107_v22 = vadd.f32 %v2106_v56, %v2105_v49 }
 0x3ca   : > { %v1902_v50 = vadd.f32 %v1901_v43, %v1900_v45  ;;  %v1656_v55 = vadd.f32 %v1655_v15, %v1654_v46  ;;  %v1780_v10 = vadd.f32 %v1779_v33, %v1778_v30  ;;  %v4614_v30 = vld [vmem:[#allocation24_spill] sm:$0xff] }
 0x3cb   : > { %2432 = vpush %v1273_v11  ;;  %v1971_v4 = vpop.xlane.xlu0 %1970  ;;  %v2108_v47 = vrot.slane %v2107_v22, 1  ;;  %vm2116_vm4 = vcmp.eq.s32.totalorder %v4614_v30, 0  ;;  %vm2119_vm15 = vcmp.eq.s32.totalorder %v4614_v30, 1  ;;  %vm2122_vm2 = vcmp.eq.s32.totalorder %v4614_v30, 2 }
 0x3cc   : > { %v1903_v41 = vrot.slane %v1902_v50, 2  ;;  %v1972_v21 = vrot.slane %v1971_v4, 4  ;;  %2434 = vpush %v1656_v55  ;;  %v1781_v48 = vrot.slane %v1780_v10, 1  ;;  %vm2125_vm3 = vcmp.eq.s32.totalorder %v4614_v30, 3 }
 0x3cd   : > { %2436 = vpush %v1668_v60  ;;  %v2109_v61 = vadd.f32 %v2108_v47, %v2107_v22  ;;  %vm2128_vm5 = vcmp.eq.s32.totalorder %v4614_v30, 4  ;;  %vm2131_vm6 = vcmp.eq.s32.totalorder %v4614_v30, 5  ;;  %vm2134_vm7 = vcmp.eq.s32.totalorder %v4614_v30, 6 }
 0x3ce   : > { %v1973_v14 = vadd.f32 %v1972_v21, %v1971_v4  ;;  %v1782_v37 = vadd.f32 %v1781_v48, %v1780_v10  ;;  %v1904_v35 = vadd.f32 %v1903_v41, %v1902_v50  ;;  %vm2137_vm8 = vcmp.eq.s32.totalorder %v4614_v30, 7 }
 0x3cf   : > { %v2039_v0 = vpop.xlane.xlu0 %2038 }
 0x3d0   : > { %v1974_v6 = vrot.slane %v1973_v14, 2  ;;  %v2040_v25 = vrot.slane %v2039_v0, 4  ;;  %2438 = vpush %v1782_v37  ;;  %v1905_v1 = vrot.slane %v1904_v35, 1 }
 0x3d1   : > { %2440 = vpush %v1875_v40 }
 0x3d2   : > { %v2041_v59 = vadd.f32 %v2040_v25, %v2039_v0  ;;  %v1906_v20 = vadd.f32 %v1905_v1, %v1904_v35  ;;  %v1975_v27 = vadd.f32 %v1974_v6, %v1973_v14 }
 0x3d3   : > { %v2090_v2 = vpop.xlane.xlu0 %2089 }
 0x3d4   : > { %v2042_v53 = vrot.slane %v2041_v59, 2  ;;  %v2091_v38 = vrot.slane %v2090_v2, 4  ;;  %2442 = vpush %v1906_v20  ;;  %v1976_v42 = vrot.slane %v1975_v27, 1 }
 0x3d5   : > { %2444 = vpush %v1949_v51 }
 0x3d6   : > { %v2092_v29 = vadd.f32 %v2091_v38, %v2090_v2  ;;  %v1977_v18 = vadd.f32 %v1976_v42, %v1975_v27  ;;  %v2043_v3 = vadd.f32 %v2042_v53, %v2041_v59 }
 0x3d8   : > { %v2093_v24 = vrot.slane %v2092_v29, 2  ;;  %2446 = vpush %v1977_v18  ;;  %v2044_v8 = vrot.slane %v2043_v3, 1 }
 0x3d9   : > { %2448 = vpush %v2019_v9 }
 0x3da   : > { %v2094_v62 = vadd.f32 %v2093_v24, %v2092_v29  ;;  %v2045_v57 = vadd.f32 %v2044_v8, %v2043_v3 }
 0x3dc   : > { %2450 = vpush %v2045_v57  ;;  %v2095_v58 = vrot.slane %v2094_v62, 1 }
 0x3dd   : > { %2452 = vpush %v2059_v5 }
 0x3de   : > { %v2096_v44 = vadd.f32 %v2095_v58, %v2094_v62 }
 0x3e0   : > { %2454 = vpush %v2096_v44 }
 0x3e1   : > { %2456 = vpush %v2109_v61 }
 0x3f3   : > { %s2431_s25 = spop %2430 }
 0x3f4   : > { %s702_s3 = smul.f32 0.0078125, %s2431_s25 }
 0x3f6   : > { %v2120_v23 = vstv %s702_s3 }
 0x3fc   : > { %s2433_s29 = spop %2432 }
 0x3fd   : > { %s2435_s13 = spop %2434  ;;  %s1275_s23 = smul.f32 0.0078125, %s2433_s29 }
 0x3fe   : > { %s2437_s0 = spop %2436  ;;  %s1658_s17 = smul.f32 0.015625, %s2435_s13 }
 0x3ff   : > { %s1670_s14 = smul.f32 0.010416667, %s2437_s0  ;;  %v2117_v46 = vstv %s1275_s23  ;;  %s4416_s0 = sshll.u32 %s285_s2, 3 }
 0x400   : > { %v2118_v54 = vsel %vm2116_vm4, %v2117_v46, 0.0 }
 0x401   : > { %s4409_s30 = spop %2438  ;;  %s1671_s27 = sadd.f32 %s1670_s14, %s1658_s17  ;;  %v2121_v63 = vsel %vm2119_vm15, %v2120_v23, %v2118_v54 }
 0x402   : > { %s2441_s26 = spop %2440  ;;  %s1784_s17 = smul.f32 0.015625, %s4409_s30 }
 0x403   : > { %v2123_v34 = vstv %s1671_s27 }
 0x404   : > { %v2124_v45 = vsel %vm2122_vm2, %v2123_v34, %v2121_v63  ;;  %v2126_v13 = vstv %s1784_s17 }
 0x405   : > { %s2443_s24 = spop %2442  ;;  %v2127_v15 = vsel %vm2125_vm3, %v2126_v13, %v2124_v45 }
 0x406   : > { %s2445_s9 = spop %2444 }
 0x407   : > { %s1951_s8 = sadd.f32 %s2445_s9, %s2441_s26  ;;  %s371_s9 = scvt.s32.f32 %s4081_s21 }
 0x408   : > { %s287_s21 = scalar_lea.vmem [#allocation5], %s4416_s0  ;;  %s2737_s0 = smov [#allocation5]  }
 0x409   : > { %s2447_s28 = spop %2446  ;;  %s2155_s30 = sshll.u32 %s287_s21, 4  ;;  %s4433_s30 = int_to_ptr.vmem [resolvable:$true] %s2155_s30 }
 0x40a   : > { %s2449_s16 = spop %2448  ;;  %s1979_s4 = sadd.f32 %s2447_s28, %s2443_s24 }
 0x40b   : > { %s2021_s5 = sadd.f32 %s2449_s16, %s1951_s8  ;;  %s4431_s8 = scalar_lea.hbm %s4481_s7, %s3817_s22 }
 0x40c   : > { %s2668_s17 = sshll.u32 %s2737_s0, 4  ;;  %s2669_s17 = int_to_ptr.vmem [resolvable:$false] %s2668_s17 }
 0x40d   : > { %s2451_s13 = spop %2450  ;;  %s2048_s26 = smul.f32 0.0026041667, %s2021_s5 }
 0x40e   : > { %s2047_s29 = sadd.f32 %s2451_s13, %s1979_s4  ;;  %s2453_s14 = spop %2452 }
 0x40f   : > { %v2129_v33 = vstv %s2048_s26  ;;  %s2061_s4 = smul.f32 0.0026041667, %s2453_s14  ;;  %s2142_s13 = scalar_lea.sflag [#allocation6], %s285_s2 }
 0x410   : > { %s2049_s24 = smul.f32 0.0026041667, %s2047_s29  ;;  %v2130_v12 = vsel %vm2128_vm5, %v2129_v33, %v2127_v15  ;;  %s2664_s29 = scalar_lea.vmem %s4433_s30, 128 }
 0x411   : > { %s2455_s25 = spop %2454  ;;  %v2138_v50 = vstv %s2061_s4  ;;  %p2665_p8 = scmp.ne.s32.totalorder %s4433_s30, %s2664_s29 }
 0x412   : > { %s2457_s23 = spop %2456  ;;  %v2132_v43 = vstv %s2049_s24  ;;  %s2670_s14 = scalar_lea.vmem %s2669_s17, 256 }
 0x413   : > { %s2111_s28 = sadd.f32 %s2457_s23, %s2455_s25  ;;  %v2133_v11 = vsel %vm2131_vm6, %v2132_v43, %v2130_v12  ;;  %p2666_p9 = pnand %p2665_p8, %p2822_p1 }
 0x414   : > { %p2671_p11 = scmp.lt.s32.totalorder %s4433_s30, %s2669_s17  ;;  %p2672_p12 = scmp.lt.s32.totalorder %s2670_s14, %s2664_s29 }
 0x415   : > { %s2112_s3 = smul.f32 0.0078125, %s2111_s28  ;;  %p2667_p10 = pneg %p2666_p9 }
 0x416   : > { %p2673_p13 = por %p2672_p12, %p2671_p11 }
 0x417   : > { %s2113_s5 = smul.f32 %s2112_s3, %s371_s9 }
 0x418   : > { %p2674_p0 = pnand %p2673_p13, %p2667_p10 }
 0x419   : > { %v2135_v60 = vstv %s2113_s5 }
 0x41a   : > { %v2136_v55 = vsel %vm2134_vm7, %v2135_v60, %v2133_v11 }
 0x41b   : > { %v2139_v10 = vsel %vm2137_vm8, %v2138_v50, %v2136_v55 }
 0x41c   : > { %2140 = vst [vmem:[%s287_s21] sm:$0xff] %v2139_v10 }
 0x41d   : > { %2677 = shalt.err (!%p2674_p0)
}
 0x41e   : > { %s2678_s2 = scalar_lea.hbm %s4431_s8, 128  ;;  %s2682_s25 = scalar_lea.hbm %s4481_s7, 256 }
 0x41f   : > { %p2679_p3 = scmp.ne.s32.totalorder %s4431_s8, %s2678_s2  ;;  %p2683_p6 = scmp.lt.u32.totalorder %s4431_s8, %s4481_s7 }
 0x420   : > { %p2684_p7 = scmp.lt.u32.totalorder %s2682_s25, %s2678_s2  ;;  %p2686_p9 = scmp.lt.u32.totalorder %s2678_s2, %s4431_s8 }
 0x421   : > { %p2680_p4 = pnand %p2679_p3, %p2822_p1 }
 0x422   : > { %p2685_p8 = por %p2684_p7, %p2683_p6 }
 0x423   : > { %p2681_p5 = pneg %p2680_p4 }
 0x424   : > { %p2687_p10 = por %p2686_p9, %p2685_p8 }
 0x426   : > { %p2688_p11 = pnand %p2687_p10, %p2681_p5 }
 0x428   : > { %2691 = shalt.err (!%p2688_p11)
}
 0x429   : > { %2458 = dma.vmem_to_hbm [thread:$0]  (%p2822_p1), %s4433_s30, 128, %s4431_s8, %s2142_s13  }
 0x42a PF: > { %p2464_p12 = scmp.ge.s32.totalorder %s2728_s12, 2  ;;  %s2167_s9 = sand.u32 1, %s2716_s1  }
 0x42b   : > { %s2168_s28 = scalar_lea.sflag [#allocation6], %s2167_s9 }
 0x42c   : > { %p2461_p13 = pnand %p2464_p12, %p2826_p2 }
 0x42e   : > { %2711 = dma.done.wait (!%p2461_p13), %s2168_s28, 128  }
 0x42f   : > { %2713 = vsyncadd (!%p2461_p13), %s2168_s28, 4294967168  ;;  %p27_p0 = scmp.ge.s32.totalorder %s2809_s15, 4   ;;  %s4615_s1 = smov %s2720_s10 }
 0x430   : > { %s4616_s10 = smov %s2724_s11  ;;  %s4617_s11 = smov %s2820_s18 }
 0x431   : > { %s4618_s12 = smov %s2809_s15  ;;  %29 = sbr.rel (!%p27_p0) target bundleno = 30 (0x1e), region = 90 }
 0x438   :  { %2173 = vsyncpa [#allocation6], 1 }
 0x439   :  { %2175 = vsyncpa [#allocation6 + $0x1], 1 }

</bundles_post_ra>
